<compile_context>
chip_gen: v6e
topology: v6e:2x2x1
jax: 0.10.0
libtpu: 0.0.40
codegen_flags: <defaults>
</compile_context>

<pallas_src>
import jax
import jax.numpy as jnp
from jax import lax
from jax.experimental import pallas as pl
from jax.experimental.pallas import tpu as pltpu

LANE = 128           # lanes per vreg
SUBL = 8             # sublanes per vreg
SENTINEL = 1.0e6     # coordinate baked into padded vertices: squared distance to any
                     # real point is ~1e12, so padded points can never win a min.
                     # (A rotation cannot collapse (S,S,S) to the origin.)
BIG = 1.0e30         # running-min init (>> any sentinel distance)


def _round_up(n, m):
    return ((n + m - 1) // m) * m


def _vmem_capacity_bytes():
    try:
        info = pltpu.get_tpu_info()
        cap = getattr(info, "vmem_capacity_bytes", None)
        if cap:
            return int(cap)
    except Exception:
        pass
    return 64 * 1024 * 1024  # conservative default (v7x per-TensorCore VMEM)


# ---------------------------------------------------------------------------
# Kernel 1 (API parity): compact perspective transform   out = (v + t) @ (s * R)
#   verts lane-major (8, V_pad): rows 0..2 = x,y,z ; rotations/translations in SMEM
#   output (B, 3, V_pad): only the 3 coordinate rows are written back to HBM.
# ---------------------------------------------------------------------------
def _transform_kernel(r_ref, t_ref, v_ref, o_ref):
    b = pl.program_id(0)
    v = v_ref[...]                                   # (8, tile)
    x = v[0:1, :] + t_ref[b, 0]
    y = v[1:2, :] + t_ref[b, 1]
    z = v[2:3, :] + t_ref[b, 2]
    # out_j = sum_i (v_i + t_i) * R'[i, j]   (R' = s*R, row-major flattened)
    o_ref[0:1, :] = x * r_ref[b, 0] + y * r_ref[b, 3] + z * r_ref[b, 6]
    o_ref[1:2, :] = x * r_ref[b, 1] + y * r_ref[b, 4] + z * r_ref[b, 7]
    o_ref[2:3, :] = x * r_ref[b, 2] + y * r_ref[b, 5] + z * r_ref[b, 8]


def transform_persp_compact(verts_lm, rot_scaled, trans, *, tile, vmem_limit):
    """(8, V_pad) lane-major verts -> (B, 3, V_pad) transformed (rows = xyz)."""
    V_pad = verts_lm.shape[1]
    B = trans.shape[0]
    return pl.pallas_call(
        _transform_kernel,
        out_shape=jax.ShapeDtypeStruct((B, 3, V_pad), jnp.float32),
        grid=(B, V_pad // tile),
        in_specs=[
            pl.BlockSpec(memory_space=pltpu.MemorySpace.SMEM),   # rotations (B, 9)
            pl.BlockSpec(memory_space=pltpu.MemorySpace.SMEM),   # translations (B, 3)
            pl.BlockSpec((8, tile), lambda b, t: (0, t)),        # shared mesh tile
        ],
        out_specs=pl.BlockSpec((None, 3, tile), lambda b, t: (b, 0, t)),
        compiler_params=pltpu.CompilerParams(
            dimension_semantics=("parallel", "parallel"),
            vmem_limit_bytes=vmem_limit,
        ),
    )(rot_scaled, trans, verts_lm)


# ---------------------------------------------------------------------------
# Kernel 2 (fused): transform + chamfer (inter) loss, per batch.
#   grid = (B, object-tiles); person cloud VMEM-resident, in-kernel chunk loop.
# ---------------------------------------------------------------------------
def _build_fused_chamfer_call(B, Vo, Vp, Vo_pad, Vp_pad, TVO, vmem_limit):
    NI = Vo_pad // TVO
    n_chunks = Vp_pad // LANE
    NG = TVO // SUBL                      # object sublane-groups per tile (static unroll)
    inv_vo = 1.0 / float(Vo)
    inv_vp = 1.0 / float(Vp)

    def kernel(ro_ref, to_ref, rp_ref, tp_ref, vo_ref, vp_ref, cham_ref,
               p_scr, oxb, oyb, ozb, rowmin, colmin, cham_acc):
        b = pl.program_id(0)
        i = pl.program_id(1)

        # ---- per-batch init: transform the person cloud once, reset accumulators
        @pl.when(i == 0)
        def _():
            w = vp_ref[...]                                   # (8, Vp_pad) lane-major
            px = w[0:1, :] + tp_ref[b, 0]
            py = w[1:2, :] + tp_ref[b, 1]
            pz = w[2:3, :] + tp_ref[b, 2]
            p_scr[0:1, :] = px * rp_ref[b, 0] + py * rp_ref[b, 3] + pz * rp_ref[b, 6]
            p_scr[1:2, :] = px * rp_ref[b, 1] + py * rp_ref[b, 4] + pz * rp_ref[b, 7]
            p_scr[2:3, :] = px * rp_ref[b, 2] + py * rp_ref[b, 5] + pz * rp_ref[b, 8]
            colmin[...] = jnp.full((SUBL, Vp_pad), BIG, jnp.float32)
            cham_acc[0] = jnp.float32(0.0)

        # ---- per-object-tile setup: transform + pre-broadcast to lane-dense scratches
        v = vo_ref[...]                                       # (TVO, 8) point-major
        x = v[:, 0:1] + to_ref[b, 0]
        y = v[:, 1:2] + to_ref[b, 1]
        z = v[:, 2:3] + to_ref[b, 2]
        oxb[...] = jnp.broadcast_to(
            x * ro_ref[b, 0] + y * ro_ref[b, 3] + z * ro_ref[b, 6], (TVO, LANE))
        oyb[...] = jnp.broadcast_to(
            x * ro_ref[b, 1] + y * ro_ref[b, 4] + z * ro_ref[b, 7], (TVO, LANE))
        ozb[...] = jnp.broadcast_to(
            x * ro_ref[b, 2] + y * ro_ref[b, 5] + z * ro_ref[b, 8], (TVO, LANE))
        rowmin[...] = jnp.full((TVO, LANE), BIG, jnp.float32)

        # ---- hot loop: 128-lane person chunks, single-vreg (8,128) slabs, pure VPU
        @pl.loop(0, n_chunks)
        def _(c):
            off = pl.multiple_of(c * LANE, LANE)
            qx = jnp.broadcast_to(p_scr[0:1, pl.ds(off, LANE)], (SUBL, LANE))
            qy = jnp.broadcast_to(p_scr[1:2, pl.ds(off, LANE)], (SUBL, LANE))
            qz = jnp.broadcast_to(p_scr[2:3, pl.ds(off, LANE)], (SUBL, LANE))
            cm = colmin[:, pl.ds(off, LANE)]                  # (8, 128)
            for g in range(NG):                               # static unroll, 1 vreg each
                sl = pl.ds(g * SUBL, SUBL)
                dx = oxb[sl, :] - qx
                dy = oyb[sl, :] - qy
                dz = ozb[sl, :] - qz
                d = dx * dx + dy * dy + dz * dz               # (8, 128)
                rowmin[sl, :] = jnp.minimum(rowmin[sl, :], d)  # deferred lane-min fold
                cm = jnp.minimum(cm, d)                        # deferred sublane-min fold
            colmin[:, pl.ds(off, LANE)] = cm

        # ---- fold the deferred lane-min once per object tile (single XLU pass)
        ovalid = (lax.broadcasted_iota(jnp.int32, (TVO, 1), 0) + i * TVO) < Vo
        rm = jnp.min(rowmin[...], axis=1, keepdims=True)      # (TVO, 1)
        cham_acc[0] = cham_acc[0] + jnp.sum(jnp.where(ovalid, rm, 0.0))

        # ---- per-batch finalize: fold colmin sublanes once, emit batch chamfer
        @pl.when(i == NI - 1)
        def _():
            pvalid = lax.broadcasted_iota(jnp.int32, (1, Vp_pad), 1) < Vp
            cmin = jnp.min(colmin[...], axis=0, keepdims=True)  # (1, Vp_pad)
            cham_p = jnp.sum(jnp.where(pvalid, cmin, 0.0))
            val = cham_acc[0] * inv_vo + cham_p * inv_vp
            cham_ref[...] = jnp.full((SUBL, LANE), val, jnp.float32)

    return pl.pallas_call(
        kernel,
        out_shape=jax.ShapeDtypeStruct((B, SUBL, LANE), jnp.float32),
        grid=(B, NI),
        in_specs=[
            pl.BlockSpec(memory_space=pltpu.MemorySpace.SMEM),   # rot object  (B, 9)
            pl.BlockSpec(memory_space=pltpu.MemorySpace.SMEM),   # trans object (B, 3)
            pl.BlockSpec(memory_space=pltpu.MemorySpace.SMEM),   # rot person  (B, 9)
            pl.BlockSpec(memory_space=pltpu.MemorySpace.SMEM),   # trans person (B, 3)
            pl.BlockSpec((TVO, 8), lambda b, i: (i, 0)),         # object tile (point-major)
            pl.BlockSpec((8, Vp_pad), lambda b, i: (0, 0)),      # person cloud (lane-major)
        ],
        out_specs=pl.BlockSpec((None, SUBL, LANE), lambda b, i: (b, 0, 0)),
        scratch_shapes=[
            pltpu.VMEM((8, Vp_pad), jnp.float32),    # transformed person cloud
            pltpu.VMEM((TVO, LANE), jnp.float32),    # object x, lane-broadcast
            pltpu.VMEM((TVO, LANE), jnp.float32),    # object y, lane-broadcast
            pltpu.VMEM((TVO, LANE), jnp.float32),    # object z, lane-broadcast
            pltpu.VMEM((TVO, LANE), jnp.float32),    # deferred row-min (per object point)
            pltpu.VMEM((SUBL, Vp_pad), jnp.float32), # deferred col-min (8 sublane groups)
            pltpu.SMEM((1,), jnp.float32),           # per-batch sum of row mins
        ],
        compiler_params=pltpu.CompilerParams(
            # batch axis is independent (per-batch output block + per-batch scratch
            # state) -> megacore-parallel on v7x; object-tile axis carries state.
            dimension_semantics=("parallel", "arbitrary"),
            vmem_limit_bytes=vmem_limit,
        ),
    )


# ---------------------------------------------------------------------------
# JAX-side "module"
# ---------------------------------------------------------------------------
class SimplePHOSAPallas:
    """JAX/Pallas equivalent of simplePHOSA's forward loss computation."""

    def __init__(self, translations_person, rotations_person,
                 translations_object, rotations_object,
                 verts_object, verts_person, int_scale_init=1.0,
                 tile_object=None, transform_tile=512):
        B = int(translations_person.shape[0])
        self.B = B
        self.Vo = int(verts_object.shape[0])
        self.Vp = int(verts_person.shape[0])

        cap = _vmem_capacity_bytes()
        self.vmem_limit = int(min(cap * 3 // 4, 64 * 1024 * 1024))

        # Object tile: per-step overhead vs vreg pressure, never VMEM-capacity driven.
        if tile_object:
            tvo = _round_up(int(tile_object), 128)
        else:
            tvo = min(512, _round_up(self.Vo, 128))
        self.TVO = max(128, tvo)
        self.Vo_pad = _round_up(self.Vo, self.TVO)
        self.Vp_pad = _round_up(self.Vp, LANE)

        vo = jnp.asarray(verts_object, jnp.float32)
        vp = jnp.asarray(verts_person, jnp.float32)
        self._mean_vo = jnp.mean(vo, axis=0)                    # (3,) for centroid loss
        self._mean_vp = jnp.mean(vp, axis=0)

        # compact layouts for the fused loss kernel, sentinel-padded so padded
        # points never win a min (no full-tile masking in the hot loop)
        vo_pm = jnp.zeros((self.Vo_pad, 8), jnp.float32)
        vo_pm = vo_pm.at[:, :3].set(SENTINEL)
        self.verts_object_pm = vo_pm.at[: self.Vo, :3].set(vo)  # (Vo_pad, 8)
        vp_lm = jnp.zeros((8, self.Vp_pad), jnp.float32)
        vp_lm = vp_lm.at[:3, :].set(SENTINEL)
        self.verts_person_lm = vp_lm.at[:3, : self.Vp].set(vp.T)  # (8, Vp_pad)

        # lane-major copies for the standalone transform kernel (API parity)
        self.transform_tile = max(128, _round_up(int(transform_tile), 128))
        self.verts_object_lm_t = self._to_lane_major(vo, self.transform_tile)
        self.verts_person_lm_t = self._to_lane_major(vp, self.transform_tile)

        # parameters: intrinsic scale folded into the rotation (s*((v+t)@R) == (v+t)@(s*R))
        self.int_scales_object = jnp.full((B,), float(int_scale_init), jnp.float32)
        self.int_scales_person = jnp.full((B,), float(int_scale_init), jnp.float32)
        ro = jnp.asarray(rotations_object, jnp.float32) * self.int_scales_object[:, None, None]
        rp = jnp.asarray(rotations_person, jnp.float32) * self.int_scales_person[:, None, None]
        self.rot_object_scaled = ro.reshape(B, 9)
        self.rot_person_scaled = rp.reshape(B, 9)
        self.trans_object = jnp.asarray(translations_object, jnp.float32).reshape(B, 3)
        self.trans_person = jnp.asarray(translations_person, jnp.float32).reshape(B, 3)

        self._chamfer_call = _build_fused_chamfer_call(
            self.B, self.Vo, self.Vp, self.Vo_pad, self.Vp_pad,
            self.TVO, self.vmem_limit)

    @staticmethod
    def _to_lane_major(v, tile):
        V = v.shape[0]
        V_pad = _round_up(V, tile)
        return jnp.zeros((8, V_pad), jnp.float32).at[:3, :V].set(v.T)

    # ---- compute_transformation_persp equivalents (compact layout) -----------
    def get_verts_object(self):
        out = transform_persp_compact(self.verts_object_lm_t, self.rot_object_scaled,
                                      self.trans_object, tile=self.transform_tile,
                                      vmem_limit=self.vmem_limit)
        return jnp.transpose(out[:, :, : self.Vo], (0, 2, 1))       # (B, Vo, 3)

    def get_verts_person(self):
        out = transform_persp_compact(self.verts_person_lm_t, self.rot_person_scaled,
                                      self.trans_person, tile=self.transform_tile,
                                      vmem_limit=self.vmem_limit)
        return jnp.transpose(out[:, :, : self.Vp], (0, 2, 1))       # (B, Vp, 3)

    # ---- losses ---------------------------------------------------------------
    def _chamfer_loss(self):
        out = self._chamfer_call(self.rot_object_scaled, self.trans_object,
                                 self.rot_person_scaled, self.trans_person,
                                 self.verts_object_pm, self.verts_person_lm)
        return jnp.mean(out[:, 0, 0])                                # batch mean

    def _centroid_loss(self):
        # mean is linear and the transform is affine:
        #   mean(s*((v+t)@R)) == (mean(v)+t) @ (s*R)   -- exact, no kernel needed.
        co = (self._mean_vo + self.trans_object[0]) @ self.rot_object_scaled[0].reshape(3, 3)
        cp = (self._mean_vp + self.trans_person[0]) @ self.rot_person_scaled[0].reshape(3, 3)
        return jnp.mean((cp - co) ** 2)

    def forward(self, loss_weights):
        loss = jnp.float32(0.0)

        if loss_weights["lw_ordinal_depth"] > 0:
            # TODO(synk): ordinal-depth loss needs PyTorch3D silhouette rendering + zbuf; no Pallas equivalent.
            pass
        if loss_weights["lw_sil"] > 0:
            # TODO(synk): silhouette loss needs a differentiable mesh renderer; no Pallas equivalent.
            pass

        if loss_weights["lw_inter"] > 0:
            loss = loss + loss_weights["lw_inter"] * self._chamfer_loss()
        if loss_weights["lw_centroid"] > 0:
            loss = loss + loss_weights["lw_centroid"] * self._centroid_loss()
        return loss


if __name__ == "__main__":
    key = jax.random.PRNGKey(0)
    k1, k2, k3, k4 = jax.random.split(key, 4)

    B = 2
    Vo, Vp = 600, 900           # non-multiples of the tile -> exercises sentinel masking
    int_scale_init = 1.1

    verts_object = jax.random.normal(k1, (Vo, 3), jnp.float32)
    verts_person = jax.random.normal(k2, (Vp, 3), jnp.float32) + 0.5
    translations_object = 0.1 * jax.random.normal(k3, (B, 1, 3), jnp.float32)
    translations_person = 0.1 * jax.random.normal(k4, (B, 1, 3), jnp.float32)

    theta = 0.3
    c, s = jnp.cos(theta), jnp.sin(theta)
    rot_o = jnp.array([[c, -s, 0.0], [s, c, 0.0], [0.0, 0.0, 1.0]], jnp.float32)
    rotations_object = jnp.broadcast_to(rot_o, (B, 3, 3))
    rotations_person = jnp.broadcast_to(jnp.eye(3, dtype=jnp.float32), (B, 3, 3))

    model = SimplePHOSAPallas(
        translations_person=translations_person,
        rotations_person=rotations_person,
        translations_object=translations_object,
        rotations_object=rotations_object,
        verts_object=verts_object,
        verts_person=verts_person,
        int_scale_init=int_scale_init,
        tile_object=256,        # multi-tile object grid (B=2 x NI=3) is exercised
    )

    loss_weights = {
        "lw_ordinal_depth": 0.0,   # renderer-based, not implemented
        "lw_sil": 0.0,             # renderer-based, not implemented
        "lw_inter": 1.0,
        "lw_centroid": 1.0,
    }

    loss = jax.block_until_ready(model.forward(loss_weights))

    # ---- pure-JAX reference (elementwise f32, no MXU) -------------------------
    def ref_transform(verts, t, r, sc):
        vt = verts[None, :, :] + t                                       # (B,V,3)
        out = jnp.sum(vt[:, :, :, None] * r[:, None, :, :], axis=2)      # (B,V,3)
        return sc[:, None, None] * out

    s_o = jnp.full((B,), int_scale_init, jnp.float32)
    s_p = jnp.full((B,), int_scale_init, jnp.float32)
    vo_t = ref_transform(verts_object, translations_object, rotations_object, s_o)
    vp_t = ref_transform(verts_person, translations_person, rotations_person, s_p)

    d = jnp.sum((vo_t[:, :, None, :] - vp_t[:, None, :, :]) ** 2, axis=-1)  # (B,Vo,Vp)
    cham_ref = jnp.mean(jnp.mean(jnp.min(d, axis=2), axis=1)
                        + jnp.mean(jnp.min(d, axis=1), axis=1))
    cent_ref = jnp.mean((vp_t[0].mean(0) - vo_t[0].mean(0)) ** 2)
    loss_ref = (loss_weights["lw_inter"] * cham_ref
                + loss_weights["lw_centroid"] * cent_ref)

    # also exercise the standalone compact transform kernel
    vo_k = jax.block_until_ready(model.get_verts_object())
    vp_k = jax.block_until_ready(model.get_verts_person())

    ok = (jnp.allclose(loss, loss_ref, rtol=2e-3, atol=1e-5)
          and jnp.allclose(vo_k, vo_t, rtol=1e-4, atol=1e-5)
          and jnp.allclose(vp_k, vp_t, rtol=1e-4, atol=1e-5))
    if not bool(ok):
        raise AssertionError(
            f"mismatch: loss={float(loss)} ref={float(loss_ref)}")

    print("KERNEL_OK")
</pallas_src>

<mosaic_0001>
module attributes {stable_mosaic.version = 11 : i64} {
  func.func @kernel(%arg0: i32, %arg1: i32, %arg2: memref<2x9xf32, #tpu.memory_space<smem>>, %arg3: memref<2x3xf32, #tpu.memory_space<smem>>, %arg4: memref<2x9xf32, #tpu.memory_space<smem>>, %arg5: memref<2x3xf32, #tpu.memory_space<smem>>, %arg6: memref<256x8xf32, #tpu.memory_space<vmem>>, %arg7: memref<8x1024xf32, #tpu.memory_space<vmem>>, %arg8: memref<1x8x128xf32, #tpu.memory_space<vmem>>, %arg9: memref<8x1024xf32, #tpu.memory_space<vmem>>, %arg10: memref<256x128xf32, #tpu.memory_space<vmem>>, %arg11: memref<256x128xf32, #tpu.memory_space<vmem>>, %arg12: memref<256x128xf32, #tpu.memory_space<vmem>>, %arg13: memref<256x128xf32, #tpu.memory_space<vmem>>, %arg14: memref<8x1024xf32, #tpu.memory_space<vmem>>, %arg15: memref<1xf32, #tpu.memory_space<smem>>) attributes {dimension_semantics = [#tpu.dimension_semantics<parallel>, #tpu.dimension_semantics<arbitrary>], iteration_bounds = array<i64: 2, 3>, scalar_prefetch = 0 : i64, scratch_operands = 7 : i64, tpu.core_type = #tpu.core_type<tc>, window_params = [{transform_indices = @transform_0, window_bounds = array<i64: 2, 9>}, {transform_indices = @transform_1, window_bounds = array<i64: 2, 3>}, {transform_indices = @transform_2, window_bounds = array<i64: 2, 9>}, {transform_indices = @transform_3, window_bounds = array<i64: 2, 3>}, {transform_indices = @transform_4, window_bounds = array<i64: 256, 8>}, {pipeline_mode = #tpu.pipeline_mode<synchronous>, transform_indices = @transform_5, window_bounds = array<i64: 8, 1024>}, {transform_indices = @transform_6, window_bounds = array<i64: 1, 8, 128>}]} {
    %c0_i32 = arith.constant 0 : i32
    %0 = arith.cmpi eq, %arg1, %c0_i32 : i32
    %1 = arith.extui %0 : i1 to i32
    %c0_i32_0 = arith.constant 0 : i32
    %2 = arith.cmpi ne, %1, %c0_i32_0 : i32
    scf.if %2 {
      %c0_24 = arith.constant 0 : index
      %c0_25 = arith.constant 0 : index
      %94 = vector.load %arg7[%c0_24, %c0_25] : memref<8x1024xf32, #tpu.memory_space<vmem>>, vector<8x1024xf32>
      %95 = vector.extract_strided_slice %94 {offsets = [0, 0], sizes = [1, 1024], strides = [1, 1]} : vector<8x1024xf32> to vector<1x1024xf32>
      %96 = arith.index_cast %arg0 : i32 to index
      %c0_26 = arith.constant 0 : index
      %97 = memref.load %arg5[%96, %c0_26] : memref<2x3xf32, #tpu.memory_space<smem>>
      %98 = vector.broadcast %97 : f32 to vector<1x1024xf32>
      %99 = arith.addf %95, %98 : vector<1x1024xf32>
      %100 = vector.extract_strided_slice %94 {offsets = [1, 0], sizes = [1, 1024], strides = [1, 1]} : vector<8x1024xf32> to vector<1x1024xf32>
      %101 = arith.index_cast %arg0 : i32 to index
      %c1_27 = arith.constant 1 : index
      %102 = memref.load %arg5[%101, %c1_27] : memref<2x3xf32, #tpu.memory_space<smem>>
      %103 = vector.broadcast %102 : f32 to vector<1x1024xf32>
      %104 = arith.addf %100, %103 : vector<1x1024xf32>
      %105 = vector.extract_strided_slice %94 {offsets = [2, 0], sizes = [1, 1024], strides = [1, 1]} : vector<8x1024xf32> to vector<1x1024xf32>
      %106 = arith.index_cast %arg0 : i32 to index
      %c2_28 = arith.constant 2 : index
      %107 = memref.load %arg5[%106, %c2_28] : memref<2x3xf32, #tpu.memory_space<smem>>
      %108 = vector.broadcast %107 : f32 to vector<1x1024xf32>
      %109 = arith.addf %105, %108 : vector<1x1024xf32>
      %110 = arith.index_cast %arg0 : i32 to index
      %c0_29 = arith.constant 0 : index
      %111 = memref.load %arg4[%110, %c0_29] : memref<2x9xf32, #tpu.memory_space<smem>>
      %112 = vector.broadcast %111 : f32 to vector<1x1024xf32>
      %113 = arith.mulf %99, %112 : vector<1x1024xf32>
      %114 = arith.index_cast %arg0 : i32 to index
      %c3_30 = arith.constant 3 : index
      %115 = memref.load %arg4[%114, %c3_30] : memref<2x9xf32, #tpu.memory_space<smem>>
      %116 = vector.broadcast %115 : f32 to vector<1x1024xf32>
      %117 = arith.mulf %104, %116 : vector<1x1024xf32>
      %118 = arith.addf %113, %117 : vector<1x1024xf32>
      %119 = arith.index_cast %arg0 : i32 to index
      %c6_31 = arith.constant 6 : index
      %120 = memref.load %arg4[%119, %c6_31] : memref<2x9xf32, #tpu.memory_space<smem>>
      %121 = vector.broadcast %120 : f32 to vector<1x1024xf32>
      %122 = arith.mulf %109, %121 : vector<1x1024xf32>
      %123 = arith.addf %118, %122 : vector<1x1024xf32>
      %c0_32 = arith.constant 0 : index
      %c0_33 = arith.constant 0 : index
      %124 = vector.load %arg9[%c0_32, %c0_33] : memref<8x1024xf32, #tpu.memory_space<vmem>>, vector<1x1024xf32>
      tpu.vector_store %arg9[%c0_32, %c0_33], %123 {strides = array<i32>} : memref<8x1024xf32, #tpu.memory_space<vmem>>, vector<1x1024xf32>,
      %125 = arith.index_cast %arg0 : i32 to index
      %c1_34 = arith.constant 1 : index
      %126 = memref.load %arg4[%125, %c1_34] : memref<2x9xf32, #tpu.memory_space<smem>>
      %127 = vector.broadcast %126 : f32 to vector<1x1024xf32>
      %128 = arith.mulf %99, %127 : vector<1x1024xf32>
      %129 = arith.index_cast %arg0 : i32 to index
      %c4_35 = arith.constant 4 : index
      %130 = memref.load %arg4[%129, %c4_35] : memref<2x9xf32, #tpu.memory_space<smem>>
      %131 = vector.broadcast %130 : f32 to vector<1x1024xf32>
      %132 = arith.mulf %104, %131 : vector<1x1024xf32>
      %133 = arith.addf %128, %132 : vector<1x1024xf32>
      %134 = arith.index_cast %arg0 : i32 to index
      %c7_36 = arith.constant 7 : index
      %135 = memref.load %arg4[%134, %c7_36] : memref<2x9xf32, #tpu.memory_space<smem>>
      %136 = vector.broadcast %135 : f32 to vector<1x1024xf32>
      %137 = arith.mulf %109, %136 : vector<1x1024xf32>
      %138 = arith.addf %133, %137 : vector<1x1024xf32>
      %c1_37 = arith.constant 1 : index
      %c0_38 = arith.constant 0 : index
      %139 = vector.load %arg9[%c1_37, %c0_38] : memref<8x1024xf32, #tpu.memory_space<vmem>>, vector<1x1024xf32>
      tpu.vector_store %arg9[%c1_37, %c0_38], %138 {strides = array<i32>} : memref<8x1024xf32, #tpu.memory_space<vmem>>, vector<1x1024xf32>,
      %140 = arith.index_cast %arg0 : i32 to index
      %c2_39 = arith.constant 2 : index
      %141 = memref.load %arg4[%140, %c2_39] : memref<2x9xf32, #tpu.memory_space<smem>>
      %142 = vector.broadcast %141 : f32 to vector<1x1024xf32>
      %143 = arith.mulf %99, %142 : vector<1x1024xf32>
      %144 = arith.index_cast %arg0 : i32 to index
      %c5_40 = arith.constant 5 : index
      %145 = memref.load %arg4[%144, %c5_40] : memref<2x9xf32, #tpu.memory_space<smem>>
      %146 = vector.broadcast %145 : f32 to vector<1x1024xf32>
      %147 = arith.mulf %104, %146 : vector<1x1024xf32>
      %148 = arith.addf %143, %147 : vector<1x1024xf32>
      %149 = arith.index_cast %arg0 : i32 to index
      %c8_41 = arith.constant 8 : index
      %150 = memref.load %arg4[%149, %c8_41] : memref<2x9xf32, #tpu.memory_space<smem>>
      %151 = vector.broadcast %150 : f32 to vector<1x1024xf32>
      %152 = arith.mulf %109, %151 : vector<1x1024xf32>
      %153 = arith.addf %148, %152 : vector<1x1024xf32>
      %c2_42 = arith.constant 2 : index
      %c0_43 = arith.constant 0 : index
      %154 = vector.load %arg9[%c2_42, %c0_43] : memref<8x1024xf32, #tpu.memory_space<vmem>>, vector<1x1024xf32>
      tpu.vector_store %arg9[%c2_42, %c0_43], %153 {strides = array<i32>} : memref<8x1024xf32, #tpu.memory_space<vmem>>, vector<1x1024xf32>,
      %cst_44 = arith.constant 1.000000e+30 : f32
      %155 = vector.broadcast %cst_44 : f32 to vector<8x1024xf32>
      %c0_45 = arith.constant 0 : index
      %c0_46 = arith.constant 0 : index
      %156 = vector.load %arg14[%c0_45, %c0_46] : memref<8x1024xf32, #tpu.memory_space<vmem>>, vector<8x1024xf32>
      tpu.vector_store %arg14[%c0_45, %c0_46], %155 {strides = array<i32>} : memref<8x1024xf32, #tpu.memory_space<vmem>>, vector<8x1024xf32>,
      %cst_47 = arith.constant 0.000000e+00 : f32
      %c0_48 = arith.constant 0 : index
      %157 = memref.load %arg15[%c0_48] : memref<1xf32, #tpu.memory_space<smem>>
      memref.store %cst_47, %arg15[%c0_48] : memref<1xf32, #tpu.memory_space<smem>>
    } else {
    }
    %c0 = arith.constant 0 : index
    %c0_1 = arith.constant 0 : index
    %3 = vector.load %arg6[%c0, %c0_1] : memref<256x8xf32, #tpu.memory_space<vmem>>, vector<256x8xf32>
    %4 = vector.extract_strided_slice %3 {offsets = [0, 0], sizes = [256, 1], strides = [1, 1]} : vector<256x8xf32> to vector<256x1xf32>
    %5 = arith.index_cast %arg0 : i32 to index
    %c0_2 = arith.constant 0 : index
    %6 = memref.load %arg3[%5, %c0_2] : memref<2x3xf32, #tpu.memory_space<smem>>
    %7 = vector.broadcast %6 : f32 to vector<256x1xf32>
    %8 = arith.addf %4, %7 : vector<256x1xf32>
    %9 = vector.extract_strided_slice %3 {offsets = [0, 1], sizes = [256, 1], strides = [1, 1]} : vector<256x8xf32> to vector<256x1xf32>
    %10 = arith.index_cast %arg0 : i32 to index
    %c1 = arith.constant 1 : index
    %11 = memref.load %arg3[%10, %c1] : memref<2x3xf32, #tpu.memory_space<smem>>
    %12 = vector.broadcast %11 : f32 to vector<256x1xf32>
    %13 = arith.addf %9, %12 : vector<256x1xf32>
    %14 = vector.extract_strided_slice %3 {offsets = [0, 2], sizes = [256, 1], strides = [1, 1]} : vector<256x8xf32> to vector<256x1xf32>
    %15 = arith.index_cast %arg0 : i32 to index
    %c2 = arith.constant 2 : index
    %16 = memref.load %arg3[%15, %c2] : memref<2x3xf32, #tpu.memory_space<smem>>
    %17 = vector.broadcast %16 : f32 to vector<256x1xf32>
    %18 = arith.addf %14, %17 : vector<256x1xf32>
    %19 = arith.index_cast %arg0 : i32 to index
    %c0_3 = arith.constant 0 : index
    %20 = memref.load %arg2[%19, %c0_3] : memref<2x9xf32, #tpu.memory_space<smem>>
    %21 = vector.broadcast %20 : f32 to vector<256x1xf32>
    %22 = arith.mulf %8, %21 : vector<256x1xf32>
    %23 = arith.index_cast %arg0 : i32 to index
    %c3 = arith.constant 3 : index
    %24 = memref.load %arg2[%23, %c3] : memref<2x9xf32, #tpu.memory_space<smem>>
    %25 = vector.broadcast %24 : f32 to vector<256x1xf32>
    %26 = arith.mulf %13, %25 : vector<256x1xf32>
    %27 = arith.addf %22, %26 : vector<256x1xf32>
    %28 = arith.index_cast %arg0 : i32 to index
    %c6 = arith.constant 6 : index
    %29 = memref.load %arg2[%28, %c6] : memref<2x9xf32, #tpu.memory_space<smem>>
    %30 = vector.broadcast %29 : f32 to vector<256x1xf32>
    %31 = arith.mulf %18, %30 : vector<256x1xf32>
    %32 = arith.addf %27, %31 : vector<256x1xf32>
    %33 = vector.shape_cast %32 : vector<256x1xf32> to vector<256x1xf32>
    %34 = vector.broadcast %33 : vector<256x1xf32> to vector<256x128xf32>
    %c0_4 = arith.constant 0 : index
    %c0_5 = arith.constant 0 : index
    %35 = vector.load %arg10[%c0_4, %c0_5] : memref<256x128xf32, #tpu.memory_space<vmem>>, vector<256x128xf32>
    tpu.vector_store %arg10[%c0_4, %c0_5], %34 {strides = array<i32>} : memref<256x128xf32, #tpu.memory_space<vmem>>, vector<256x128xf32>,
    %36 = arith.index_cast %arg0 : i32 to index
    %c1_6 = arith.constant 1 : index
    %37 = memref.load %arg2[%36, %c1_6] : memref<2x9xf32, #tpu.memory_space<smem>>
    %38 = vector.broadcast %37 : f32 to vector<256x1xf32>
    %39 = arith.mulf %8, %38 : vector<256x1xf32>
    %40 = arith.index_cast %arg0 : i32 to index
    %c4 = arith.constant 4 : index
    %41 = memref.load %arg2[%40, %c4] : memref<2x9xf32, #tpu.memory_space<smem>>
    %42 = vector.broadcast %41 : f32 to vector<256x1xf32>
    %43 = arith.mulf %13, %42 : vector<256x1xf32>
    %44 = arith.addf %39, %43 : vector<256x1xf32>
    %45 = arith.index_cast %arg0 : i32 to index
    %c7 = arith.constant 7 : index
    %46 = memref.load %arg2[%45, %c7] : memref<2x9xf32, #tpu.memory_space<smem>>
    %47 = vector.broadcast %46 : f32 to vector<256x1xf32>
    %48 = arith.mulf %18, %47 : vector<256x1xf32>
    %49 = arith.addf %44, %48 : vector<256x1xf32>
    %50 = vector.shape_cast %49 : vector<256x1xf32> to vector<256x1xf32>
    %51 = vector.broadcast %50 : vector<256x1xf32> to vector<256x128xf32>
    %c0_7 = arith.constant 0 : index
    %c0_8 = arith.constant 0 : index
    %52 = vector.load %arg11[%c0_7, %c0_8] : memref<256x128xf32, #tpu.memory_space<vmem>>, vector<256x128xf32>
    tpu.vector_store %arg11[%c0_7, %c0_8], %51 {strides = array<i32>} : memref<256x128xf32, #tpu.memory_space<vmem>>, vector<256x128xf32>,
    %53 = arith.index_cast %arg0 : i32 to index
    %c2_9 = arith.constant 2 : index
    %54 = memref.load %arg2[%53, %c2_9] : memref<2x9xf32, #tpu.memory_space<smem>>
    %55 = vector.broadcast %54 : f32 to vector<256x1xf32>
    %56 = arith.mulf %8, %55 : vector<256x1xf32>
    %57 = arith.index_cast %arg0 : i32 to index
    %c5 = arith.constant 5 : index
    %58 = memref.load %arg2[%57, %c5] : memref<2x9xf32, #tpu.memory_space<smem>>
    %59 = vector.broadcast %58 : f32 to vector<256x1xf32>
    %60 = arith.mulf %13, %59 : vector<256x1xf32>
    %61 = arith.addf %56, %60 : vector<256x1xf32>
    %62 = arith.index_cast %arg0 : i32 to index
    %c8 = arith.constant 8 : index
    %63 = memref.load %arg2[%62, %c8] : memref<2x9xf32, #tpu.memory_space<smem>>
    %64 = vector.broadcast %63 : f32 to vector<256x1xf32>
    %65 = arith.mulf %18, %64 : vector<256x1xf32>
    %66 = arith.addf %61, %65 : vector<256x1xf32>
    %67 = vector.shape_cast %66 : vector<256x1xf32> to vector<256x1xf32>
    %68 = vector.broadcast %67 : vector<256x1xf32> to vector<256x128xf32>
    %c0_10 = arith.constant 0 : index
    %c0_11 = arith.constant 0 : index
    %69 = vector.load %arg12[%c0_10, %c0_11] : memref<256x128xf32, #tpu.memory_space<vmem>>, vector<256x128xf32>
    tpu.vector_store %arg12[%c0_10, %c0_11], %68 {strides = array<i32>} : memref<256x128xf32, #tpu.memory_space<vmem>>, vector<256x128xf32>,
    %cst = arith.constant 1.000000e+30 : f32
    %70 = vector.broadcast %cst : f32 to vector<256x128xf32>
    %c0_12 = arith.constant 0 : index
    %c0_13 = arith.constant 0 : index
    %71 = vector.load %arg13[%c0_12, %c0_13] : memref<256x128xf32, #tpu.memory_space<vmem>>, vector<256x128xf32>
    tpu.vector_store %arg13[%c0_12, %c0_13], %70 {strides = array<i32>} : memref<256x128xf32, #tpu.memory_space<vmem>>, vector<256x128xf32>,
    %c0_i32_14 = arith.constant 0 : i32
    %c8_i32 = arith.constant 8 : i32
    %72 = arith.addi %c0_i32_14, %c8_i32 : i32
    %c1_i32 = arith.constant 1 : i32
    scf.for %arg16 = %c0_i32_14 to %72 step %c1_i32  : i32 {
      %c1_i32_24 = arith.constant 1 : i32
      %94 = arith.muli %arg16, %c1_i32_24 : i32
      %c0_i32_25 = arith.constant 0 : i32
      %95 = arith.addi %c0_i32_25, %94 : i32
      %c128_i32 = arith.constant 128 : i32
      %96 = arith.muli %95, %c128_i32 : i32
      %97 = tpu.assume_multiple %96, 128 : i32
      %c0_26 = arith.constant 0 : index
      %98 = arith.index_cast %97 : i32 to index
      %99 = vector.load %arg9[%c0_26, %98] : memref<8x1024xf32, #tpu.memory_space<vmem>>, vector<1x128xf32>
      %100 = vector.shape_cast %99 : vector<1x128xf32> to vector<1x128xf32>
      %101 = vector.broadcast %100 : vector<1x128xf32> to vector<8x128xf32>
      %c1_27 = arith.constant 1 : index
      %102 = arith.index_cast %97 : i32 to index
      %103 = vector.load %arg9[%c1_27, %102] : memref<8x1024xf32, #tpu.memory_space<vmem>>, vector<1x128xf32>
      %104 = vector.shape_cast %103 : vector<1x128xf32> to vector<1x128xf32>
      %105 = vector.broadcast %104 : vector<1x128xf32> to vector<8x128xf32>
      %c2_28 = arith.constant 2 : index
      %106 = arith.index_cast %97 : i32 to index
      %107 = vector.load %arg9[%c2_28, %106] : memref<8x1024xf32, #tpu.memory_space<vmem>>, vector<1x128xf32>
      %108 = vector.shape_cast %107 : vector<1x128xf32> to vector<1x128xf32>
      %109 = vector.broadcast %108 : vector<1x128xf32> to vector<8x128xf32>
      %c0_29 = arith.constant 0 : index
      %110 = arith.index_cast %97 : i32 to index
      %111 = vector.load %arg14[%c0_29, %110] : memref<8x1024xf32, #tpu.memory_space<vmem>>, vector<8x128xf32>
      %c0_30 = arith.constant 0 : index
      %c0_31 = arith.constant 0 : index
      %112 = vector.load %arg10[%c0_30, %c0_31] : memref<256x128xf32, #tpu.memory_space<vmem>>, vector<8x128xf32>
      %113 = arith.subf %112, %101 : vector<8x128xf32>
      %c0_32 = arith.constant 0 : index
      %c0_33 = arith.constant 0 : index
      %114 = vector.load %arg11[%c0_32, %c0_33] : memref<256x128xf32, #tpu.memory_space<vmem>>, vector<8x128xf32>
      %115 = arith.subf %114, %105 : vector<8x128xf32>
      %c0_34 = arith.constant 0 : index
      %c0_35 = arith.constant 0 : index
      %116 = vector.load %arg12[%c0_34, %c0_35] : memref<256x128xf32, #tpu.memory_space<vmem>>, vector<8x128xf32>
      %117 = arith.subf %116, %109 : vector<8x128xf32>
      %118 = arith.mulf %113, %113 : vector<8x128xf32>
      %119 = arith.mulf %115, %115 : vector<8x128xf32>
      %120 = arith.addf %118, %119 : vector<8x128xf32>
      %121 = arith.mulf %117, %117 : vector<8x128xf32>
      %122 = arith.addf %120, %121 : vector<8x128xf32>
      %c0_36 = arith.constant 0 : index
      %c0_37 = arith.constant 0 : index
      %123 = vector.load %arg13[%c0_36, %c0_37] : memref<256x128xf32, #tpu.memory_space<vmem>>, vector<8x128xf32>
      %124 = arith.minimumf %123, %122 : vector<8x128xf32>
      %c0_38 = arith.constant 0 : index
      %c0_39 = arith.constant 0 : index
      %125 = vector.load %arg13[%c0_38, %c0_39] : memref<256x128xf32, #tpu.memory_space<vmem>>, vector<8x128xf32>
      tpu.vector_store %arg13[%c0_38, %c0_39], %124 {strides = array<i32>} : memref<256x128xf32, #tpu.memory_space<vmem>>, vector<8x128xf32>,
      %126 = arith.minimumf %111, %122 : vector<8x128xf32>
      %c8_40 = arith.constant 8 : index
      %c0_41 = arith.constant 0 : index
      %127 = vector.load %arg10[%c8_40, %c0_41] : memref<256x128xf32, #tpu.memory_space<vmem>>, vector<8x128xf32>
      %128 = arith.subf %127, %101 : vector<8x128xf32>
      %c8_42 = arith.constant 8 : index
      %c0_43 = arith.constant 0 : index
      %129 = vector.load %arg11[%c8_42, %c0_43] : memref<256x128xf32, #tpu.memory_space<vmem>>, vector<8x128xf32>
      %130 = arith.subf %129, %105 : vector<8x128xf32>
      %c8_44 = arith.constant 8 : index
      %c0_45 = arith.constant 0 : index
      %131 = vector.load %arg12[%c8_44, %c0_45] : memref<256x128xf32, #tpu.memory_space<vmem>>, vector<8x128xf32>
      %132 = arith.subf %131, %109 : vector<8x128xf32>
      %133 = arith.mulf %128, %128 : vector<8x128xf32>
      %134 = arith.mulf %130, %130 : vector<8x128xf32>
      %135 = arith.addf %133, %134 : vector<8x128xf32>
      %136 = arith.mulf %132, %132 : vector<8x128xf32>
      %137 = arith.addf %135, %136 : vector<8x128xf32>
      %c8_46 = arith.constant 8 : index
      %c0_47 = arith.constant 0 : index
      %138 = vector.load %arg13[%c8_46, %c0_47] : memref<256x128xf32, #tpu.memory_space<vmem>>, vector<8x128xf32>
      %139 = arith.minimumf %138, %137 : vector<8x128xf32>
      %c8_48 = arith.constant 8 : index
      %c0_49 = arith.constant 0 : index
      %140 = vector.load %arg13[%c8_48, %c0_49] : memref<256x128xf32, #tpu.memory_space<vmem>>, vector<8x128xf32>
      tpu.vector_store %arg13[%c8_48, %c0_49], %139 {strides = array<i32>} : memref<256x128xf32, #tpu.memory_space<vmem>>, vector<8x128xf32>,
      %141 = arith.minimumf %126, %137 : vector<8x128xf32>
      %c16 = arith.constant 16 : index
      %c0_50 = arith.constant 0 : index
      %142 = vector.load %arg10[%c16, %c0_50] : memref<256x128xf32, #tpu.memory_space<vmem>>, vector<8x128xf32>
      %143 = arith.subf %142, %101 : vector<8x128xf32>
      %c16_51 = arith.constant 16 : index
      %c0_52 = arith.constant 0 : index
      %144 = vector.load %arg11[%c16_51, %c0_52] : memref<256x128xf32, #tpu.memory_space<vmem>>, vector<8x128xf32>
      %145 = arith.subf %144, %105 : vector<8x128xf32>
      %c16_53 = arith.constant 16 : index
      %c0_54 = arith.constant 0 : index
      %146 = vector.load %arg12[%c16_53, %c0_54] : memref<256x128xf32, #tpu.memory_space<vmem>>, vector<8x128xf32>
      %147 = arith.subf %146, %109 : vector<8x128xf32>
      %148 = arith.mulf %143, %143 : vector<8x128xf32>
      %149 = arith.mulf %145, %145 : vector<8x128xf32>
      %150 = arith.addf %148, %149 : vector<8x128xf32>
      %151 = arith.mulf %147, %147 : vector<8x128xf32>
      %152 = arith.addf %150, %151 : vector<8x128xf32>
      %c16_55 = arith.constant 16 : index
      %c0_56 = arith.constant 0 : index
      %153 = vector.load %arg13[%c16_55, %c0_56] : memref<256x128xf32, #tpu.memory_space<vmem>>, vector<8x128xf32>
      %154 = arith.minimumf %153, %152 : vector<8x128xf32>
      %c16_57 = arith.constant 16 : index
      %c0_58 = arith.constant 0 : index
      %155 = vector.load %arg13[%c16_57, %c0_58] : memref<256x128xf32, #tpu.memory_space<vmem>>, vector<8x128xf32>
      tpu.vector_store %arg13[%c16_57, %c0_58], %154 {strides = array<i32>} : memref<256x128xf32, #tpu.memory_space<vmem>>, vector<8x128xf32>,
      %156 = arith.minimumf %141, %152 : vector<8x128xf32>
      %c24 = arith.constant 24 : index
      %c0_59 = arith.constant 0 : index
      %157 = vector.load %arg10[%c24, %c0_59] : memref<256x128xf32, #tpu.memory_space<vmem>>, vector<8x128xf32>
      %158 = arith.subf %157, %101 : vector<8x128xf32>
      %c24_60 = arith.constant 24 : index
      %c0_61 = arith.constant 0 : index
      %159 = vector.load %arg11[%c24_60, %c0_61] : memref<256x128xf32, #tpu.memory_space<vmem>>, vector<8x128xf32>
      %160 = arith.subf %159, %105 : vector<8x128xf32>
      %c24_62 = arith.constant 24 : index
      %c0_63 = arith.constant 0 : index
      %161 = vector.load %arg12[%c24_62, %c0_63] : memref<256x128xf32, #tpu.memory_space<vmem>>, vector<8x128xf32>
      %162 = arith.subf %161, %109 : vector<8x128xf32>
      %163 = arith.mulf %158, %158 : vector<8x128xf32>
      %164 = arith.mulf %160, %160 : vector<8x128xf32>
      %165 = arith.addf %163, %164 : vector<8x128xf32>
      %166 = arith.mulf %162, %162 : vector<8x128xf32>
      %167 = arith.addf %165, %166 : vector<8x128xf32>
      %c24_64 = arith.constant 24 : index
      %c0_65 = arith.constant 0 : index
      %168 = vector.load %arg13[%c24_64, %c0_65] : memref<256x128xf32, #tpu.memory_space<vmem>>, vector<8x128xf32>
      %169 = arith.minimumf %168, %167 : vector<8x128xf32>
      %c24_66 = arith.constant 24 : index
      %c0_67 = arith.constant 0 : index
      %170 = vector.load %arg13[%c24_66, %c0_67] : memref<256x128xf32, #tpu.memory_space<vmem>>, vector<8x128xf32>
      tpu.vector_store %arg13[%c24_66, %c0_67], %169 {strides = array<i32>} : memref<256x128xf32, #tpu.memory_space<vmem>>, vector<8x128xf32>,
      %171 = arith.minimumf %156, %167 : vector<8x128xf32>
      %c32 = arith.constant 32 : index
      %c0_68 = arith.constant 0 : index
      %172 = vector.load %arg10[%c32, %c0_68] : memref<256x128xf32, #tpu.memory_space<vmem>>, vector<8x128xf32>
      %173 = arith.subf %172, %101 : vector<8x128xf32>
      %c32_69 = arith.constant 32 : index
      %c0_70 = arith.constant 0 : index
      %174 = vector.load %arg11[%c32_69, %c0_70] : memref<256x128xf32, #tpu.memory_space<vmem>>, vector<8x128xf32>
      %175 = arith.subf %174, %105 : vector<8x128xf32>
      %c32_71 = arith.constant 32 : index
      %c0_72 = arith.constant 0 : index
      %176 = vector.load %arg12[%c32_71, %c0_72] : memref<256x128xf32, #tpu.memory_space<vmem>>, vector<8x128xf32>
      %177 = arith.subf %176, %109 : vector<8x128xf32>
      %178 = arith.mulf %173, %173 : vector<8x128xf32>
      %179 = arith.mulf %175, %175 : vector<8x128xf32>
      %180 = arith.addf %178, %179 : vector<8x128xf32>
      %181 = arith.mulf %177, %177 : vector<8x128xf32>
      %182 = arith.addf %180, %181 : vector<8x128xf32>
      %c32_73 = arith.constant 32 : index
      %c0_74 = arith.constant 0 : index
      %183 = vector.load %arg13[%c32_73, %c0_74] : memref<256x128xf32, #tpu.memory_space<vmem>>, vector<8x128xf32>
      %184 = arith.minimumf %183, %182 : vector<8x128xf32>
      %c32_75 = arith.constant 32 : index
      %c0_76 = arith.constant 0 : index
      %185 = vector.load %arg13[%c32_75, %c0_76] : memref<256x128xf32, #tpu.memory_space<vmem>>, vector<8x128xf32>
      tpu.vector_store %arg13[%c32_75, %c0_76], %184 {strides = array<i32>} : memref<256x128xf32, #tpu.memory_space<vmem>>, vector<8x128xf32>,
      %186 = arith.minimumf %171, %182 : vector<8x128xf32>
      %c40 = arith.constant 40 : index
      %c0_77 = arith.constant 0 : index
      %187 = vector.load %arg10[%c40, %c0_77] : memref<256x128xf32, #tpu.memory_space<vmem>>, vector<8x128xf32>
      %188 = arith.subf %187, %101 : vector<8x128xf32>
      %c40_78 = arith.constant 40 : index
      %c0_79 = arith.constant 0 : index
      %189 = vector.load %arg11[%c40_78, %c0_79] : memref<256x128xf32, #tpu.memory_space<vmem>>, vector<8x128xf32>
      %190 = arith.subf %189, %105 : vector<8x128xf32>
      %c40_80 = arith.constant 40 : index
      %c0_81 = arith.constant 0 : index
      %191 = vector.load %arg12[%c40_80, %c0_81] : memref<256x128xf32, #tpu.memory_space<vmem>>, vector<8x128xf32>
      %192 = arith.subf %191, %109 : vector<8x128xf32>
      %193 = arith.mulf %188, %188 : vector<8x128xf32>
      %194 = arith.mulf %190, %190 : vector<8x128xf32>
      %195 = arith.addf %193, %194 : vector<8x128xf32>
      %196 = arith.mulf %192, %192 : vector<8x128xf32>
      %197 = arith.addf %195, %196 : vector<8x128xf32>
      %c40_82 = arith.constant 40 : index
      %c0_83 = arith.constant 0 : index
      %198 = vector.load %arg13[%c40_82, %c0_83] : memref<256x128xf32, #tpu.memory_space<vmem>>, vector<8x128xf32>
      %199 = arith.minimumf %198, %197 : vector<8x128xf32>
      %c40_84 = arith.constant 40 : index
      %c0_85 = arith.constant 0 : index
      %200 = vector.load %arg13[%c40_84, %c0_85] : memref<256x128xf32, #tpu.memory_space<vmem>>, vector<8x128xf32>
      tpu.vector_store %arg13[%c40_84, %c0_85], %199 {strides = array<i32>} : memref<256x128xf32, #tpu.memory_space<vmem>>, vector<8x128xf32>,
      %201 = arith.minimumf %186, %197 : vector<8x128xf32>
      %c48 = arith.constant 48 : index
      %c0_86 = arith.constant 0 : index
      %202 = vector.load %arg10[%c48, %c0_86] : memref<256x128xf32, #tpu.memory_space<vmem>>, vector<8x128xf32>
      %203 = arith.subf %202, %101 : vector<8x128xf32>
      %c48_87 = arith.constant 48 : index
      %c0_88 = arith.constant 0 : index
      %204 = vector.load %arg11[%c48_87, %c0_88] : memref<256x128xf32, #tpu.memory_space<vmem>>, vector<8x128xf32>
      %205 = arith.subf %204, %105 : vector<8x128xf32>
      %c48_89 = arith.constant 48 : index
      %c0_90 = arith.constant 0 : index
      %206 = vector.load %arg12[%c48_89, %c0_90] : memref<256x128xf32, #tpu.memory_space<vmem>>, vector<8x128xf32>
      %207 = arith.subf %206, %109 : vector<8x128xf32>
      %208 = arith.mulf %203, %203 : vector<8x128xf32>
      %209 = arith.mulf %205, %205 : vector<8x128xf32>
      %210 = arith.addf %208, %209 : vector<8x128xf32>
      %211 = arith.mulf %207, %207 : vector<8x128xf32>
      %212 = arith.addf %210, %211 : vector<8x128xf32>
      %c48_91 = arith.constant 48 : index
      %c0_92 = arith.constant 0 : index
      %213 = vector.load %arg13[%c48_91, %c0_92] : memref<256x128xf32, #tpu.memory_space<vmem>>, vector<8x128xf32>
      %214 = arith.minimumf %213, %212 : vector<8x128xf32>
      %c48_93 = arith.constant 48 : index
      %c0_94 = arith.constant 0 : index
      %215 = vector.load %arg13[%c48_93, %c0_94] : memref<256x128xf32, #tpu.memory_space<vmem>>, vector<8x128xf32>
      tpu.vector_store %arg13[%c48_93, %c0_94], %214 {strides = array<i32>} : memref<256x128xf32, #tpu.memory_space<vmem>>, vector<8x128xf32>,
      %216 = arith.minimumf %201, %212 : vector<8x128xf32>
      %c56 = arith.constant 56 : index
      %c0_95 = arith.constant 0 : index
      %217 = vector.load %arg10[%c56, %c0_95] : memref<256x128xf32, #tpu.memory_space<vmem>>, vector<8x128xf32>
      %218 = arith.subf %217, %101 : vector<8x128xf32>
      %c56_96 = arith.constant 56 : index
      %c0_97 = arith.constant 0 : index
      %219 = vector.load %arg11[%c56_96, %c0_97] : memref<256x128xf32, #tpu.memory_space<vmem>>, vector<8x128xf32>
      %220 = arith.subf %219, %105 : vector<8x128xf32>
      %c56_98 = arith.constant 56 : index
      %c0_99 = arith.constant 0 : index
      %221 = vector.load %arg12[%c56_98, %c0_99] : memref<256x128xf32, #tpu.memory_space<vmem>>, vector<8x128xf32>
      %222 = arith.subf %221, %109 : vector<8x128xf32>
      %223 = arith.mulf %218, %218 : vector<8x128xf32>
      %224 = arith.mulf %220, %220 : vector<8x128xf32>
      %225 = arith.addf %223, %224 : vector<8x128xf32>
      %226 = arith.mulf %222, %222 : vector<8x128xf32>
      %227 = arith.addf %225, %226 : vector<8x128xf32>
      %c56_100 = arith.constant 56 : index
      %c0_101 = arith.constant 0 : index
      %228 = vector.load %arg13[%c56_100, %c0_101] : memref<256x128xf32, #tpu.memory_space<vmem>>, vector<8x128xf32>
      %229 = arith.minimumf %228, %227 : vector<8x128xf32>
      %c56_102 = arith.constant 56 : index
      %c0_103 = arith.constant 0 : index
      %230 = vector.load %arg13[%c56_102, %c0_103] : memref<256x128xf32, #tpu.memory_space<vmem>>, vector<8x128xf32>
      tpu.vector_store %arg13[%c56_102, %c0_103], %229 {strides = array<i32>} : memref<256x128xf32, #tpu.memory_space<vmem>>, vector<8x128xf32>,
      %231 = arith.minimumf %216, %227 : vector<8x128xf32>
      %c64 = arith.constant 64 : index
      %c0_104 = arith.constant 0 : index
      %232 = vector.load %arg10[%c64, %c0_104] : memref<256x128xf32, #tpu.memory_space<vmem>>, vector<8x128xf32>
      %233 = arith.subf %232, %101 : vector<8x128xf32>
      %c64_105 = arith.constant 64 : index
      %c0_106 = arith.constant 0 : index
      %234 = vector.load %arg11[%c64_105, %c0_106] : memref<256x128xf32, #tpu.memory_space<vmem>>, vector<8x128xf32>
      %235 = arith.subf %234, %105 : vector<8x128xf32>
      %c64_107 = arith.constant 64 : index
      %c0_108 = arith.constant 0 : index
      %236 = vector.load %arg12[%c64_107, %c0_108] : memref<256x128xf32, #tpu.memory_space<vmem>>, vector<8x128xf32>
      %237 = arith.subf %236, %109 : vector<8x128xf32>
      %238 = arith.mulf %233, %233 : vector<8x128xf32>
      %239 = arith.mulf %235, %235 : vector<8x128xf32>
      %240 = arith.addf %238, %239 : vector<8x128xf32>
      %241 = arith.mulf %237, %237 : vector<8x128xf32>
      %242 = arith.addf %240, %241 : vector<8x128xf32>
      %c64_109 = arith.constant 64 : index
      %c0_110 = arith.constant 0 : index
      %243 = vector.load %arg13[%c64_109, %c0_110] : memref<256x128xf32, #tpu.memory_space<vmem>>, vector<8x128xf32>
      %244 = arith.minimumf %243, %242 : vector<8x128xf32>
      %c64_111 = arith.constant 64 : index
      %c0_112 = arith.constant 0 : index
      %245 = vector.load %arg13[%c64_111, %c0_112] : memref<256x128xf32, #tpu.memory_space<vmem>>, vector<8x128xf32>
      tpu.vector_store %arg13[%c64_111, %c0_112], %244 {strides = array<i32>} : memref<256x128xf32, #tpu.memory_space<vmem>>, vector<8x128xf32>,
      %246 = arith.minimumf %231, %242 : vector<8x128xf32>
      %c72 = arith.constant 72 : index
      %c0_113 = arith.constant 0 : index
      %247 = vector.load %arg10[%c72, %c0_113] : memref<256x128xf32, #tpu.memory_space<vmem>>, vector<8x128xf32>
      %248 = arith.subf %247, %101 : vector<8x128xf32>
      %c72_114 = arith.constant 72 : index
      %c0_115 = arith.constant 0 : index
      %249 = vector.load %arg11[%c72_114, %c0_115] : memref<256x128xf32, #tpu.memory_space<vmem>>, vector<8x128xf32>
      %250 = arith.subf %249, %105 : vector<8x128xf32>
      %c72_116 = arith.constant 72 : index
      %c0_117 = arith.constant 0 : index
      %251 = vector.load %arg12[%c72_116, %c0_117] : memref<256x128xf32, #tpu.memory_space<vmem>>, vector<8x128xf32>
      %252 = arith.subf %251, %109 : vector<8x128xf32>
      %253 = arith.mulf %248, %248 : vector<8x128xf32>
      %254 = arith.mulf %250, %250 : vector<8x128xf32>
      %255 = arith.addf %253, %254 : vector<8x128xf32>
      %256 = arith.mulf %252, %252 : vector<8x128xf32>
      %257 = arith.addf %255, %256 : vector<8x128xf32>
      %c72_118 = arith.constant 72 : index
      %c0_119 = arith.constant 0 : index
      %258 = vector.load %arg13[%c72_118, %c0_119] : memref<256x128xf32, #tpu.memory_space<vmem>>, vector<8x128xf32>
      %259 = arith.minimumf %258, %257 : vector<8x128xf32>
      %c72_120 = arith.constant 72 : index
      %c0_121 = arith.constant 0 : index
      %260 = vector.load %arg13[%c72_120, %c0_121] : memref<256x128xf32, #tpu.memory_space<vmem>>, vector<8x128xf32>
      tpu.vector_store %arg13[%c72_120, %c0_121], %259 {strides = array<i32>} : memref<256x128xf32, #tpu.memory_space<vmem>>, vector<8x128xf32>,
      %261 = arith.minimumf %246, %257 : vector<8x128xf32>
      %c80 = arith.constant 80 : index
      %c0_122 = arith.constant 0 : index
      %262 = vector.load %arg10[%c80, %c0_122] : memref<256x128xf32, #tpu.memory_space<vmem>>, vector<8x128xf32>
      %263 = arith.subf %262, %101 : vector<8x128xf32>
      %c80_123 = arith.constant 80 : index
      %c0_124 = arith.constant 0 : index
      %264 = vector.load %arg11[%c80_123, %c0_124] : memref<256x128xf32, #tpu.memory_space<vmem>>, vector<8x128xf32>
      %265 = arith.subf %264, %105 : vector<8x128xf32>
      %c80_125 = arith.constant 80 : index
      %c0_126 = arith.constant 0 : index
      %266 = vector.load %arg12[%c80_125, %c0_126] : memref<256x128xf32, #tpu.memory_space<vmem>>, vector<8x128xf32>
      %267 = arith.subf %266, %109 : vector<8x128xf32>
      %268 = arith.mulf %263, %263 : vector<8x128xf32>
      %269 = arith.mulf %265, %265 : vector<8x128xf32>
      %270 = arith.addf %268, %269 : vector<8x128xf32>
      %271 = arith.mulf %267, %267 : vector<8x128xf32>
      %272 = arith.addf %270, %271 : vector<8x128xf32>
      %c80_127 = arith.constant 80 : index
      %c0_128 = arith.constant 0 : index
      %273 = vector.load %arg13[%c80_127, %c0_128] : memref<256x128xf32, #tpu.memory_space<vmem>>, vector<8x128xf32>
      %274 = arith.minimumf %273, %272 : vector<8x128xf32>
      %c80_129 = arith.constant 80 : index
      %c0_130 = arith.constant 0 : index
      %275 = vector.load %arg13[%c80_129, %c0_130] : memref<256x128xf32, #tpu.memory_space<vmem>>, vector<8x128xf32>
      tpu.vector_store %arg13[%c80_129, %c0_130], %274 {strides = array<i32>} : memref<256x128xf32, #tpu.memory_space<vmem>>, vector<8x128xf32>,
      %276 = arith.minimumf %261, %272 : vector<8x128xf32>
      %c88 = arith.constant 88 : index
      %c0_131 = arith.constant 0 : index
      %277 = vector.load %arg10[%c88, %c0_131] : memref<256x128xf32, #tpu.memory_space<vmem>>, vector<8x128xf32>
      %278 = arith.subf %277, %101 : vector<8x128xf32>
      %c88_132 = arith.constant 88 : index
      %c0_133 = arith.constant 0 : index
      %279 = vector.load %arg11[%c88_132, %c0_133] : memref<256x128xf32, #tpu.memory_space<vmem>>, vector<8x128xf32>
      %280 = arith.subf %279, %105 : vector<8x128xf32>
      %c88_134 = arith.constant 88 : index
      %c0_135 = arith.constant 0 : index
      %281 = vector.load %arg12[%c88_134, %c0_135] : memref<256x128xf32, #tpu.memory_space<vmem>>, vector<8x128xf32>
      %282 = arith.subf %281, %109 : vector<8x128xf32>
      %283 = arith.mulf %278, %278 : vector<8x128xf32>
      %284 = arith.mulf %280, %280 : vector<8x128xf32>
      %285 = arith.addf %283, %284 : vector<8x128xf32>
      %286 = arith.mulf %282, %282 : vector<8x128xf32>
      %287 = arith.addf %285, %286 : vector<8x128xf32>
      %c88_136 = arith.constant 88 : index
      %c0_137 = arith.constant 0 : index
      %288 = vector.load %arg13[%c88_136, %c0_137] : memref<256x128xf32, #tpu.memory_space<vmem>>, vector<8x128xf32>
      %289 = arith.minimumf %288, %287 : vector<8x128xf32>
      %c88_138 = arith.constant 88 : index
      %c0_139 = arith.constant 0 : index
      %290 = vector.load %arg13[%c88_138, %c0_139] : memref<256x128xf32, #tpu.memory_space<vmem>>, vector<8x128xf32>
      tpu.vector_store %arg13[%c88_138, %c0_139], %289 {strides = array<i32>} : memref<256x128xf32, #tpu.memory_space<vmem>>, vector<8x128xf32>,
      %291 = arith.minimumf %276, %287 : vector<8x128xf32>
      %c96 = arith.constant 96 : index
      %c0_140 = arith.constant 0 : index
      %292 = vector.load %arg10[%c96, %c0_140] : memref<256x128xf32, #tpu.memory_space<vmem>>, vector<8x128xf32>
      %293 = arith.subf %292, %101 : vector<8x128xf32>
      %c96_141 = arith.constant 96 : index
      %c0_142 = arith.constant 0 : index
      %294 = vector.load %arg11[%c96_141, %c0_142] : memref<256x128xf32, #tpu.memory_space<vmem>>, vector<8x128xf32>
      %295 = arith.subf %294, %105 : vector<8x128xf32>
      %c96_143 = arith.constant 96 : index
      %c0_144 = arith.constant 0 : index
      %296 = vector.load %arg12[%c96_143, %c0_144] : memref<256x128xf32, #tpu.memory_space<vmem>>, vector<8x128xf32>
      %297 = arith.subf %296, %109 : vector<8x128xf32>
      %298 = arith.mulf %293, %293 : vector<8x128xf32>
      %299 = arith.mulf %295, %295 : vector<8x128xf32>
      %300 = arith.addf %298, %299 : vector<8x128xf32>
      %301 = arith.mulf %297, %297 : vector<8x128xf32>
      %302 = arith.addf %300, %301 : vector<8x128xf32>
      %c96_145 = arith.constant 96 : index
      %c0_146 = arith.constant 0 : index
      %303 = vector.load %arg13[%c96_145, %c0_146] : memref<256x128xf32, #tpu.memory_space<vmem>>, vector<8x128xf32>
      %304 = arith.minimumf %303, %302 : vector<8x128xf32>
      %c96_147 = arith.constant 96 : index
      %c0_148 = arith.constant 0 : index
      %305 = vector.load %arg13[%c96_147, %c0_148] : memref<256x128xf32, #tpu.memory_space<vmem>>, vector<8x128xf32>
      tpu.vector_store %arg13[%c96_147, %c0_148], %304 {strides = array<i32>} : memref<256x128xf32, #tpu.memory_space<vmem>>, vector<8x128xf32>,
      %306 = arith.minimumf %291, %302 : vector<8x128xf32>
      %c104 = arith.constant 104 : index
      %c0_149 = arith.constant 0 : index
      %307 = vector.load %arg10[%c104, %c0_149] : memref<256x128xf32, #tpu.memory_space<vmem>>, vector<8x128xf32>
      %308 = arith.subf %307, %101 : vector<8x128xf32>
      %c104_150 = arith.constant 104 : index
      %c0_151 = arith.constant 0 : index
      %309 = vector.load %arg11[%c104_150, %c0_151] : memref<256x128xf32, #tpu.memory_space<vmem>>, vector<8x128xf32>
      %310 = arith.subf %309, %105 : vector<8x128xf32>
      %c104_152 = arith.constant 104 : index
      %c0_153 = arith.constant 0 : index
      %311 = vector.load %arg12[%c104_152, %c0_153] : memref<256x128xf32, #tpu.memory_space<vmem>>, vector<8x128xf32>
      %312 = arith.subf %311, %109 : vector<8x128xf32>
      %313 = arith.mulf %308, %308 : vector<8x128xf32>
      %314 = arith.mulf %310, %310 : vector<8x128xf32>
      %315 = arith.addf %313, %314 : vector<8x128xf32>
      %316 = arith.mulf %312, %312 : vector<8x128xf32>
      %317 = arith.addf %315, %316 : vector<8x128xf32>
      %c104_154 = arith.constant 104 : index
      %c0_155 = arith.constant 0 : index
      %318 = vector.load %arg13[%c104_154, %c0_155] : memref<256x128xf32, #tpu.memory_space<vmem>>, vector<8x128xf32>
      %319 = arith.minimumf %318, %317 : vector<8x128xf32>
      %c104_156 = arith.constant 104 : index
      %c0_157 = arith.constant 0 : index
      %320 = vector.load %arg13[%c104_156, %c0_157] : memref<256x128xf32, #tpu.memory_space<vmem>>, vector<8x128xf32>
      tpu.vector_store %arg13[%c104_156, %c0_157], %319 {strides = array<i32>} : memref<256x128xf32, #tpu.memory_space<vmem>>, vector<8x128xf32>,
      %321 = arith.minimumf %306, %317 : vector<8x128xf32>
      %c112 = arith.constant 112 : index
      %c0_158 = arith.constant 0 : index
      %322 = vector.load %arg10[%c112, %c0_158] : memref<256x128xf32, #tpu.memory_space<vmem>>, vector<8x128xf32>
      %323 = arith.subf %322, %101 : vector<8x128xf32>
      %c112_159 = arith.constant 112 : index
      %c0_160 = arith.constant 0 : index
      %324 = vector.load %arg11[%c112_159, %c0_160] : memref<256x128xf32, #tpu.memory_space<vmem>>, vector<8x128xf32>
      %325 = arith.subf %324, %105 : vector<8x128xf32>
      %c112_161 = arith.constant 112 : index
      %c0_162 = arith.constant 0 : index
      %326 = vector.load %arg12[%c112_161, %c0_162] : memref<256x128xf32, #tpu.memory_space<vmem>>, vector<8x128xf32>
      %327 = arith.subf %326, %109 : vector<8x128xf32>
      %328 = arith.mulf %323, %323 : vector<8x128xf32>
      %329 = arith.mulf %325, %325 : vector<8x128xf32>
      %330 = arith.addf %328, %329 : vector<8x128xf32>
      %331 = arith.mulf %327, %327 : vector<8x128xf32>
      %332 = arith.addf %330, %331 : vector<8x128xf32>
      %c112_163 = arith.constant 112 : index
      %c0_164 = arith.constant 0 : index
      %333 = vector.load %arg13[%c112_163, %c0_164] : memref<256x128xf32, #tpu.memory_space<vmem>>, vector<8x128xf32>
      %334 = arith.minimumf %333, %332 : vector<8x128xf32>
      %c112_165 = arith.constant 112 : index
      %c0_166 = arith.constant 0 : index
      %335 = vector.load %arg13[%c112_165, %c0_166] : memref<256x128xf32, #tpu.memory_space<vmem>>, vector<8x128xf32>
      tpu.vector_store %arg13[%c112_165, %c0_166], %334 {strides = array<i32>} : memref<256x128xf32, #tpu.memory_space<vmem>>, vector<8x128xf32>,
      %336 = arith.minimumf %321, %332 : vector<8x128xf32>
      %c120 = arith.constant 120 : index
      %c0_167 = arith.constant 0 : index
      %337 = vector.load %arg10[%c120, %c0_167] : memref<256x128xf32, #tpu.memory_space<vmem>>, vector<8x128xf32>
      %338 = arith.subf %337, %101 : vector<8x128xf32>
      %c120_168 = arith.constant 120 : index
      %c0_169 = arith.constant 0 : index
      %339 = vector.load %arg11[%c120_168, %c0_169] : memref<256x128xf32, #tpu.memory_space<vmem>>, vector<8x128xf32>
      %340 = arith.subf %339, %105 : vector<8x128xf32>
      %c120_170 = arith.constant 120 : index
      %c0_171 = arith.constant 0 : index
      %341 = vector.load %arg12[%c120_170, %c0_171] : memref<256x128xf32, #tpu.memory_space<vmem>>, vector<8x128xf32>
      %342 = arith.subf %341, %109 : vector<8x128xf32>
      %343 = arith.mulf %338, %338 : vector<8x128xf32>
      %344 = arith.mulf %340, %340 : vector<8x128xf32>
      %345 = arith.addf %343, %344 : vector<8x128xf32>
      %346 = arith.mulf %342, %342 : vector<8x128xf32>
      %347 = arith.addf %345, %346 : vector<8x128xf32>
      %c120_172 = arith.constant 120 : index
      %c0_173 = arith.constant 0 : index
      %348 = vector.load %arg13[%c120_172, %c0_173] : memref<256x128xf32, #tpu.memory_space<vmem>>, vector<8x128xf32>
      %349 = arith.minimumf %348, %347 : vector<8x128xf32>
      %c120_174 = arith.constant 120 : index
      %c0_175 = arith.constant 0 : index
      %350 = vector.load %arg13[%c120_174, %c0_175] : memref<256x128xf32, #tpu.memory_space<vmem>>, vector<8x128xf32>
      tpu.vector_store %arg13[%c120_174, %c0_175], %349 {strides = array<i32>} : memref<256x128xf32, #tpu.memory_space<vmem>>, vector<8x128xf32>,
      %351 = arith.minimumf %336, %347 : vector<8x128xf32>
      %c128 = arith.constant 128 : index
      %c0_176 = arith.constant 0 : index
      %352 = vector.load %arg10[%c128, %c0_176] : memref<256x128xf32, #tpu.memory_space<vmem>>, vector<8x128xf32>
      %353 = arith.subf %352, %101 : vector<8x128xf32>
      %c128_177 = arith.constant 128 : index
      %c0_178 = arith.constant 0 : index
      %354 = vector.load %arg11[%c128_177, %c0_178] : memref<256x128xf32, #tpu.memory_space<vmem>>, vector<8x128xf32>
      %355 = arith.subf %354, %105 : vector<8x128xf32>
      %c128_179 = arith.constant 128 : index
      %c0_180 = arith.constant 0 : index
      %356 = vector.load %arg12[%c128_179, %c0_180] : memref<256x128xf32, #tpu.memory_space<vmem>>, vector<8x128xf32>
      %357 = arith.subf %356, %109 : vector<8x128xf32>
      %358 = arith.mulf %353, %353 : vector<8x128xf32>
      %359 = arith.mulf %355, %355 : vector<8x128xf32>
      %360 = arith.addf %358, %359 : vector<8x128xf32>
      %361 = arith.mulf %357, %357 : vector<8x128xf32>
      %362 = arith.addf %360, %361 : vector<8x128xf32>
      %c128_181 = arith.constant 128 : index
      %c0_182 = arith.constant 0 : index
      %363 = vector.load %arg13[%c128_181, %c0_182] : memref<256x128xf32, #tpu.memory_space<vmem>>, vector<8x128xf32>
      %364 = arith.minimumf %363, %362 : vector<8x128xf32>
      %c128_183 = arith.constant 128 : index
      %c0_184 = arith.constant 0 : index
      %365 = vector.load %arg13[%c128_183, %c0_184] : memref<256x128xf32, #tpu.memory_space<vmem>>, vector<8x128xf32>
      tpu.vector_store %arg13[%c128_183, %c0_184], %364 {strides = array<i32>} : memref<256x128xf32, #tpu.memory_space<vmem>>, vector<8x128xf32>,
      %366 = arith.minimumf %351, %362 : vector<8x128xf32>
      %c136 = arith.constant 136 : index
      %c0_185 = arith.constant 0 : index
      %367 = vector.load %arg10[%c136, %c0_185] : memref<256x128xf32, #tpu.memory_space<vmem>>, vector<8x128xf32>
      %368 = arith.subf %367, %101 : vector<8x128xf32>
      %c136_186 = arith.constant 136 : index
      %c0_187 = arith.constant 0 : index
      %369 = vector.load %arg11[%c136_186, %c0_187] : memref<256x128xf32, #tpu.memory_space<vmem>>, vector<8x128xf32>
      %370 = arith.subf %369, %105 : vector<8x128xf32>
      %c136_188 = arith.constant 136 : index
      %c0_189 = arith.constant 0 : index
      %371 = vector.load %arg12[%c136_188, %c0_189] : memref<256x128xf32, #tpu.memory_space<vmem>>, vector<8x128xf32>
      %372 = arith.subf %371, %109 : vector<8x128xf32>
      %373 = arith.mulf %368, %368 : vector<8x128xf32>
      %374 = arith.mulf %370, %370 : vector<8x128xf32>
      %375 = arith.addf %373, %374 : vector<8x128xf32>
      %376 = arith.mulf %372, %372 : vector<8x128xf32>
      %377 = arith.addf %375, %376 : vector<8x128xf32>
      %c136_190 = arith.constant 136 : index
      %c0_191 = arith.constant 0 : index
      %378 = vector.load %arg13[%c136_190, %c0_191] : memref<256x128xf32, #tpu.memory_space<vmem>>, vector<8x128xf32>
      %379 = arith.minimumf %378, %377 : vector<8x128xf32>
      %c136_192 = arith.constant 136 : index
      %c0_193 = arith.constant 0 : index
      %380 = vector.load %arg13[%c136_192, %c0_193] : memref<256x128xf32, #tpu.memory_space<vmem>>, vector<8x128xf32>
      tpu.vector_store %arg13[%c136_192, %c0_193], %379 {strides = array<i32>} : memref<256x128xf32, #tpu.memory_space<vmem>>, vector<8x128xf32>,
      %381 = arith.minimumf %366, %377 : vector<8x128xf32>
      %c144 = arith.constant 144 : index
      %c0_194 = arith.constant 0 : index
      %382 = vector.load %arg10[%c144, %c0_194] : memref<256x128xf32, #tpu.memory_space<vmem>>, vector<8x128xf32>
      %383 = arith.subf %382, %101 : vector<8x128xf32>
      %c144_195 = arith.constant 144 : index
      %c0_196 = arith.constant 0 : index
      %384 = vector.load %arg11[%c144_195, %c0_196] : memref<256x128xf32, #tpu.memory_space<vmem>>, vector<8x128xf32>
      %385 = arith.subf %384, %105 : vector<8x128xf32>
      %c144_197 = arith.constant 144 : index
      %c0_198 = arith.constant 0 : index
      %386 = vector.load %arg12[%c144_197, %c0_198] : memref<256x128xf32, #tpu.memory_space<vmem>>, vector<8x128xf32>
      %387 = arith.subf %386, %109 : vector<8x128xf32>
      %388 = arith.mulf %383, %383 : vector<8x128xf32>
      %389 = arith.mulf %385, %385 : vector<8x128xf32>
      %390 = arith.addf %388, %389 : vector<8x128xf32>
      %391 = arith.mulf %387, %387 : vector<8x128xf32>
      %392 = arith.addf %390, %391 : vector<8x128xf32>
      %c144_199 = arith.constant 144 : index
      %c0_200 = arith.constant 0 : index
      %393 = vector.load %arg13[%c144_199, %c0_200] : memref<256x128xf32, #tpu.memory_space<vmem>>, vector<8x128xf32>
      %394 = arith.minimumf %393, %392 : vector<8x128xf32>
      %c144_201 = arith.constant 144 : index
      %c0_202 = arith.constant 0 : index
      %395 = vector.load %arg13[%c144_201, %c0_202] : memref<256x128xf32, #tpu.memory_space<vmem>>, vector<8x128xf32>
      tpu.vector_store %arg13[%c144_201, %c0_202], %394 {strides = array<i32>} : memref<256x128xf32, #tpu.memory_space<vmem>>, vector<8x128xf32>,
      %396 = arith.minimumf %381, %392 : vector<8x128xf32>
      %c152 = arith.constant 152 : index
      %c0_203 = arith.constant 0 : index
      %397 = vector.load %arg10[%c152, %c0_203] : memref<256x128xf32, #tpu.memory_space<vmem>>, vector<8x128xf32>
      %398 = arith.subf %397, %101 : vector<8x128xf32>
      %c152_204 = arith.constant 152 : index
      %c0_205 = arith.constant 0 : index
      %399 = vector.load %arg11[%c152_204, %c0_205] : memref<256x128xf32, #tpu.memory_space<vmem>>, vector<8x128xf32>
      %400 = arith.subf %399, %105 : vector<8x128xf32>
      %c152_206 = arith.constant 152 : index
      %c0_207 = arith.constant 0 : index
      %401 = vector.load %arg12[%c152_206, %c0_207] : memref<256x128xf32, #tpu.memory_space<vmem>>, vector<8x128xf32>
      %402 = arith.subf %401, %109 : vector<8x128xf32>
      %403 = arith.mulf %398, %398 : vector<8x128xf32>
      %404 = arith.mulf %400, %400 : vector<8x128xf32>
      %405 = arith.addf %403, %404 : vector<8x128xf32>
      %406 = arith.mulf %402, %402 : vector<8x128xf32>
      %407 = arith.addf %405, %406 : vector<8x128xf32>
      %c152_208 = arith.constant 152 : index
      %c0_209 = arith.constant 0 : index
      %408 = vector.load %arg13[%c152_208, %c0_209] : memref<256x128xf32, #tpu.memory_space<vmem>>, vector<8x128xf32>
      %409 = arith.minimumf %408, %407 : vector<8x128xf32>
      %c152_210 = arith.constant 152 : index
      %c0_211 = arith.constant 0 : index
      %410 = vector.load %arg13[%c152_210, %c0_211] : memref<256x128xf32, #tpu.memory_space<vmem>>, vector<8x128xf32>
      tpu.vector_store %arg13[%c152_210, %c0_211], %409 {strides = array<i32>} : memref<256x128xf32, #tpu.memory_space<vmem>>, vector<8x128xf32>,
      %411 = arith.minimumf %396, %407 : vector<8x128xf32>
      %c160 = arith.constant 160 : index
      %c0_212 = arith.constant 0 : index
      %412 = vector.load %arg10[%c160, %c0_212] : memref<256x128xf32, #tpu.memory_space<vmem>>, vector<8x128xf32>
      %413 = arith.subf %412, %101 : vector<8x128xf32>
      %c160_213 = arith.constant 160 : index
      %c0_214 = arith.constant 0 : index
      %414 = vector.load %arg11[%c160_213, %c0_214] : memref<256x128xf32, #tpu.memory_space<vmem>>, vector<8x128xf32>
      %415 = arith.subf %414, %105 : vector<8x128xf32>
      %c160_215 = arith.constant 160 : index
      %c0_216 = arith.constant 0 : index
      %416 = vector.load %arg12[%c160_215, %c0_216] : memref<256x128xf32, #tpu.memory_space<vmem>>, vector<8x128xf32>
      %417 = arith.subf %416, %109 : vector<8x128xf32>
      %418 = arith.mulf %413, %413 : vector<8x128xf32>
      %419 = arith.mulf %415, %415 : vector<8x128xf32>
      %420 = arith.addf %418, %419 : vector<8x128xf32>
      %421 = arith.mulf %417, %417 : vector<8x128xf32>
      %422 = arith.addf %420, %421 : vector<8x128xf32>
      %c160_217 = arith.constant 160 : index
      %c0_218 = arith.constant 0 : index
      %423 = vector.load %arg13[%c160_217, %c0_218] : memref<256x128xf32, #tpu.memory_space<vmem>>, vector<8x128xf32>
      %424 = arith.minimumf %423, %422 : vector<8x128xf32>
      %c160_219 = arith.constant 160 : index
      %c0_220 = arith.constant 0 : index
      %425 = vector.load %arg13[%c160_219, %c0_220] : memref<256x128xf32, #tpu.memory_space<vmem>>, vector<8x128xf32>
      tpu.vector_store %arg13[%c160_219, %c0_220], %424 {strides = array<i32>} : memref<256x128xf32, #tpu.memory_space<vmem>>, vector<8x128xf32>,
      %426 = arith.minimumf %411, %422 : vector<8x128xf32>
      %c168 = arith.constant 168 : index
      %c0_221 = arith.constant 0 : index
      %427 = vector.load %arg10[%c168, %c0_221] : memref<256x128xf32, #tpu.memory_space<vmem>>, vector<8x128xf32>
      %428 = arith.subf %427, %101 : vector<8x128xf32>
      %c168_222 = arith.constant 168 : index
      %c0_223 = arith.constant 0 : index
      %429 = vector.load %arg11[%c168_222, %c0_223] : memref<256x128xf32, #tpu.memory_space<vmem>>, vector<8x128xf32>
      %430 = arith.subf %429, %105 : vector<8x128xf32>
      %c168_224 = arith.constant 168 : index
      %c0_225 = arith.constant 0 : index
      %431 = vector.load %arg12[%c168_224, %c0_225] : memref<256x128xf32, #tpu.memory_space<vmem>>, vector<8x128xf32>
      %432 = arith.subf %431, %109 : vector<8x128xf32>
      %433 = arith.mulf %428, %428 : vector<8x128xf32>
      %434 = arith.mulf %430, %430 : vector<8x128xf32>
      %435 = arith.addf %433, %434 : vector<8x128xf32>
      %436 = arith.mulf %432, %432 : vector<8x128xf32>
      %437 = arith.addf %435, %436 : vector<8x128xf32>
      %c168_226 = arith.constant 168 : index
      %c0_227 = arith.constant 0 : index
      %438 = vector.load %arg13[%c168_226, %c0_227] : memref<256x128xf32, #tpu.memory_space<vmem>>, vector<8x128xf32>
      %439 = arith.minimumf %438, %437 : vector<8x128xf32>
      %c168_228 = arith.constant 168 : index
      %c0_229 = arith.constant 0 : index
      %440 = vector.load %arg13[%c168_228, %c0_229] : memref<256x128xf32, #tpu.memory_space<vmem>>, vector<8x128xf32>
      tpu.vector_store %arg13[%c168_228, %c0_229], %439 {strides = array<i32>} : memref<256x128xf32, #tpu.memory_space<vmem>>, vector<8x128xf32>,
      %441 = arith.minimumf %426, %437 : vector<8x128xf32>
      %c176 = arith.constant 176 : index
      %c0_230 = arith.constant 0 : index
      %442 = vector.load %arg10[%c176, %c0_230] : memref<256x128xf32, #tpu.memory_space<vmem>>, vector<8x128xf32>
      %443 = arith.subf %442, %101 : vector<8x128xf32>
      %c176_231 = arith.constant 176 : index
      %c0_232 = arith.constant 0 : index
      %444 = vector.load %arg11[%c176_231, %c0_232] : memref<256x128xf32, #tpu.memory_space<vmem>>, vector<8x128xf32>
      %445 = arith.subf %444, %105 : vector<8x128xf32>
      %c176_233 = arith.constant 176 : index
      %c0_234 = arith.constant 0 : index
      %446 = vector.load %arg12[%c176_233, %c0_234] : memref<256x128xf32, #tpu.memory_space<vmem>>, vector<8x128xf32>
      %447 = arith.subf %446, %109 : vector<8x128xf32>
      %448 = arith.mulf %443, %443 : vector<8x128xf32>
      %449 = arith.mulf %445, %445 : vector<8x128xf32>
      %450 = arith.addf %448, %449 : vector<8x128xf32>
      %451 = arith.mulf %447, %447 : vector<8x128xf32>
      %452 = arith.addf %450, %451 : vector<8x128xf32>
      %c176_235 = arith.constant 176 : index
      %c0_236 = arith.constant 0 : index
      %453 = vector.load %arg13[%c176_235, %c0_236] : memref<256x128xf32, #tpu.memory_space<vmem>>, vector<8x128xf32>
      %454 = arith.minimumf %453, %452 : vector<8x128xf32>
      %c176_237 = arith.constant 176 : index
      %c0_238 = arith.constant 0 : index
      %455 = vector.load %arg13[%c176_237, %c0_238] : memref<256x128xf32, #tpu.memory_space<vmem>>, vector<8x128xf32>
      tpu.vector_store %arg13[%c176_237, %c0_238], %454 {strides = array<i32>} : memref<256x128xf32, #tpu.memory_space<vmem>>, vector<8x128xf32>,
      %456 = arith.minimumf %441, %452 : vector<8x128xf32>
      %c184 = arith.constant 184 : index
      %c0_239 = arith.constant 0 : index
      %457 = vector.load %arg10[%c184, %c0_239] : memref<256x128xf32, #tpu.memory_space<vmem>>, vector<8x128xf32>
      %458 = arith.subf %457, %101 : vector<8x128xf32>
      %c184_240 = arith.constant 184 : index
      %c0_241 = arith.constant 0 : index
      %459 = vector.load %arg11[%c184_240, %c0_241] : memref<256x128xf32, #tpu.memory_space<vmem>>, vector<8x128xf32>
      %460 = arith.subf %459, %105 : vector<8x128xf32>
      %c184_242 = arith.constant 184 : index
      %c0_243 = arith.constant 0 : index
      %461 = vector.load %arg12[%c184_242, %c0_243] : memref<256x128xf32, #tpu.memory_space<vmem>>, vector<8x128xf32>
      %462 = arith.subf %461, %109 : vector<8x128xf32>
      %463 = arith.mulf %458, %458 : vector<8x128xf32>
      %464 = arith.mulf %460, %460 : vector<8x128xf32>
      %465 = arith.addf %463, %464 : vector<8x128xf32>
      %466 = arith.mulf %462, %462 : vector<8x128xf32>
      %467 = arith.addf %465, %466 : vector<8x128xf32>
      %c184_244 = arith.constant 184 : index
      %c0_245 = arith.constant 0 : index
      %468 = vector.load %arg13[%c184_244, %c0_245] : memref<256x128xf32, #tpu.memory_space<vmem>>, vector<8x128xf32>
      %469 = arith.minimumf %468, %467 : vector<8x128xf32>
      %c184_246 = arith.constant 184 : index
      %c0_247 = arith.constant 0 : index
      %470 = vector.load %arg13[%c184_246, %c0_247] : memref<256x128xf32, #tpu.memory_space<vmem>>, vector<8x128xf32>
      tpu.vector_store %arg13[%c184_246, %c0_247], %469 {strides = array<i32>} : memref<256x128xf32, #tpu.memory_space<vmem>>, vector<8x128xf32>,
      %471 = arith.minimumf %456, %467 : vector<8x128xf32>
      %c192 = arith.constant 192 : index
      %c0_248 = arith.constant 0 : index
      %472 = vector.load %arg10[%c192, %c0_248] : memref<256x128xf32, #tpu.memory_space<vmem>>, vector<8x128xf32>
      %473 = arith.subf %472, %101 : vector<8x128xf32>
      %c192_249 = arith.constant 192 : index
      %c0_250 = arith.constant 0 : index
      %474 = vector.load %arg11[%c192_249, %c0_250] : memref<256x128xf32, #tpu.memory_space<vmem>>, vector<8x128xf32>
      %475 = arith.subf %474, %105 : vector<8x128xf32>
      %c192_251 = arith.constant 192 : index
      %c0_252 = arith.constant 0 : index
      %476 = vector.load %arg12[%c192_251, %c0_252] : memref<256x128xf32, #tpu.memory_space<vmem>>, vector<8x128xf32>
      %477 = arith.subf %476, %109 : vector<8x128xf32>
      %478 = arith.mulf %473, %473 : vector<8x128xf32>
      %479 = arith.mulf %475, %475 : vector<8x128xf32>
      %480 = arith.addf %478, %479 : vector<8x128xf32>
      %481 = arith.mulf %477, %477 : vector<8x128xf32>
      %482 = arith.addf %480, %481 : vector<8x128xf32>
      %c192_253 = arith.constant 192 : index
      %c0_254 = arith.constant 0 : index
      %483 = vector.load %arg13[%c192_253, %c0_254] : memref<256x128xf32, #tpu.memory_space<vmem>>, vector<8x128xf32>
      %484 = arith.minimumf %483, %482 : vector<8x128xf32>
      %c192_255 = arith.constant 192 : index
      %c0_256 = arith.constant 0 : index
      %485 = vector.load %arg13[%c192_255, %c0_256] : memref<256x128xf32, #tpu.memory_space<vmem>>, vector<8x128xf32>
      tpu.vector_store %arg13[%c192_255, %c0_256], %484 {strides = array<i32>} : memref<256x128xf32, #tpu.memory_space<vmem>>, vector<8x128xf32>,
      %486 = arith.minimumf %471, %482 : vector<8x128xf32>
      %c200 = arith.constant 200 : index
      %c0_257 = arith.constant 0 : index
      %487 = vector.load %arg10[%c200, %c0_257] : memref<256x128xf32, #tpu.memory_space<vmem>>, vector<8x128xf32>
      %488 = arith.subf %487, %101 : vector<8x128xf32>
      %c200_258 = arith.constant 200 : index
      %c0_259 = arith.constant 0 : index
      %489 = vector.load %arg11[%c200_258, %c0_259] : memref<256x128xf32, #tpu.memory_space<vmem>>, vector<8x128xf32>
      %490 = arith.subf %489, %105 : vector<8x128xf32>
      %c200_260 = arith.constant 200 : index
      %c0_261 = arith.constant 0 : index
      %491 = vector.load %arg12[%c200_260, %c0_261] : memref<256x128xf32, #tpu.memory_space<vmem>>, vector<8x128xf32>
      %492 = arith.subf %491, %109 : vector<8x128xf32>
      %493 = arith.mulf %488, %488 : vector<8x128xf32>
      %494 = arith.mulf %490, %490 : vector<8x128xf32>
      %495 = arith.addf %493, %494 : vector<8x128xf32>
      %496 = arith.mulf %492, %492 : vector<8x128xf32>
      %497 = arith.addf %495, %496 : vector<8x128xf32>
      %c200_262 = arith.constant 200 : index
      %c0_263 = arith.constant 0 : index
      %498 = vector.load %arg13[%c200_262, %c0_263] : memref<256x128xf32, #tpu.memory_space<vmem>>, vector<8x128xf32>
      %499 = arith.minimumf %498, %497 : vector<8x128xf32>
      %c200_264 = arith.constant 200 : index
      %c0_265 = arith.constant 0 : index
      %500 = vector.load %arg13[%c200_264, %c0_265] : memref<256x128xf32, #tpu.memory_space<vmem>>, vector<8x128xf32>
      tpu.vector_store %arg13[%c200_264, %c0_265], %499 {strides = array<i32>} : memref<256x128xf32, #tpu.memory_space<vmem>>, vector<8x128xf32>,
      %501 = arith.minimumf %486, %497 : vector<8x128xf32>
      %c208 = arith.constant 208 : index
      %c0_266 = arith.constant 0 : index
      %502 = vector.load %arg10[%c208, %c0_266] : memref<256x128xf32, #tpu.memory_space<vmem>>, vector<8x128xf32>
      %503 = arith.subf %502, %101 : vector<8x128xf32>
      %c208_267 = arith.constant 208 : index
      %c0_268 = arith.constant 0 : index
      %504 = vector.load %arg11[%c208_267, %c0_268] : memref<256x128xf32, #tpu.memory_space<vmem>>, vector<8x128xf32>
      %505 = arith.subf %504, %105 : vector<8x128xf32>
      %c208_269 = arith.constant 208 : index
      %c0_270 = arith.constant 0 : index
      %506 = vector.load %arg12[%c208_269, %c0_270] : memref<256x128xf32, #tpu.memory_space<vmem>>, vector<8x128xf32>
      %507 = arith.subf %506, %109 : vector<8x128xf32>
      %508 = arith.mulf %503, %503 : vector<8x128xf32>
      %509 = arith.mulf %505, %505 : vector<8x128xf32>
      %510 = arith.addf %508, %509 : vector<8x128xf32>
      %511 = arith.mulf %507, %507 : vector<8x128xf32>
      %512 = arith.addf %510, %511 : vector<8x128xf32>
      %c208_271 = arith.constant 208 : index
      %c0_272 = arith.constant 0 : index
      %513 = vector.load %arg13[%c208_271, %c0_272] : memref<256x128xf32, #tpu.memory_space<vmem>>, vector<8x128xf32>
      %514 = arith.minimumf %513, %512 : vector<8x128xf32>
      %c208_273 = arith.constant 208 : index
      %c0_274 = arith.constant 0 : index
      %515 = vector.load %arg13[%c208_273, %c0_274] : memref<256x128xf32, #tpu.memory_space<vmem>>, vector<8x128xf32>
      tpu.vector_store %arg13[%c208_273, %c0_274], %514 {strides = array<i32>} : memref<256x128xf32, #tpu.memory_space<vmem>>, vector<8x128xf32>,
      %516 = arith.minimumf %501, %512 : vector<8x128xf32>
      %c216 = arith.constant 216 : index
      %c0_275 = arith.constant 0 : index
      %517 = vector.load %arg10[%c216, %c0_275] : memref<256x128xf32, #tpu.memory_space<vmem>>, vector<8x128xf32>
      %518 = arith.subf %517, %101 : vector<8x128xf32>
      %c216_276 = arith.constant 216 : index
      %c0_277 = arith.constant 0 : index
      %519 = vector.load %arg11[%c216_276, %c0_277] : memref<256x128xf32, #tpu.memory_space<vmem>>, vector<8x128xf32>
      %520 = arith.subf %519, %105 : vector<8x128xf32>
      %c216_278 = arith.constant 216 : index
      %c0_279 = arith.constant 0 : index
      %521 = vector.load %arg12[%c216_278, %c0_279] : memref<256x128xf32, #tpu.memory_space<vmem>>, vector<8x128xf32>
      %522 = arith.subf %521, %109 : vector<8x128xf32>
      %523 = arith.mulf %518, %518 : vector<8x128xf32>
      %524 = arith.mulf %520, %520 : vector<8x128xf32>
      %525 = arith.addf %523, %524 : vector<8x128xf32>
      %526 = arith.mulf %522, %522 : vector<8x128xf32>
      %527 = arith.addf %525, %526 : vector<8x128xf32>
      %c216_280 = arith.constant 216 : index
      %c0_281 = arith.constant 0 : index
      %528 = vector.load %arg13[%c216_280, %c0_281] : memref<256x128xf32, #tpu.memory_space<vmem>>, vector<8x128xf32>
      %529 = arith.minimumf %528, %527 : vector<8x128xf32>
      %c216_282 = arith.constant 216 : index
      %c0_283 = arith.constant 0 : index
      %530 = vector.load %arg13[%c216_282, %c0_283] : memref<256x128xf32, #tpu.memory_space<vmem>>, vector<8x128xf32>
      tpu.vector_store %arg13[%c216_282, %c0_283], %529 {strides = array<i32>} : memref<256x128xf32, #tpu.memory_space<vmem>>, vector<8x128xf32>,
      %531 = arith.minimumf %516, %527 : vector<8x128xf32>
      %c224 = arith.constant 224 : index
      %c0_284 = arith.constant 0 : index
      %532 = vector.load %arg10[%c224, %c0_284] : memref<256x128xf32, #tpu.memory_space<vmem>>, vector<8x128xf32>
      %533 = arith.subf %532, %101 : vector<8x128xf32>
      %c224_285 = arith.constant 224 : index
      %c0_286 = arith.constant 0 : index
      %534 = vector.load %arg11[%c224_285, %c0_286] : memref<256x128xf32, #tpu.memory_space<vmem>>, vector<8x128xf32>
      %535 = arith.subf %534, %105 : vector<8x128xf32>
      %c224_287 = arith.constant 224 : index
      %c0_288 = arith.constant 0 : index
      %536 = vector.load %arg12[%c224_287, %c0_288] : memref<256x128xf32, #tpu.memory_space<vmem>>, vector<8x128xf32>
      %537 = arith.subf %536, %109 : vector<8x128xf32>
      %538 = arith.mulf %533, %533 : vector<8x128xf32>
      %539 = arith.mulf %535, %535 : vector<8x128xf32>
      %540 = arith.addf %538, %539 : vector<8x128xf32>
      %541 = arith.mulf %537, %537 : vector<8x128xf32>
      %542 = arith.addf %540, %541 : vector<8x128xf32>
      %c224_289 = arith.constant 224 : index
      %c0_290 = arith.constant 0 : index
      %543 = vector.load %arg13[%c224_289, %c0_290] : memref<256x128xf32, #tpu.memory_space<vmem>>, vector<8x128xf32>
      %544 = arith.minimumf %543, %542 : vector<8x128xf32>
      %c224_291 = arith.constant 224 : index
      %c0_292 = arith.constant 0 : index
      %545 = vector.load %arg13[%c224_291, %c0_292] : memref<256x128xf32, #tpu.memory_space<vmem>>, vector<8x128xf32>
      tpu.vector_store %arg13[%c224_291, %c0_292], %544 {strides = array<i32>} : memref<256x128xf32, #tpu.memory_space<vmem>>, vector<8x128xf32>,
      %546 = arith.minimumf %531, %542 : vector<8x128xf32>
      %c232 = arith.constant 232 : index
      %c0_293 = arith.constant 0 : index
      %547 = vector.load %arg10[%c232, %c0_293] : memref<256x128xf32, #tpu.memory_space<vmem>>, vector<8x128xf32>
      %548 = arith.subf %547, %101 : vector<8x128xf32>
      %c232_294 = arith.constant 232 : index
      %c0_295 = arith.constant 0 : index
      %549 = vector.load %arg11[%c232_294, %c0_295] : memref<256x128xf32, #tpu.memory_space<vmem>>, vector<8x128xf32>
      %550 = arith.subf %549, %105 : vector<8x128xf32>
      %c232_296 = arith.constant 232 : index
      %c0_297 = arith.constant 0 : index
      %551 = vector.load %arg12[%c232_296, %c0_297] : memref<256x128xf32, #tpu.memory_space<vmem>>, vector<8x128xf32>
      %552 = arith.subf %551, %109 : vector<8x128xf32>
      %553 = arith.mulf %548, %548 : vector<8x128xf32>
      %554 = arith.mulf %550, %550 : vector<8x128xf32>
      %555 = arith.addf %553, %554 : vector<8x128xf32>
      %556 = arith.mulf %552, %552 : vector<8x128xf32>
      %557 = arith.addf %555, %556 : vector<8x128xf32>
      %c232_298 = arith.constant 232 : index
      %c0_299 = arith.constant 0 : index
      %558 = vector.load %arg13[%c232_298, %c0_299] : memref<256x128xf32, #tpu.memory_space<vmem>>, vector<8x128xf32>
      %559 = arith.minimumf %558, %557 : vector<8x128xf32>
      %c232_300 = arith.constant 232 : index
      %c0_301 = arith.constant 0 : index
      %560 = vector.load %arg13[%c232_300, %c0_301] : memref<256x128xf32, #tpu.memory_space<vmem>>, vector<8x128xf32>
      tpu.vector_store %arg13[%c232_300, %c0_301], %559 {strides = array<i32>} : memref<256x128xf32, #tpu.memory_space<vmem>>, vector<8x128xf32>,
      %561 = arith.minimumf %546, %557 : vector<8x128xf32>
      %c240 = arith.constant 240 : index
      %c0_302 = arith.constant 0 : index
      %562 = vector.load %arg10[%c240, %c0_302] : memref<256x128xf32, #tpu.memory_space<vmem>>, vector<8x128xf32>
      %563 = arith.subf %562, %101 : vector<8x128xf32>
      %c240_303 = arith.constant 240 : index
      %c0_304 = arith.constant 0 : index
      %564 = vector.load %arg11[%c240_303, %c0_304] : memref<256x128xf32, #tpu.memory_space<vmem>>, vector<8x128xf32>
      %565 = arith.subf %564, %105 : vector<8x128xf32>
      %c240_305 = arith.constant 240 : index
      %c0_306 = arith.constant 0 : index
      %566 = vector.load %arg12[%c240_305, %c0_306] : memref<256x128xf32, #tpu.memory_space<vmem>>, vector<8x128xf32>
      %567 = arith.subf %566, %109 : vector<8x128xf32>
      %568 = arith.mulf %563, %563 : vector<8x128xf32>
      %569 = arith.mulf %565, %565 : vector<8x128xf32>
      %570 = arith.addf %568, %569 : vector<8x128xf32>
      %571 = arith.mulf %567, %567 : vector<8x128xf32>
      %572 = arith.addf %570, %571 : vector<8x128xf32>
      %c240_307 = arith.constant 240 : index
      %c0_308 = arith.constant 0 : index
      %573 = vector.load %arg13[%c240_307, %c0_308] : memref<256x128xf32, #tpu.memory_space<vmem>>, vector<8x128xf32>
      %574 = arith.minimumf %573, %572 : vector<8x128xf32>
      %c240_309 = arith.constant 240 : index
      %c0_310 = arith.constant 0 : index
      %575 = vector.load %arg13[%c240_309, %c0_310] : memref<256x128xf32, #tpu.memory_space<vmem>>, vector<8x128xf32>
      tpu.vector_store %arg13[%c240_309, %c0_310], %574 {strides = array<i32>} : memref<256x128xf32, #tpu.memory_space<vmem>>, vector<8x128xf32>,
      %576 = arith.minimumf %561, %572 : vector<8x128xf32>
      %c248 = arith.constant 248 : index
      %c0_311 = arith.constant 0 : index
      %577 = vector.load %arg10[%c248, %c0_311] : memref<256x128xf32, #tpu.memory_space<vmem>>, vector<8x128xf32>
      %578 = arith.subf %577, %101 : vector<8x128xf32>
      %c248_312 = arith.constant 248 : index
      %c0_313 = arith.constant 0 : index
      %579 = vector.load %arg11[%c248_312, %c0_313] : memref<256x128xf32, #tpu.memory_space<vmem>>, vector<8x128xf32>
      %580 = arith.subf %579, %105 : vector<8x128xf32>
      %c248_314 = arith.constant 248 : index
      %c0_315 = arith.constant 0 : index
      %581 = vector.load %arg12[%c248_314, %c0_315] : memref<256x128xf32, #tpu.memory_space<vmem>>, vector<8x128xf32>
      %582 = arith.subf %581, %109 : vector<8x128xf32>
      %583 = arith.mulf %578, %578 : vector<8x128xf32>
      %584 = arith.mulf %580, %580 : vector<8x128xf32>
      %585 = arith.addf %583, %584 : vector<8x128xf32>
      %586 = arith.mulf %582, %582 : vector<8x128xf32>
      %587 = arith.addf %585, %586 : vector<8x128xf32>
      %c248_316 = arith.constant 248 : index
      %c0_317 = arith.constant 0 : index
      %588 = vector.load %arg13[%c248_316, %c0_317] : memref<256x128xf32, #tpu.memory_space<vmem>>, vector<8x128xf32>
      %589 = arith.minimumf %588, %587 : vector<8x128xf32>
      %c248_318 = arith.constant 248 : index
      %c0_319 = arith.constant 0 : index
      %590 = vector.load %arg13[%c248_318, %c0_319] : memref<256x128xf32, #tpu.memory_space<vmem>>, vector<8x128xf32>
      tpu.vector_store %arg13[%c248_318, %c0_319], %589 {strides = array<i32>} : memref<256x128xf32, #tpu.memory_space<vmem>>, vector<8x128xf32>,
      %591 = arith.minimumf %576, %587 : vector<8x128xf32>
      %c0_320 = arith.constant 0 : index
      %592 = arith.index_cast %97 : i32 to index
      %593 = vector.load %arg14[%c0_320, %592] : memref<8x1024xf32, #tpu.memory_space<vmem>>, vector<8x128xf32>
      tpu.vector_store %arg14[%c0_320, %592], %591 {strides = array<i32>} : memref<8x1024xf32, #tpu.memory_space<vmem>>, vector<8x128xf32>,
    }
    %c8_i32_15 = arith.constant 8 : i32
    %73 = tpu.iota {dimensions = array<i32: 0>} : vector<256x1xi32>
    %c256_i32 = arith.constant 256 : i32
    %74 = arith.muli %arg1, %c256_i32 : i32
    %75 = vector.broadcast %74 : i32 to vector<256x1xi32>
    %76 = arith.addi %73, %75 : vector<256x1xi32>
    %c600_i32 = arith.constant 600 : i32
    %77 = vector.broadcast %c600_i32 : i32 to vector<256x1xi32>
    %78 = arith.cmpi slt, %76, %77 : vector<256x1xi32>
    %c0_16 = arith.constant 0 : index
    %c0_17 = arith.constant 0 : index
    %79 = vector.load %arg13[%c0_16, %c0_17] : memref<256x128xf32, #tpu.memory_space<vmem>>, vector<256x128xf32>
    %cst_18 = arith.constant dense<0x7F800000> : vector<256xf32>
    %80 = vector.multi_reduction <minimumf>, %79, %cst_18 [1] : vector<256x128xf32> to vector<256xf32>
    %81 = vector.shape_cast %80 : vector<256xf32> to vector<256x1xf32>
    %c0_19 = arith.constant 0 : index
    %82 = memref.load %arg15[%c0_19] : memref<1xf32, #tpu.memory_space<smem>>
    %cst_20 = arith.constant 0.000000e+00 : f32
    %83 = vector.broadcast %cst_20 : f32 to vector<256x1xf32>
    %84 = arith.select %78, %81, %83 : vector<256x1xi1>, vector<256x1xf32>
    %85 = vector.shape_cast %84 : vector<256x1xf32> to vector<1x256x1xf32>
    %cst_21 = arith.constant dense<0.000000e+00> : vector<1xf32>
    %86 = vector.multi_reduction <add>, %85, %cst_21 [1, 2] : vector<1x256x1xf32> to vector<1xf32>
    %87 = vector.shape_cast %86 : vector<1xf32> to vector<1x1x1xf32>
    %88 = vector.extract %87[0, 0, 0] : f32 from vector<1x1x1xf32>
    %89 = arith.addf %82, %88 : f32
    %c0_22 = arith.constant 0 : index
    %90 = memref.load %arg15[%c0_22] : memref<1xf32, #tpu.memory_space<smem>>
    memref.store %89, %arg15[%c0_22] : memref<1xf32, #tpu.memory_space<smem>>
    %c2_i32 = arith.constant 2 : i32
    %91 = arith.cmpi eq, %arg1, %c2_i32 : i32
    %92 = arith.extui %91 : i1 to i32
    %c0_i32_23 = arith.constant 0 : i32
    %93 = arith.cmpi ne, %92, %c0_i32_23 : i32
    scf.if %93 {
      %94 = tpu.iota {dimensions = array<i32: 1>} : vector<1x1024xi32>
      %c900_i32 = arith.constant 900 : i32
      %95 = vector.broadcast %c900_i32 : i32 to vector<1x1024xi32>
      %96 = arith.cmpi slt, %94, %95 : vector<1x1024xi32>
      %c0_24 = arith.constant 0 : index
      %c0_25 = arith.constant 0 : index
      %97 = vector.load %arg14[%c0_24, %c0_25] : memref<8x1024xf32, #tpu.memory_space<vmem>>, vector<8x1024xf32>
      %cst_26 = arith.constant dense<0x7F800000> : vector<1024xf32>
      %98 = vector.multi_reduction <minimumf>, %97, %cst_26 [0] : vector<8x1024xf32> to vector<1024xf32>
      %99 = vector.shape_cast %98 : vector<1024xf32> to vector<1x1024xf32>
      %cst_27 = arith.constant 0.000000e+00 : f32
      %100 = vector.broadcast %cst_27 : f32 to vector<1x1024xf32>
      %101 = arith.select %96, %99, %100 : vector<1x1024xi1>, vector<1x1024xf32>
      %102 = vector.shape_cast %101 : vector<1x1024xf32> to vector<1x1x1024xf32>
      %cst_28 = arith.constant dense<0.000000e+00> : vector<1xf32>
      %103 = vector.multi_reduction <add>, %102, %cst_28 [1, 2] : vector<1x1x1024xf32> to vector<1xf32>
      %104 = vector.shape_cast %103 : vector<1xf32> to vector<1x1x1xf32>
      %105 = vector.extract %104[0, 0, 0] : f32 from vector<1x1x1xf32>
      %c0_29 = arith.constant 0 : index
      %106 = memref.load %arg15[%c0_29] : memref<1xf32, #tpu.memory_space<smem>>
      %cst_30 = arith.constant 0.00166666671 : f32
      %107 = arith.mulf %106, %cst_30 : f32
      %cst_31 = arith.constant 0.00111111114 : f32
      %108 = arith.mulf %105, %cst_31 : f32
      %109 = arith.addf %107, %108 : f32
      %110 = vector.broadcast %109 : f32 to vector<8x128xf32>
      %c0_32 = arith.constant 0 : index
      %c0_33 = arith.constant 0 : index
      %c0_34 = arith.constant 0 : index
      %111 = vector.load %arg8[%c0_32, %c0_33, %c0_34] : memref<1x8x128xf32, #tpu.memory_space<vmem>>, vector<1x8x128xf32>
      %112 = vector.shape_cast %111 : vector<1x8x128xf32> to vector<8x128xf32>
      %113 = vector.shape_cast %110 : vector<8x128xf32> to vector<1x8x128xf32>
      tpu.vector_store %arg8[%c0_32, %c0_33, %c0_34], %113 {strides = array<i32>} : memref<1x8x128xf32, #tpu.memory_space<vmem>>, vector<1x8x128xf32>,
    } else {
    }
    return
  }
  func.func @transform_0(%arg0: i32, %arg1: i32) -> (i32, i32) {
    %c0_i32 = arith.constant 0 : i32
    %c0_i32_0 = arith.constant 0 : i32
    %c0_i32_1 = arith.constant 0 : i32
    return %c0_i32, %c0_i32_0 : i32, i32
  }
  func.func @transform_1(%arg0: i32, %arg1: i32) -> (i32, i32) {
    %c0_i32 = arith.constant 0 : i32
    %c0_i32_0 = arith.constant 0 : i32
    %c0_i32_1 = arith.constant 0 : i32
    return %c0_i32, %c0_i32_0 : i32, i32
  }
  func.func @transform_2(%arg0: i32, %arg1: i32) -> (i32, i32) {
    %c0_i32 = arith.constant 0 : i32
    %c0_i32_0 = arith.constant 0 : i32
    %c0_i32_1 = arith.constant 0 : i32
    return %c0_i32, %c0_i32_0 : i32, i32
  }
  func.func @transform_3(%arg0: i32, %arg1: i32) -> (i32, i32) {
    %c0_i32 = arith.constant 0 : i32
    %c0_i32_0 = arith.constant 0 : i32
    %c0_i32_1 = arith.constant 0 : i32
    return %c0_i32, %c0_i32_0 : i32, i32
  }
  func.func @transform_4(%arg0: i32, %arg1: i32) -> (i32, i32) {
    %c0_i32 = arith.constant 0 : i32
    %c0_i32_0 = arith.constant 0 : i32
    return %arg1, %c0_i32 : i32, i32
  }
  func.func @transform_5(%arg0: i32, %arg1: i32) -> (i32, i32) {
    %c0_i32 = arith.constant 0 : i32
    %c0_i32_0 = arith.constant 0 : i32
    %c0_i32_1 = arith.constant 0 : i32
    return %c0_i32, %c0_i32_0 : i32, i32
  }
  func.func @transform_6(%arg0: i32, %arg1: i32) -> (i32, i32, i32) {
    %c0_i32 = arith.constant 0 : i32
    %c0_i32_0 = arith.constant 0 : i32
    %c0_i32_1 = arith.constant 0 : i32
    return %arg0, %c0_i32, %c0_i32_0 : i32, i32, i32
  }
}

</mosaic_0001>

<bundles_post_ra>
// kernel: tpu_custom_call.1
= control target key start
LH: loop header
LB: loop body
LE: loop exit
PB: predicated region body
PF: predicated region fallthrough
CT: control target
= control target key end

     0   :  { %s6487_s0 = inlined_call_operand.vmem [shape: f32[2,9], index: 0, kind: input, shape index: {}]   ;;  %s6488_s1 = inlined_call_operand.vmem [shape: f32[2,3], index: 1, kind: input, shape index: {}]   ;;  %s6489_s2 = inlined_call_operand.vmem [shape: f32[2,9], index: 2, kind: input, shape index: {}]   ;;  %s6490_s3 = inlined_call_operand.vmem [shape: f32[2,3], index: 3, kind: input, shape index: {}]   ;;  %s6491_s4 = inlined_call_operand.vmem [shape: f32[768,8], index: 4, kind: input, shape index: {}]   ;;  %s6492_s5 = inlined_call_operand.vmem [shape: f32[8,1024], index: 5, kind: input, shape index: {}]   ;;  %s6493_s6 = inlined_call_operand.hbm [shape: f32[2,8,128], index: 6, kind: output, shape index: {}]  }
   0x1   :  { %6654 = sst [smem:[#allocation110_spill]] %s6487_s0 }
   0x2   :  { %6655 = sst [smem:[#allocation111_spill]] %s6488_s1 }
   0x3   :  { %6656 = sst [smem:[#allocation112_spill]] %s6489_s2 }
   0x4   :  { %6657 = sst [smem:[#allocation113_spill]] %s6490_s3 }
   0x5   :  { %6658 = sst [smem:[#allocation114_spill]] %s6491_s4 }
   0x6   :  { %11 = vsyncpa [#allocation11], 0 }
   0x7   :  { %12 = vsyncpa [#allocation13], 0 }
   0x8   :  { %13 = vsyncpa [#allocation16], 0 }
   0x9   :  { %14 = vsyncpa [#allocation10], 0 }
   0xa   :  { %16 = vsyncpa [#allocation10 + $0x1], 0  ;;  %s4292_s21 = smov 0   ;;  %s4294_s22 = smov 0  }
   0xb   :  { %s4296_s23 = smov 0   ;;  %s4298_s24 = smov 0  }
   0xc   :  { %s4300_s25 = smov 0   ;;  %s4302_s26 = smov 0  }
   0xd   :  { %s4304_s27 = smov 0   ;;  %s4306_s28 = smov 0  }
   0xe LB: > { %6659 = sst [smem:[#allocation22_spill]] %s4231_s26  ;;  %s3910_s29 = sadd.s32 4294967295, %s4239_s28   ;;  %s4239_s28 = sphi %s4306_s28, %s22_s28   ;;  %s4235_s27 = sphi %s4304_s27, %s6961_s27   ;;  %s4231_s26 = sphi %s4302_s26, %s6960_s26   ;;  %s4227_s25 = sphi %s4300_s25, %s6959_s25   ;;  %s4223_s24 = sphi %s4298_s24, %s6958_s24   ;;  %s4219_s23 = sphi %s4296_s23, %s6964_s23   ;;  %s4215_s22 = sphi %s4294_s22, %s6963_s22   ;;  %s4211_s21 = sphi %s4292_s21, %s6962_s21  }
   0xf   : > { %6660 = sst [smem:[#allocation23_spill]] %s4235_s27  ;;  %s3911_s30 = sadd.s32 4294967294, %s4239_s28  }
  0x10   : > { %s31_s7 = sadd.s32 1, %s4231_s26  ;;  %s34_s8 = sadd.s32 1, %s4235_s27 }
  0x11   : > { %p32_p0 = scmp.ge.s32.totalorder %s31_s7, 3  ;;  %s172_s9 = sadd.s32 1, %s4219_s23 }
  0x12   : > { %p182_p1 = scmp.ne.s32.totalorder %s4219_s23, %s4215_s22  ;;  %p183_p2 = scmp.eq.s32.totalorder %s3910_s29, 5 }
  0x13   : > { %s6966_s7 = smov (%p32_p0, %s31_s7), 0  ;;  %s6968_s8 = smov (!%p32_p0, %s34_s8), %s4235_s27 }
  0x14   : > { %6661 = sst [smem:[#allocation24_spill]] %s6966_s7  ;;  %p4342_p3 = por %p183_p2, %p182_p1 }
  0x15   : > { %p188_p4 = scmp.ne.s32.totalorder %s4215_s22, %s4211_s21  ;;  %p36_p5 = scmp.ge.s32.totalorder %s6968_s8, 2 }
  0x16   : > { %s6662_s10 = scalar_select %p4342_p3, 1, 0 }
  0x17   : > { %p189_p6 = scmp.eq.s32.totalorder %s3911_s30, 5  ;;  %p3912_p7 = scmp.ge.s32.totalorder %s4239_s28, 1 }
  0x18   : > { %p196_p8 = scmp.lt.s32.totalorder %s4239_s28, 7  ;;  %s6970_s8 = smov (%p36_p5, %s6968_s8), 0 }
  0x19   : > { %6663 = sst [smem:[#allocation25_spill]] %s6970_s8  ;;  %p4352_p9 = por %p189_p6, %p188_p4 }
  0x1a   : > { %p4356_p10 = pnand %p3912_p7, %p196_p8  ;;  %s169_s13 = ssub.s32 %s4235_s27, %s6970_s8 }
  0x1b   : > { %s6664_s11 = scalar_select %p4352_p9, 1, 0 }
  0x1c   : > { %s6665_s12 = scalar_select %p4356_p10, 1, 0 }
  0x1d   : > { %p170_p11 = scmp.eq.s32.totalorder %s169_s13, 0  ;;  %p3960_p12 = pneg %p4356_p10 }
  0x1e   : > { %p4364_p13 = scmp.eq.s32.totalorder %s3910_s29, 0  ;;  %s6667_s1 = sld [smem:[#allocation111_spill]] }
  0x1f   : > { %s4372_s18 = scalar_select %p170_p11, %s4219_s23, %s172_s9  }
  0x20   : > { %s6666_s14 = scalar_select %p4364_p13, 1, 0 }
  0x21   : > { %6668 = sst [smem:[#allocation26_spill]] %s4372_s18  ;;  %p4376_p0 = pnand %p4364_p13, %p3960_p12 }
  0x23   : > { %p4073_p2 = pneg %p4376_p0 }
  0x24   : > { %s220_s17 = sshll.u32 %s6667_s1, 4  ;;  %s221_s17 = int_to_ptr.vmem [resolvable:$true] %s220_s17 }
  0x25   : > { %s4071_s20 = scalar_lea.vmem %s221_s17, 32  ;;  %p4079_p6 = scmp.lt.s32.totalorder %s221_s17, %s221_s17 }
  0x26   : > { %p4072_p1 = scmp.ne.s32.totalorder %s221_s17, %s4071_s20  ;;  %p4080_p7 = scmp.lt.s32.totalorder %s4071_s20, %s4071_s20 }
  0x28   : > { %p4074_p4 = pnand %p4073_p2, %p4072_p1  ;;  %p4081_p8 = por %p4080_p7, %p4079_p6 }
  0x2a   : > { %p4075_p5 = pneg %p4074_p4 }
  0x2c   : > { %p4082_p11 = pnand %p4081_p8, %p4075_p5 }
  0x2e   : > { %4085 = shalt.err (!%p4082_p11)
}
  0x2f   : > { %s4245_s29 = smov [#allocation12]   ;;  %s6670_s0 = sld [smem:[#allocation110_spill]] }
  0x30   : > { %3966 = dma.vmem_to_smem (!%p4376_p0), %s221_s17, 32, %s4245_s29, [#allocation13]  }
  0x31   : > { %s6671_s2 = sld [smem:[#allocation112_spill]] }
  0x35   : > { %s209_s13 = sshll.u32 %s6670_s0, 4  ;;  %s210_s13 = int_to_ptr.vmem [resolvable:$true] %s209_s13 }
  0x36   : > { %s4086_s8 = scalar_lea.vmem %s210_s13, 32  ;;  %p4094_p5 = scmp.lt.s32.totalorder %s210_s13, %s210_s13 }
  0x37   : > { %s231_s1 = sshll.u32 %s6671_s2, 4  ;;  %p4087_p12 = scmp.ne.s32.totalorder %s210_s13, %s4086_s8  ;;  %s232_s1 = int_to_ptr.vmem [resolvable:$true] %s231_s1 }
  0x38   : > { %p4095_p6 = scmp.lt.s32.totalorder %s4086_s8, %s4086_s8 }
  0x39   : > { %p4089_p1 = pnand %p4087_p12, %p4073_p2 }
  0x3a   : > { %p4096_p7 = por %p4095_p6, %p4094_p5 }
  0x3b   : > { %p4090_p4 = pneg %p4089_p1 }
  0x3d   : > { %p4097_p8 = pnand %p4096_p7, %p4090_p4 }
  0x3f   : > { %4100 = shalt.err (!%p4097_p8)
}
  0x40   : > { %s4246_s17 = smov [#allocation9]   ;;  %s4101_s20 = scalar_lea.vmem %s232_s1, 32 }
  0x41   : > { %3963 = dma.vmem_to_smem (!%p4376_p0), %s210_s13, 32, %s4246_s17, [#allocation11]  }
  0x42   : > { %p4102_p11 = scmp.ne.s32.totalorder %s232_s1, %s4101_s20  ;;  %p4109_p13 = scmp.lt.s32.totalorder %s232_s1, %s232_s1 }
  0x43   : > { %p4110_p12 = scmp.lt.s32.totalorder %s4101_s20, %s4101_s20 }
  0x44   : > { %p4104_p9 = pnand %p4102_p11, %p4073_p2 }
  0x45   : > { %p4111_p1 = por %p4110_p12, %p4109_p13 }
  0x46   : > { %p4105_p3 = pneg %p4104_p9 }
  0x48   : > { %p4112_p10 = pnand %p4111_p1, %p4105_p3 }
  0x4a   : > { %4115 = shalt.err (!%p4112_p10)
}
  0x4b   : > { %s4247_s8 = smov [#allocation14]   ;;  %s6672_s3 = sld [smem:[#allocation113_spill]] }
  0x4c   : > { %3969 = dma.vmem_to_smem (!%p4376_p0), %s232_s1, 32, %s4247_s8, [#allocation13]  }
  0x51   : > { %s242_s9 = sshll.u32 %s6672_s3, 4  ;;  %s243_s9 = int_to_ptr.vmem [resolvable:$true] %s242_s9 }
  0x52   : > { %s4116_s13 = scalar_lea.vmem %s243_s9, 32  ;;  %p4124_p6 = scmp.lt.s32.totalorder %s243_s9, %s243_s9 }
  0x53   : > { %p4117_p4 = scmp.ne.s32.totalorder %s243_s9, %s4116_s13  ;;  %p4125_p13 = scmp.lt.s32.totalorder %s4116_s13, %s4116_s13 }
  0x55   : > { %p4119_p9 = pnand %p4117_p4, %p4073_p2  ;;  %p4126_p3 = por %p4125_p13, %p4124_p6 }
  0x57   : > { %p4120_p5 = pneg %p4119_p9 }
  0x59   : > { %p4127_p10 = pnand %p4126_p3, %p4120_p5 }
  0x5b   : > { %4130 = shalt.err (!%p4127_p10)
}
  0x5c   : > { %s4248_s15 = smov [#allocation15]   ;;  %p6673_p7 = scmp.ne.s32.totalorder %s6665_s12, 0 }
  0x5d   : > { %3972 = dma.vmem_to_smem (!%p4376_p0), %s243_s9, 32, %s4248_s15, [#allocation16]  }
  0x5e   : > { %267 = sbr.rel (%p6673_p7) target bundleno = 1823 (0x71f), region = 44 }
  0x63   : > { %p6674_p8 = scmp.ne.s32.totalorder %s6666_s14, 0 }
  0x65   : > { %4194 = dma.done.wait (%p6674_p8), [#allocation11], 32  }
  0x66   : > { %4196 = vsyncadd (%p6674_p8), [#allocation11], 4294967264 }
  0x67   : > { %4198 = dma.done.wait (%p6674_p8), [#allocation13], 64  }
  0x68   : > { %4200 = vsyncadd (%p6674_p8), [#allocation13], 4294967232 }
  0x69   : > { %4202 = dma.done.wait (%p6674_p8), [#allocation16], 32  }
  0x6a   : > { %4204 = vsyncadd (%p6674_p8), [#allocation16], 4294967264 }
  0x6b   : > { %285 = sfence }
  0x6c   : > { %s6499_s1 = sand.u32 1, %s4215_s22   ;;  %s3924_s12 = sshll.u32 %s4223_s24, 5 }
  0x6d   : > { %s4429_s19 = sshll.u32 %s6499_s1, 3  ;;  %p311_p0 = scmp.lt.s32.totalorder %s3924_s12, 95 }
  0x6e   : > { %s6675_s4 = sld [smem:[#allocation114_spill]]  ;;  %p3926_p2 = scmp.ne.s32.totalorder %s4223_s24, 0 }
  0x6f   : > { %s6972_s12 = smov (!%p311_p0, %s3924_s12), 95  ;;  %s4439_s29 = sshll.u32 (!%p3926_p2), %s4227_s25, 7 }
  0x70   : > { %s3925_s16 = sshll.u32 %s6972_s12, 3  ;;  %319 = sbr.rel (%p3926_p2) target bundleno = 191 (0xbf), region = 64 }
  0x71   : > { %s329_s30 = sld [smem:[#allocation15 + %s4439_s29]] (!%p3926_p2)  ;;  %s6501_s9 = sadd.s32 (!%p3926_p2), 1, %s4439_s29 }
  0x72   : > { %s4445_s13 = sld [smem:[#allocation15 + %s6501_s9]] (!%p3926_p2)  ;;  %s6500_s15 = sadd.s32 (!%p3926_p2), 2, %s4439_s29 }
  0x73   : > { %s4450_s12 = sld [smem:[#allocation15 + %s6500_s15]] (!%p3926_p2)  ;;  %s414_s20 = sadd.s32 (!%p3926_p2), 6, %s4439_s29 }
  0x74   : > { %s4434_s8 = scalar_lea.vmem %s6675_s4, %s3925_s16  ;;  %s371_s16 = sadd.s32 (!%p3926_p2), 3, %s4439_s29 }
  0x75   : > { %v472_v0 = vlaneseq  ;;  %v4249_v1 = vmov 1966171168   ;;  %s4454_s17 = sld [smem:[#allocation14 + %s4439_s29]]  ;;  %v4250_v5 = vmov 1e+30   ;;  %v320_v6 = vld [vmem:[%s6492_s5] sm:$0xff] }
  0x76   : > { %v470_v2 = vunpack.c.l.s4 %v4249_v1  ;;  %831 = vst [vmem:[#allocation7] sm:$0xff] %v4250_v5  ;;  %832 = vst [vmem:[#allocation7 + $0x8] sm:$0xff] %v4250_v5  ;;  %s4457_s1 = sld [smem:[#allocation14 + %s371_s16]]  ;;  %s527_s0 = sadd.s32 4, %s4439_s29  ;;  %v321_v7 = vld [vmem:[%s6492_s5 + $0x8] sm:$0xff]  ;;  %v322_v8 = vld [vmem:[%s6492_s5 + $0x10] sm:$0xff] }
  0x77   : > { %v473_v4 = vshrl.u32 %v472_v0, 7  ;;  %833 = vst [vmem:[#allocation7 + $0x10] sm:$0xff] %v4250_v5  ;;  %834 = vst [vmem:[#allocation7 + $0x18] sm:$0xff] %v4250_v5  ;;  %s4462_s9 = sld [smem:[#allocation14 + %s414_s20]]  ;;  %v323_v9 = vld [vmem:[%s6492_s5 + $0x18] sm:$0xff]  ;;  %v330_v10 = vstv %s329_s30  ;;  %s4251_s16 = smov 0.0  }
  0x78   : > { %v471_v3 = vunpack.c.0.s8 %v470_v2  ;;  %835 = vst [vmem:[#allocation7 + $0x20] sm:$0xff] %v4250_v5  ;;  %836 = vst [vmem:[#allocation7 + $0x28] sm:$0xff] %v4250_v5  ;;  %840 = sst [smem:[#allocation8]] %s4251_s16  ;;  %v324_v11 = vld [vmem:[%s6492_s5 + $0x20] sm:$0xff]  ;;  %v325_v12 = vld [vmem:[%s6492_s5 + $0x28] sm:$0xff]  ;;  %v4483_v14 = vadd.f32 %v330_v10, %v320_v6  ;;  %v4485_v15 = vadd.f32 %v330_v10, %v321_v7  ;;  %v4487_v16 = vadd.f32 %v330_v10, %v322_v8  ;;  %s6676_s4 = sadd.s32 1, %s4439_s29 }
  0x79   : > { %837 = vst [vmem:[#allocation7 + $0x30] sm:$0xff] %v4250_v5  ;;  %838 = vst [vmem:[#allocation7 + $0x38] sm:$0xff] %v4250_v5  ;;  %v326_v13 = vld [vmem:[%s6492_s5 + $0x30] sm:$0xff]  ;;  %s4493_s26 = sld [smem:[#allocation14 + %s6676_s4]]  ;;  %v327_v18 = vld [vmem:[%s6492_s5 + $0x38] sm:$0xff]  ;;  %v4498_v19 = vadd.f32 %v330_v10, %v323_v9  ;;  %v4500_v20 = vadd.f32 %v330_v10, %v324_v11  ;;  %v4502_v21 = vadd.f32 %v330_v10, %v325_v12  ;;  %v341_v24 = vstv %s4445_s13 }
  0x7a   : > { %v4489_v17 = vsub.s32 %v471_v3, %v473_v4  ;;  %v4504_v22 = vadd.f32 %v330_v10, %v326_v13  ;;  %s4506_s18 = sld [smem:[#allocation14 + %s527_s0]]  ;;  %v4508_v23 = vadd.f32 %v330_v10, %v327_v18  ;;  %v352_v25 = vstv %s4450_s12  ;;  %s570_s0 = sadd.s32 7, %s4439_s29 }
  0x7b   : > { %v362_v26 = vstv %s4454_s17  ;;  %v4513_v27 = vadd.f32 %v341_v24, %v320_v6  ;;  %v4515_v28 = vadd.f32 %v341_v24, %v321_v7  ;;  %v4517_v29 = vadd.f32 %v341_v24, %v322_v8  ;;  %s4587_s30 = sld [smem:[#allocation14 + %s570_s0]]  ;;  %s727_s17 = sadd.s32 8, %s4439_s29 }
  0x7c   : > { %v4519_v30 = vadd.f32 %v341_v24, %v323_v9  ;;  %v4521_v31 = vadd.f32 %v341_v24, %v324_v11  ;;  %v4523_v32 = vadd.f32 %v341_v24, %v325_v12  ;;  %v4525_v33 = vadd.f32 %v341_v24, %v326_v13 }
  0x7d   : > { %v4527_v34 = vadd.f32 %v341_v24, %v327_v18  ;;  %v4529_v35 = vadd.f32 %v352_v25, %v320_v6  ;;  %v4531_v36 = vadd.f32 %v352_v25, %v321_v7  ;;  %v4533_v37 = vadd.f32 %v352_v25, %v322_v8 }
  0x7e   : > { %v4535_v38 = vadd.f32 %v352_v25, %v323_v9  ;;  %v4537_v39 = vadd.f32 %v352_v25, %v324_v11  ;;  %v4539_v40 = vadd.f32 %v352_v25, %v325_v12  ;;  %v4541_v41 = vadd.f32 %v352_v25, %v326_v13 }
  0x7f   : > { %v4543_v42 = vadd.f32 %v352_v25, %v327_v18  ;;  %v363_v43 = vmul.f32 %v362_v26, %v4483_v14  ;;  %v364_v44 = vmul.f32 %v362_v26, %v4485_v15  ;;  %v365_v45 = vmul.f32 %v362_v26, %v4487_v16 }
  0x80   : > { %v366_v46 = vmul.f32 %v362_v26, %v4498_v19  ;;  %v367_v47 = vmul.f32 %v362_v26, %v4500_v20  ;;  %v368_v48 = vmul.f32 %v362_v26, %v4502_v21  ;;  %v369_v49 = vmul.f32 %v362_v26, %v4504_v22 }
  0x81   : > { %v370_v50 = vmul.f32 %v362_v26, %v4508_v23  ;;  %v373_v51 = vstv %s4457_s1  ;;  %v416_v52 = vstv %s4462_s9  ;;  %v4556_v53 = vstv %s4493_s26  ;;  %s684_s1 = sadd.s32 5, %s4439_s29  ;;  %s6677_s9 = sadd.s32 2, %s4439_s29 }
  0x82   : > { %v4559_v54 = vstv %s4506_s18  ;;  %v374_v55 = vmul.f32 %v373_v51, %v4513_v27  ;;  %v375_v56 = vmul.f32 %v373_v51, %v4515_v28  ;;  %v376_v57 = vmul.f32 %v373_v51, %v4517_v29  ;;  %s4597_s13 = sld [smem:[#allocation14 + %s6677_s9]] }
  0x83   : > { %v377_v58 = vmul.f32 %v373_v51, %v4519_v30  ;;  %v378_v59 = vmul.f32 %v373_v51, %v4521_v31  ;;  %v379_v60 = vmul.f32 %v373_v51, %v4523_v32  ;;  %v380_v61 = vmul.f32 %v373_v51, %v4525_v33  ;;  %s4605_s12 = sld [smem:[#allocation14 + %s684_s1]] }
  0x84   : > { %v381_v62 = vmul.f32 %v373_v51, %v4527_v34  ;;  %v390_v63 = vrot.slane %v374_v55, 1  ;;  %v391_v0 = vrot.slane %v375_v56, 1  ;;  %v392_v1 = vrot.slane %v376_v57, 1  ;;  %s4649_s29 = sld [smem:[#allocation14 + %s727_s17]] }
  0x85   : > { %v393_v2 = vrot.slane %v377_v58, 1  ;;  %v394_v3 = vrot.slane %v378_v59, 1  ;;  %v395_v4 = vrot.slane %v379_v60, 1  ;;  %v396_v5 = vrot.slane %v380_v61, 1 }
  0x86   : > { %v397_v6 = vrot.slane %v381_v62, 1  ;;  %v406_v7 = vadd.f32 %v390_v63, %v363_v43  ;;  %v407_v8 = vadd.f32 %v391_v0, %v364_v44  ;;  %v408_v9 = vadd.f32 %v392_v1, %v365_v45 }
  0x87   : > { %v409_v10 = vadd.f32 %v393_v2, %v366_v46  ;;  %v410_v11 = vadd.f32 %v394_v3, %v367_v47  ;;  %v411_v12 = vadd.f32 %v395_v4, %v368_v48  ;;  %v412_v13 = vadd.f32 %v396_v5, %v369_v49 }
  0x88   : > { %v413_v18 = vadd.f32 %v397_v6, %v370_v50  ;;  %v417_v24 = vmul.f32 %v416_v52, %v4529_v35  ;;  %v418_v25 = vmul.f32 %v416_v52, %v4531_v36  ;;  %v419_v26 = vmul.f32 %v416_v52, %v4533_v37 }
  0x89   : > { %v420_v51 = vmul.f32 %v416_v52, %v4535_v38  ;;  %v421_v55 = vmul.f32 %v416_v52, %v4537_v39  ;;  %v422_v43 = vmul.f32 %v416_v52, %v4539_v40  ;;  %v423_v44 = vmul.f32 %v416_v52, %v4541_v41 }
  0x8a   : > { %v424_v45 = vmul.f32 %v416_v52, %v4543_v42  ;;  %v433_v46 = vrot.slane %v417_v24, 2  ;;  %v434_v47 = vrot.slane %v418_v25, 2  ;;  %v435_v48 = vrot.slane %v419_v26, 2 }
  0x8b   : > { %v436_v49 = vrot.slane %v420_v51, 2  ;;  %v437_v50 = vrot.slane %v421_v55, 2  ;;  %v438_v56 = vrot.slane %v422_v43, 2  ;;  %v439_v57 = vrot.slane %v423_v44, 2 }
  0x8c   : > { %v440_v58 = vrot.slane %v424_v45, 2  ;;  %v449_v59 = vadd.f32 %v433_v46, %v406_v7  ;;  %v450_v60 = vadd.f32 %v434_v47, %v407_v8  ;;  %v451_v61 = vadd.f32 %v435_v48, %v408_v9 }
  0x8d   : > { %v452_v62 = vadd.f32 %v436_v49, %v409_v10  ;;  %v453_v63 = vadd.f32 %v437_v50, %v410_v11  ;;  %v454_v0 = vadd.f32 %v438_v56, %v411_v12  ;;  %v455_v1 = vadd.f32 %v439_v57, %v412_v13 }
  0x8e   : > { %v456_v2 = vadd.f32 %v440_v58, %v413_v18  ;;  %v465_v52 = vcombine.low %v449_v59, %v450_v60  ;;  %v519_v4 = vmul.f32 %v4556_v53, %v4483_v14  ;;  %v520_v5 = vmul.f32 %v4556_v53, %v4485_v15 }
  0x8f   : > { %v466_v3 = vcombine.low %v451_v61, %v452_v62  ;;  %v467_v6 = vcombine.low %v453_v63, %v454_v0  ;;  %v521_v8 = vmul.f32 %v4556_v53, %v4487_v16  ;;  %v522_v9 = vmul.f32 %v4556_v53, %v4498_v19 }
  0x90   : > { %v468_v7 = vcombine.low %v455_v1, %v456_v2  ;;  %v475_v10 = vrot.slane %v465_v52, %v4489_v17  ;;  %v523_v12 = vmul.f32 %v4556_v53, %v4500_v20  ;;  %v524_v13 = vmul.f32 %v4556_v53, %v4502_v21 }
  0x91   : > { %v482_v11 = vrot.slane %v466_v3, %v4489_v17  ;;  %v489_v18 = vrot.slane %v467_v6, %v4489_v17  ;;  %v525_v25 = vmul.f32 %v4556_v53, %v4504_v22  ;;  %v526_v26 = vmul.f32 %v4556_v53, %v4508_v23 }
  0x92   : > { %v496_v24 = vrot.slane %v468_v7, %v4489_v17  ;;  %v530_v55 = vmul.f32 %v4559_v54, %v4513_v27  ;;  %v531_v43 = vmul.f32 %v4559_v54, %v4515_v28  ;;  %v532_v44 = vmul.f32 %v4559_v54, %v4517_v29 }
  0x93   : > { %v497_v51 = vcombine.low %v475_v10, %v482_v11  ;;  %v533_v46 = vmul.f32 %v4559_v54, %v4519_v30  ;;  %v534_v47 = vmul.f32 %v4559_v54, %v4521_v31  ;;  %v535_v53 = vmul.f32 %v4559_v54, %v4523_v32 }
  0x94   : > { %v498_v45 = vcombine.low %v489_v18, %v496_v24  ;;  %v536_v49 = vmul.f32 %v4559_v54, %v4525_v33  ;;  %v537_v50 = vmul.f32 %v4559_v54, %v4527_v34  ;;  %v546_v56 = vrot.slane %v530_v55, 1 }
  0x95   : > { %v505_v48 = vrot.slane %v497_v51, %v4489_v17  ;;  %v547_v58 = vrot.slane %v531_v43, 1  ;;  %v548_v59 = vrot.slane %v532_v44, 1  ;;  %v549_v60 = vrot.slane %v533_v46, 1 }
  0x96   : > { %v512_v57 = vrot.slane %v498_v45, %v4489_v17  ;;  %v550_v61 = vrot.slane %v534_v47, 1  ;;  %v551_v62 = vrot.slane %v535_v53, 1  ;;  %v552_v63 = vrot.slane %v536_v49, 1 }
  0x97   : > { %v553_v0 = vrot.slane %v537_v50, 1  ;;  %v562_v2 = vadd.f32 %v546_v56, %v519_v4  ;;  %v563_v52 = vadd.f32 %v547_v58, %v520_v5  ;;  %v564_v3 = vadd.f32 %v548_v59, %v521_v8 }
  0x98   : > { %v513_v1 = vcombine.low %v505_v48, %v512_v57  ;;  %v565_v6 = vadd.f32 %v549_v60, %v522_v9  ;;  %v566_v7 = vadd.f32 %v550_v61, %v523_v12  ;;  %v567_v54 = vadd.f32 %v551_v62, %v524_v13 }
  0x99   : > { %v568_v10 = vadd.f32 %v552_v63, %v525_v25  ;;  %v569_v11 = vadd.f32 %v553_v0, %v526_v26  ;;  %v572_v18 = vstv %s4587_s30  ;;  %v675_v24 = vstv %s4597_s13 }
  0x9a   : > { %515 = vst [vmem:[#allocation2] ss:$8 sm:$0xf] %v513_v1  ;;  %516 = vst [vmem:[#allocation2] ss:$8 sm:$0xf0] %v513_v1  ;;  %v686_v51 = vstv %s4605_s12  ;;  %v573_v55 = vmul.f32 %v572_v18, %v4529_v35  ;;  %v574_v43 = vmul.f32 %v572_v18, %v4531_v36  ;;  %v575_v44 = vmul.f32 %v572_v18, %v4533_v37 }
  0x9b   : > { %v576_v4 = vmul.f32 %v572_v18, %v4535_v38  ;;  %v577_v5 = vmul.f32 %v572_v18, %v4537_v39  ;;  %v578_v8 = vmul.f32 %v572_v18, %v4539_v40  ;;  %v579_v9 = vmul.f32 %v572_v18, %v4541_v41 }
  0x9c   : > { %v580_v12 = vmul.f32 %v572_v18, %v4543_v42  ;;  %v589_v13 = vrot.slane %v573_v55, 2  ;;  %v590_v25 = vrot.slane %v574_v43, 2  ;;  %v591_v26 = vrot.slane %v575_v44, 2 }
  0x9d   : > { %v592_v45 = vrot.slane %v576_v4, 2  ;;  %v593_v46 = vrot.slane %v577_v5, 2  ;;  %v594_v47 = vrot.slane %v578_v8, 2  ;;  %v595_v53 = vrot.slane %v579_v9, 2 }
  0x9e   : > { %v596_v48 = vrot.slane %v580_v12, 2  ;;  %v605_v49 = vadd.f32 %v589_v13, %v562_v2  ;;  %v606_v50 = vadd.f32 %v590_v25, %v563_v52  ;;  %v607_v56 = vadd.f32 %v591_v26, %v564_v3 }
  0x9f   : > { %v608_v57 = vadd.f32 %v592_v45, %v565_v6  ;;  %v609_v58 = vadd.f32 %v593_v46, %v566_v7  ;;  %v610_v59 = vadd.f32 %v594_v47, %v567_v54  ;;  %v611_v60 = vadd.f32 %v595_v53, %v568_v10 }
  0xa0   : > { %v612_v61 = vadd.f32 %v596_v48, %v569_v11  ;;  %v621_v62 = vcombine.low %v605_v49, %v606_v50  ;;  %v676_v0 = vmul.f32 %v675_v24, %v4483_v14  ;;  %v677_v1 = vmul.f32 %v675_v24, %v4485_v15 }
  0xa1   : > { %v622_v63 = vcombine.low %v607_v56, %v608_v57  ;;  %v623_v18 = vcombine.low %v609_v58, %v610_v59  ;;  %v678_v43 = vmul.f32 %v675_v24, %v4487_v16  ;;  %v679_v2 = vmul.f32 %v675_v24, %v4498_v19 }
  0xa2   : > { %v624_v55 = vcombine.low %v611_v60, %v612_v61  ;;  %v631_v52 = vrot.slane %v621_v62, %v4489_v17  ;;  %v680_v6 = vmul.f32 %v675_v24, %v4500_v20  ;;  %v681_v7 = vmul.f32 %v675_v24, %v4502_v21 }
  0xa3   : > { %v638_v3 = vrot.slane %v622_v63, %v4489_v17  ;;  %v645_v54 = vrot.slane %v623_v18, %v4489_v17  ;;  %v682_v15 = vmul.f32 %v675_v24, %v4504_v22  ;;  %v683_v10 = vmul.f32 %v675_v24, %v4508_v23 }
  0xa4   : > { %v652_v14 = vrot.slane %v624_v55, %v4489_v17  ;;  %v687_v19 = vmul.f32 %v686_v51, %v4513_v27  ;;  %v688_v11 = vmul.f32 %v686_v51, %v4515_v28  ;;  %v689_v44 = vmul.f32 %v686_v51, %v4517_v29 }
  0xa5   : > { %v653_v16 = vcombine.low %v631_v52, %v638_v3  ;;  %v690_v21 = vmul.f32 %v686_v51, %v4519_v30  ;;  %v691_v4 = vmul.f32 %v686_v51, %v4521_v31  ;;  %v692_v5 = vmul.f32 %v686_v51, %v4523_v32 }
  0xa6   : > { %v654_v20 = vcombine.low %v645_v54, %v652_v14  ;;  %v693_v23 = vmul.f32 %v686_v51, %v4525_v33  ;;  %v694_v24 = vmul.f32 %v686_v51, %v4527_v34  ;;  %v703_v8 = vrot.slane %v687_v19, 1 }
  0xa7   : > { %v661_v22 = vrot.slane %v653_v16, %v4489_v17  ;;  %v704_v9 = vrot.slane %v688_v11, 1  ;;  %v705_v28 = vrot.slane %v689_v44, 1  ;;  %v706_v12 = vrot.slane %v690_v21, 1 }
  0xa8   : > { %v668_v27 = vrot.slane %v654_v20, %v4489_v17  ;;  %v707_v29 = vrot.slane %v691_v4, 1  ;;  %v708_v13 = vrot.slane %v692_v5, 1  ;;  %v709_v30 = vrot.slane %v693_v23, 1 }
  0xa9   : > { %v710_v25 = vrot.slane %v694_v24, 1  ;;  %v719_v26 = vadd.f32 %v703_v8, %v676_v0  ;;  %v720_v32 = vadd.f32 %v704_v9, %v677_v1  ;;  %v721_v45 = vadd.f32 %v705_v28, %v678_v43 }
  0xaa   : > { %v669_v31 = vcombine.low %v661_v22, %v668_v27  ;;  %v722_v46 = vadd.f32 %v706_v12, %v679_v2  ;;  %v723_v47 = vadd.f32 %v707_v29, %v680_v6  ;;  %v724_v33 = vadd.f32 %v708_v13, %v681_v7 }
  0xab   : > { %v725_v34 = vadd.f32 %v709_v30, %v682_v15  ;;  %v726_v51 = vadd.f32 %v710_v25, %v683_v10  ;;  %v729_v53 = vstv %s4649_s29 }
  0xac   : > { %672 = vst [vmem:[#allocation2 + $0x1] ss:$8 sm:$0xf] %v669_v31  ;;  %673 = vst [vmem:[#allocation2 + $0x1] ss:$8 sm:$0xf0] %v669_v31  ;;  %v730_v48 = vmul.f32 %v729_v53, %v4529_v35  ;;  %v731_v49 = vmul.f32 %v729_v53, %v4531_v36  ;;  %v732_v50 = vmul.f32 %v729_v53, %v4533_v37 }
  0xad   : > { %v733_v56 = vmul.f32 %v729_v53, %v4535_v38  ;;  %v734_v57 = vmul.f32 %v729_v53, %v4537_v39  ;;  %v735_v58 = vmul.f32 %v729_v53, %v4539_v40  ;;  %v736_v59 = vmul.f32 %v729_v53, %v4541_v41 }
  0xae   : > { %v737_v60 = vmul.f32 %v729_v53, %v4543_v42  ;;  %v746_v61 = vrot.slane %v730_v48, 2  ;;  %v747_v62 = vrot.slane %v731_v49, 2  ;;  %v748_v63 = vrot.slane %v732_v50, 2 }
  0xaf   : > { %v749_v0 = vrot.slane %v733_v56, 2  ;;  %v750_v1 = vrot.slane %v734_v57, 2  ;;  %v751_v35 = vrot.slane %v735_v58, 2  ;;  %v752_v18 = vrot.slane %v736_v59, 2 }
  0xb0   : > { %v753_v36 = vrot.slane %v737_v60, 2  ;;  %v762_v55 = vadd.f32 %v746_v61, %v719_v26  ;;  %v763_v37 = vadd.f32 %v747_v62, %v720_v32  ;;  %v764_v43 = vadd.f32 %v748_v63, %v721_v45 }
  0xb1   : > { %v765_v38 = vadd.f32 %v749_v0, %v722_v46  ;;  %v766_v2 = vadd.f32 %v750_v1, %v723_v47  ;;  %v767_v39 = vadd.f32 %v751_v35, %v724_v33  ;;  %v768_v52 = vadd.f32 %v752_v18, %v725_v34 }
  0xb2   : > { %v769_v40 = vadd.f32 %v753_v36, %v726_v51  ;;  %v778_v3 = vcombine.low %v762_v55, %v763_v37 }
  0xb3   : > { %v779_v41 = vcombine.low %v764_v43, %v765_v38  ;;  %v780_v6 = vcombine.low %v766_v2, %v767_v39 }
  0xb4   : > { %v781_v42 = vcombine.low %v768_v52, %v769_v40  ;;  %v788_v7 = vrot.slane %v778_v3, %v4489_v17 }
  0xb5   : > { %v795_v54 = vrot.slane %v779_v41, %v4489_v17  ;;  %v802_v14 = vrot.slane %v780_v6, %v4489_v17 }
  0xb6   : > { %v809_v15 = vrot.slane %v781_v42, %v4489_v17 }
  0xb7   : > { %v810_v10 = vcombine.low %v788_v7, %v795_v54 }
  0xb8   : > { %v811_v16 = vcombine.low %v802_v14, %v809_v15 }
  0xb9   : > { %v818_v19 = vrot.slane %v810_v10, %v4489_v17 }
  0xba   : > { %v825_v11 = vrot.slane %v811_v16, %v4489_v17 }
  0xbc   : > { %v826_v44 = vcombine.low %v818_v19, %v825_v11 }
  0xbe   : > { %829 = vst [vmem:[#allocation2 + $0x2] ss:$8 sm:$0xf] %v826_v44  ;;  %830 = vst [vmem:[#allocation2 + $0x2] ss:$8 sm:$0xf0] %v826_v44 }
  0xbf PF: > { %s4677_s16 = sshll.u32 %s4227_s25, 7  ;;  %v4684_v17 = vld [vmem:[%s4434_s8 + $0x10] sm:$0xff]  ;;  %v4687_v20 = vld [vmem:[%s4434_s8] sm:$0xff]  ;;  %v4690_v21 = vld [vmem:[%s4434_s8 + $0x18] sm:$0xff]  ;;  %s4252_s25 = smov 127  }
  0xc0   : > { %s908_s14 = sadd.s32 1, %s4677_s16  ;;  %s1012_s15 = sadd.s32 3, %s4677_s16  ;;  %v4693_v4 = vld [vmem:[%s4434_s8 + $0x8] sm:$0xff]  ;;  %v4719_v28 = vld [vmem:[%s4434_s8 + $0x20] sm:$0xff]  ;;  %v4740_v26 = vld [vmem:[%s4434_s8 + $0x38] sm:$0xff] }
  0xc1   : > { %s909_s20 = sld [smem:[#allocation12 + %s908_s14]]  ;;  %v4712_v27 = vld [vmem:[%s4434_s8 + $0x28] sm:$0xff]  ;;  %v4743_v32 = vld [vmem:[%s4434_s8 + $0x30] sm:$0xff]  ;;  %v4763_v51 = vld [vmem:[%s4434_s8 + $0x40] sm:$0xff]  ;;  %s943_s3 = sadd.s32 2, %s4677_s16 }
  0xc2   : > { %s1013_s2 = sld [smem:[#allocation9 + %s1012_s15]]  ;;  %v4760_v34 = vld [vmem:[%s4434_s8 + $0x48] sm:$0xff]  ;;  %v4780_v56 = vld [vmem:[%s4434_s8 + $0x58] sm:$0xff]  ;;  %v4783_v57 = vld [vmem:[%s4434_s8 + $0x50] sm:$0xff]  ;;  %s1207_s26 = sadd.s32 6, %s4677_s16 }
  0xc3   : > { %v4800_v62 = vld [vmem:[%s4434_s8 + $0x68] sm:$0xff]  ;;  %v4803_v63 = vld [vmem:[%s4434_s8 + $0x60] sm:$0xff]  ;;  %v4820_v36 = vld [vmem:[%s4434_s8 + $0x78] sm:$0xff]  ;;  %s944_s4 = sld [smem:[#allocation12 + %s943_s3]]  ;;  %s1628_s0 = sadd.s32 4, %s4677_s16 }
  0xc4   : > { %v4823_v55 = vld [vmem:[%s4434_s8 + $0x70] sm:$0xff]  ;;  %v4840_v39 = vld [vmem:[%s4434_s8 + $0x88] sm:$0xff]  ;;  %v4843_v52 = vld [vmem:[%s4434_s8 + $0x80] sm:$0xff]  ;;  %s1208_s27 = sld [smem:[#allocation9 + %s1207_s26]]  ;;  %s1823_s30 = sadd.s32 7, %s4677_s16 }
  0xc5   : > { %v4860_v42 = vld [vmem:[%s4434_s8 + $0x98] sm:$0xff]  ;;  %v4863_v7 = vld [vmem:[%s4434_s8 + $0x90] sm:$0xff]  ;;  %v4880_v16 = vld [vmem:[%s4434_s8 + $0xa8] sm:$0xff]  ;;  %s874_s7 = sld [smem:[#allocation12 + %s4677_s16]]  ;;  %s2244_s12 = sadd.s32 5, %s4677_s16 }
  0xc6   : > { %v4883_v19 = vld [vmem:[%s4434_s8 + $0xa0] sm:$0xff]  ;;  %s978_s18 = sld [smem:[#allocation9 + %s4677_s16]]  ;;  %s2439_s29 = sadd.s32 8, %s4677_s16 }
  0xc7   : > { %v4695_v5 = vstv %s909_s20  ;;  %s1629_s1 = sld [smem:[#allocation9 + %s1628_s0]]  ;;  %s6200_s20 = smov 0  }
  0xc8   : > { %v4699_v22 = vadd.f32 %v4695_v5, %v4684_v17  ;;  %v4701_v23 = vstv %s1013_s2  ;;  %v4705_v24 = vadd.f32 %v4695_v5, %v4687_v20  ;;  %v4709_v8 = vadd.f32 %v4695_v5, %v4690_v21  ;;  %s1824_s9 = sld [smem:[#allocation9 + %s1823_s30]] }
  0xc9   : > { %v4716_v9 = vadd.f32 %v4695_v5, %v4693_v4  ;;  %v4727_v13 = vadd.f32 %v4695_v5, %v4712_v27  ;;  %v4737_v31 = vadd.f32 %v4695_v5, %v4719_v28  ;;  %v4747_v45 = vadd.f32 %v4695_v5, %v4740_v26  ;;  %s1594_s13 = sld [smem:[#allocation9 + %s908_s14]] }
  0xca   : > { %6678 = vst [vmem:[#allocation27_spill] sm:$0xff] %v4699_v22  ;;  %6679 = vst [vmem:[#allocation28_spill] sm:$0xff] %v4705_v24  ;;  %v1017_v12 = vmul.f32 %v4701_v23, %v4699_v22  ;;  %v1015_v29 = vmul.f32 %v4701_v23, %v4705_v24  ;;  %v1018_v30 = vmul.f32 %v4701_v23, %v4709_v8  ;;  %s2245_s17 = sld [smem:[#allocation9 + %s2244_s12]] }
  0xcb   : > { %6680 = vst [vmem:[#allocation29_spill] sm:$0xff] %v4709_v8  ;;  %6681 = vst [vmem:[#allocation30_spill] sm:$0xff] %v4716_v9  ;;  %v1016_v25 = vmul.f32 %v4701_v23, %v4716_v9  ;;  %v1020_v46 = vmul.f32 %v4701_v23, %v4727_v13  ;;  %v1019_v47 = vmul.f32 %v4701_v23, %v4737_v31  ;;  %s2440_s14 = sld [smem:[#allocation9 + %s2439_s29]] }
  0xcc   : > { %6682 = vst [vmem:[#allocation31_spill] sm:$0xff] %v4727_v13  ;;  %1083 = vrot.lane.b32.xlu1 %v1017_v12, %s4252_s25  ;;  %1079 = vrot.lane.b32.xlu0 %v1015_v29, %s4252_s25  ;;  %6683 = vst [vmem:[#allocation32_spill] sm:$0xff] %v4737_v31  ;;  %v4757_v33 = vadd.f32 %v4695_v5, %v4743_v32  ;;  %v1022_v53 = vmul.f32 %v4701_v23, %v4747_v45  ;;  %v5287_v13 = vstv %s874_s7  ;;  %s2210_s15 = sld [smem:[#allocation9 + %s943_s3]] }
  0xcd   : > { %6684 = vst [vmem:[#allocation33_spill] sm:$0xff] %v4747_v45  ;;  %v4773_v49 = vadd.f32 %v4695_v5, %v4760_v34  ;;  %v4777_v50 = vadd.f32 %v4695_v5, %v4763_v51  ;;  %v4787_v58 = vadd.f32 %v4695_v5, %v4780_v56  ;;  %v4797_v61 = vadd.f32 %v4695_v5, %v4783_v57 }
  0xce   : > { %6685 = vst [vmem:[#allocation34_spill] sm:$0xff] %v4757_v33  ;;  %v1021_v48 = vmul.f32 %v4701_v23, %v4757_v33  ;;  %v4807_v0 = vadd.f32 %v4695_v5, %v4800_v62  ;;  %v4817_v18 = vadd.f32 %v4695_v5, %v4803_v63  ;;  %v4827_v37 = vadd.f32 %v4695_v5, %v4820_v36 }
  0xcf   : > { %6686 = vst [vmem:[#allocation35_spill] sm:$0xff] %v4773_v49  ;;  %6687 = vst [vmem:[#allocation36_spill] sm:$0xff] %v4777_v50  ;;  %v1024_v59 = vmul.f32 %v4701_v23, %v4773_v49  ;;  %v1023_v60 = vmul.f32 %v4701_v23, %v4777_v50  ;;  %v1026_v1 = vmul.f32 %v4701_v23, %v4787_v58  ;;  %v5301_v24 = vstv %s978_s18 }
  0xd0   : > { %1085 = vrot.lane.b32.xlu1 %v1018_v30, %s4252_s25  ;;  %1081 = vrot.lane.b32.xlu0 %v1016_v25, %s4252_s25  ;;  %6688 = vst [vmem:[#allocation37_spill] sm:$0xff] %v4787_v58  ;;  %6689 = vst [vmem:[#allocation38_spill] sm:$0xff] %v4797_v61  ;;  %v1025_v35 = vmul.f32 %v4701_v23, %v4797_v61  ;;  %v1028_v43 = vmul.f32 %v4701_v23, %v4807_v0  ;;  %v4900_v30 = vld [vmem:[%s4434_s8 + $0xb8] sm:$0xff]  ;;  %v4903_v25 = vld [vmem:[%s4434_s8 + $0xb0] sm:$0xff] }
  0xd1   : > { %6690 = vst [vmem:[#allocation39_spill] sm:$0xff] %v4807_v0  ;;  %6691 = vst [vmem:[#allocation40_spill] sm:$0xff] %v4817_v18  ;;  %v1027_v38 = vmul.f32 %v4701_v23, %v4817_v18  ;;  %v4837_v2 = vadd.f32 %v4695_v5, %v4823_v55  ;;  %v1030_v40 = vmul.f32 %v4701_v23, %v4827_v37 }
  0xd2   : > { %6692 = vst [vmem:[#allocation41_spill] sm:$0xff] %v4827_v37  ;;  %v4853_v41 = vadd.f32 %v4695_v5, %v4840_v39  ;;  %v4857_v6 = vadd.f32 %v4695_v5, %v4843_v52  ;;  %v4867_v54 = vadd.f32 %v4695_v5, %v4860_v42  ;;  %v4877_v10 = vadd.f32 %v4695_v5, %v4863_v7 }
  0xd3   : > { %6693 = vst [vmem:[#allocation42_spill] sm:$0xff] %v4837_v2  ;;  %v1029_v3 = vmul.f32 %v4701_v23, %v4837_v2  ;;  %v4887_v11 = vadd.f32 %v4695_v5, %v4880_v16  ;;  %v4897_v29 = vadd.f32 %v4695_v5, %v4883_v19  ;;  %v5295_v22 = vadd.f32 %v5287_v13, %v4687_v20 }
  0xd4   : > { %1089 = vrot.lane.b32.xlu1 %v1020_v46, %s4252_s25  ;;  %1087 = vrot.lane.b32.xlu0 %v1019_v47, %s4252_s25  ;;  %6694 = vst [vmem:[#allocation43_spill] sm:$0xff] %v4853_v41  ;;  %6695 = vst [vmem:[#allocation44_spill] sm:$0xff] %v4857_v6  ;;  %v1032_v14 = vmul.f32 %v4701_v23, %v4853_v41  ;;  %v1031_v15 = vmul.f32 %v4701_v23, %v4857_v6 }
  0xd5   : > { %6696 = vst [vmem:[#allocation45_spill] sm:$0xff] %v4867_v54  ;;  %6697 = vst [vmem:[#allocation46_spill] sm:$0xff] %v4877_v10  ;;  %v1034_v44 = vmul.f32 %v4701_v23, %v4867_v54  ;;  %v1033_v12 = vmul.f32 %v4701_v23, %v4877_v10  ;;  %v4907_v46 = vadd.f32 %v4695_v5, %v4900_v30 }
  0xd6   : > { %6698 = vst [vmem:[#allocation47_spill] sm:$0xff] %v4887_v11  ;;  %6699 = vst [vmem:[#allocation48_spill] sm:$0xff] %v4897_v29  ;;  %v1036_v47 = vmul.f32 %v4701_v23, %v4887_v11  ;;  %v5003_v11 = vstv %s944_s4  ;;  %v5299_v9 = vadd.f32 %v5287_v13, %v4693_v4 }
  0xd7   : > { %6700 = vst [vmem:[#allocation49_spill] sm:$0xff] %v4907_v46  ;;  %6751 = vst [vmem:[#allocation100_spill] sm:$0xff] %v5295_v22 }
  0xd8   : > { %1093 = vrot.lane.b32.xlu1 %v1022_v53, %s4252_s25  ;;  %1091 = vrot.lane.b32.xlu0 %v1021_v48, %s4252_s25  ;;  %v1035_v53 = vmul.f32 %v4701_v23, %v4897_v29  ;;  %v4917_v48 = vadd.f32 %v4695_v5, %v4903_v25  ;;  %v4253_v29 = vmov 0   ;;  %6752 = vst [vmem:[#allocation101_spill] sm:$0xff] %v5299_v9 }
  0xd9   : > { %4070 = vset.pattern.permute.xlu1 %v4253_v29  ;;  %4069 = vset.pattern.permute.xlu0 %v4253_v29  ;;  %v5023_v29 = vadd.f32 %v5003_v11, %v4690_v21 }
  0xda   : > { %6701 = vst [vmem:[#allocation50_spill] sm:$0xff] %v4917_v48 }
  0xdb   : > { %6716 = vst [vmem:[#allocation65_spill] sm:$0xff] %v5023_v29 }
  0xdc   : > { %1097 = vrot.lane.b32.xlu1 %v1024_v59, %s4252_s25  ;;  %1095 = vrot.lane.b32.xlu0 %v1023_v60, %s4252_s25  ;;  %v4920_v59 = vld [vmem:[%s4434_s8 + $0xc8] sm:$0xff]  ;;  %v4923_v60 = vld [vmem:[%s4434_s8 + $0xc0] sm:$0xff] }
  0xe0   : > { %1101 = vrot.lane.b32.xlu1 %v1026_v1, %s4252_s25  ;;  %1099 = vrot.lane.b32.xlu0 %v1025_v35, %s4252_s25  ;;  %v1038_v1 = vmul.f32 %v4701_v23, %v4907_v46  ;;  %v1037_v35 = vmul.f32 %v4701_v23, %v4917_v48  ;;  %v4984_v46 = vld [vmem:[%s4434_s8 + $0xf8] sm:$0xff]  ;;  %v4987_v48 = vld [vmem:[%s4434_s8 + $0xf0] sm:$0xff] }
  0xe1   : > { %6710 = vst [vmem:[#allocation59_spill] sm:$0xff] %v4984_v46  ;;  %6711 = vst [vmem:[#allocation60_spill] sm:$0xff] %v4987_v48 }
  0xe4   : > { %1105 = vrot.lane.b32.xlu1 %v1028_v43, %s4252_s25  ;;  %1103 = vrot.lane.b32.xlu0 %v1027_v38, %s4252_s25  ;;  %v4933_v43 = vadd.f32 %v4695_v5, %v4920_v59  ;;  %v4937_v38 = vadd.f32 %v4695_v5, %v4923_v60 }
  0xe6   : > { %6702 = vst [vmem:[#allocation51_spill] sm:$0xff] %v4933_v43  ;;  %6703 = vst [vmem:[#allocation52_spill] sm:$0xff] %v4937_v38 }
  0xe8   : > { %1109 = vrot.lane.b32.xlu1 %v1030_v40, %s4252_s25  ;;  %1107 = vrot.lane.b32.xlu0 %v1029_v3, %s4252_s25  ;;  %v4940_v40 = vld [vmem:[%s4434_s8 + $0xd8] sm:$0xff]  ;;  %v4943_v3 = vld [vmem:[%s4434_s8 + $0xd0] sm:$0xff] }
  0xec   : > { %1113 = vrot.lane.b32.xlu1 %v1032_v14, %s4252_s25  ;;  %1111 = vrot.lane.b32.xlu0 %v1031_v15, %s4252_s25  ;;  %v4948_v14 = vadd.f32 %v4695_v5, %v4940_v40  ;;  %v1040_v15 = vmul.f32 %v4701_v23, %v4933_v43 }
  0xee   : > { %6704 = vst [vmem:[#allocation53_spill] sm:$0xff] %v4948_v14 }
  0xf0   : > { %1117 = vrot.lane.b32.xlu1 %v1034_v44, %s4252_s25  ;;  %1115 = vrot.lane.b32.xlu0 %v1033_v12, %s4252_s25  ;;  %v1039_v44 = vmul.f32 %v4701_v23, %v4937_v38  ;;  %v4958_v12 = vadd.f32 %v4695_v5, %v4943_v3 }
  0xf2   : > { %6705 = vst [vmem:[#allocation54_spill] sm:$0xff] %v4958_v12  ;;  %v1041_v43 = vmul.f32 %v4701_v23, %v4958_v12  ;;  %v5001_v12 = vadd.f32 %v4695_v5, %v4987_v48 }
  0xf4   : > { %1121 = vrot.lane.b32.xlu1 %v1036_v47, %s4252_s25  ;;  %1119 = vrot.lane.b32.xlu0 %v1035_v53, %s4252_s25  ;;  %v4961_v47 = vld [vmem:[%s4434_s8 + $0xe8] sm:$0xff]  ;;  %v4964_v53 = vld [vmem:[%s4434_s8 + $0xe0] sm:$0xff]  ;;  %6713 = vst [vmem:[#allocation62_spill] sm:$0xff] %v5001_v12  ;;  %s4254_s8 = smov 126  }
  0xf5   : > { %6706 = vst [vmem:[#allocation55_spill] sm:$0xff] %v4961_v47  ;;  %6707 = vst [vmem:[#allocation56_spill] sm:$0xff] %v4964_v53  ;;  %v4981_v38 = vadd.f32 %v4695_v5, %v4964_v53 }
  0xf7   : > { %6709 = vst [vmem:[#allocation58_spill] sm:$0xff] %v4981_v38 }
  0xf8   : > { %1125 = vrot.lane.b32.xlu1 %v1038_v1, %s4252_s25  ;;  %1123 = vrot.lane.b32.xlu0 %v1037_v35, %s4252_s25  ;;  %v4971_v1 = vadd.f32 %v4695_v5, %v4961_v47  ;;  %v1042_v35 = vmul.f32 %v4701_v23, %v4948_v14  ;;  %v1043_v14 = vmul.f32 %v4701_v23, %v4981_v38  ;;  %v5019_v38 = vstv %s1208_s27 }
  0xfa   : > { %6708 = vst [vmem:[#allocation57_spill] sm:$0xff] %v4971_v1 }
  0xfc   : > { %1129 = vrot.lane.b32.xlu1 %v1040_v15, %s4252_s25  ;;  %1127 = vrot.lane.b32.xlu0 %v1039_v44, %s4252_s25  ;;  %v4991_v15 = vadd.f32 %v4695_v5, %v4984_v46  ;;  %v1044_v44 = vmul.f32 %v4701_v23, %v4971_v1  ;;  %v5013_v1 = vadd.f32 %v5003_v11, %v4693_v4 }
  0xfd   : > { %v5017_v5 = vadd.f32 %v5003_v11, %v4687_v20  ;;  %v5315_v20 = vadd.f32 %v5287_v13, %v4690_v21  ;;  %v981_v4 = vmul.f32 %v5301_v24, %v5299_v9 }
  0xfe   : > { %6712 = vst [vmem:[#allocation61_spill] sm:$0xff] %v4991_v15  ;;  %6714 = vst [vmem:[#allocation63_spill] sm:$0xff] %v5013_v1 }
  0xff   : > { %6715 = vst [vmem:[#allocation64_spill] sm:$0xff] %v5017_v5  ;;  %6756 = vst [vmem:[#allocation105_spill] sm:$0xff] %v5315_v20 }
 0x100   : > { %1133 = vrot.lane.b32.xlu1 %v1042_v35, %s4252_s25  ;;  %1131 = vrot.lane.b32.xlu0 %v1041_v43, %s4252_s25  ;;  %v1046_v35 = vmul.f32 %v4701_v23, %v4991_v15  ;;  %v1045_v43 = vmul.f32 %v4701_v23, %v5001_v12  ;;  %v1211_v23 = vmul.f32 %v5019_v38, %v5013_v1 }
 0x101   : > { %v5037_v15 = vadd.f32 %v5003_v11, %v4712_v27  ;;  %v5047_v1 = vadd.f32 %v5003_v11, %v4719_v28 }
 0x103   : > { %6718 = vst [vmem:[#allocation67_spill] sm:$0xff] %v5037_v15  ;;  %6719 = vst [vmem:[#allocation68_spill] sm:$0xff] %v5047_v1 }
 0x104   : > { %1137 = vrot.lane.b32.xlu1 %v1044_v44, %s4252_s25  ;;  %1135 = vrot.lane.b32.xlu0 %v1043_v14, %s4252_s25  ;;  %v1210_v14 = vmul.f32 %v5019_v38, %v5017_v5  ;;  %v5033_v44 = vadd.f32 %v5003_v11, %v4684_v17  ;;  %v5051_v5 = vadd.f32 %v5003_v11, %v4740_v26 }
 0x106   : > { %6717 = vst [vmem:[#allocation66_spill] sm:$0xff] %v5033_v44  ;;  %6720 = vst [vmem:[#allocation69_spill] sm:$0xff] %v5051_v5 }
 0x108   : > { %1141 = vrot.lane.b32.xlu1 %v1046_v35, %s4252_s25  ;;  %1139 = vrot.lane.b32.xlu0 %v1045_v43, %s4252_s25  ;;  %v1213_v35 = vmul.f32 %v5019_v38, %v5023_v29  ;;  %v1212_v43 = vmul.f32 %v5019_v38, %v5033_v44  ;;  %v5061_v29 = vadd.f32 %v5003_v11, %v4743_v32 }
 0x109   : > { %v1217_v44 = vmul.f32 %v5019_v38, %v5051_v5  ;;  %v5089_v5 = vadd.f32 %v5003_v11, %v4783_v57 }
 0x10a   : > { %6721 = vst [vmem:[#allocation70_spill] sm:$0xff] %v5061_v29 }
 0x10b   : > { %6725 = vst [vmem:[#allocation74_spill] sm:$0xff] %v5089_v5 }
 0x10c   : > { %1276 = vrot.lane.b32.xlu1 %v1211_v23, %s4254_s8  ;;  %1274 = vrot.lane.b32.xlu0 %v1210_v14, %s4254_s8  ;;  %v1215_v23 = vmul.f32 %v5019_v38, %v5037_v15  ;;  %v1214_v14 = vmul.f32 %v5019_v38, %v5047_v1  ;;  %v5075_v15 = vadd.f32 %v5003_v11, %v4763_v51 }
 0x10d   : > { %v5079_v1 = vadd.f32 %v5003_v11, %v4780_v56 }
 0x10e   : > { %6723 = vst [vmem:[#allocation72_spill] sm:$0xff] %v5075_v15 }
 0x10f   : > { %6724 = vst [vmem:[#allocation73_spill] sm:$0xff] %v5079_v1 }
 0x110   : > { %1280 = vrot.lane.b32.xlu1 %v1213_v35, %s4254_s8  ;;  %1278 = vrot.lane.b32.xlu0 %v1212_v43, %s4254_s8  ;;  %v1216_v35 = vmul.f32 %v5019_v38, %v5061_v29  ;;  %v5071_v43 = vadd.f32 %v5003_v11, %v4760_v34  ;;  %v5093_v29 = vadd.f32 %v5003_v11, %v4800_v62 }
 0x112   : > { %6722 = vst [vmem:[#allocation71_spill] sm:$0xff] %v5071_v43  ;;  %6726 = vst [vmem:[#allocation75_spill] sm:$0xff] %v5093_v29 }
 0x114   : > { %1284 = vrot.lane.b32.xlu1 %v1215_v23, %s4254_s8  ;;  %1282 = vrot.lane.b32.xlu0 %v1214_v14, %s4254_s8  ;;  %v1219_v23 = vmul.f32 %v5019_v38, %v5071_v43  ;;  %v1218_v14 = vmul.f32 %v5019_v38, %v5075_v15  ;;  %v5103_v43 = vadd.f32 %v5003_v11, %v4803_v63 }
 0x115   : > { %v5107_v15 = vadd.f32 %v5003_v11, %v4820_v36 }
 0x116   : > { %6727 = vst [vmem:[#allocation76_spill] sm:$0xff] %v5103_v43 }
 0x117   : > { %6728 = vst [vmem:[#allocation77_spill] sm:$0xff] %v5107_v15 }
 0x118   : > { %1288 = vrot.lane.b32.xlu1 %v1217_v44, %s4254_s8  ;;  %1286 = vrot.lane.b32.xlu0 %v1216_v35, %s4254_s8  ;;  %v1221_v44 = vmul.f32 %v5019_v38, %v5079_v1  ;;  %v1220_v35 = vmul.f32 %v5019_v38, %v5089_v5  ;;  %v5117_v1 = vadd.f32 %v5003_v11, %v4823_v55 }
 0x119   : > { %v1225_v5 = vmul.f32 %v5019_v38, %v5107_v15  ;;  %v5145_v15 = vadd.f32 %v5003_v11, %v4863_v7 }
 0x11a   : > { %6729 = vst [vmem:[#allocation78_spill] sm:$0xff] %v5117_v1 }
 0x11b   : > { %6733 = vst [vmem:[#allocation82_spill] sm:$0xff] %v5145_v15 }
 0x11c   : > { %1292 = vrot.lane.b32.xlu1 %v1219_v23, %s4254_s8  ;;  %1290 = vrot.lane.b32.xlu0 %v1218_v14, %s4254_s8  ;;  %v1223_v23 = vmul.f32 %v5019_v38, %v5093_v29  ;;  %v1222_v14 = vmul.f32 %v5019_v38, %v5103_v43  ;;  %v5131_v29 = vadd.f32 %v5003_v11, %v4843_v52 }
 0x11d   : > { %v5135_v43 = vadd.f32 %v5003_v11, %v4860_v42 }
 0x11e   : > { %6731 = vst [vmem:[#allocation80_spill] sm:$0xff] %v5131_v29 }
 0x11f   : > { %6732 = vst [vmem:[#allocation81_spill] sm:$0xff] %v5135_v43 }
 0x120   : > { %1296 = vrot.lane.b32.xlu1 %v1221_v44, %s4254_s8  ;;  %1294 = vrot.lane.b32.xlu0 %v1220_v35, %s4254_s8  ;;  %v1224_v44 = vmul.f32 %v5019_v38, %v5117_v1  ;;  %v5127_v35 = vadd.f32 %v5003_v11, %v4840_v39  ;;  %v5149_v1 = vadd.f32 %v5003_v11, %v4880_v16 }
 0x122   : > { %6730 = vst [vmem:[#allocation79_spill] sm:$0xff] %v5127_v35  ;;  %6734 = vst [vmem:[#allocation83_spill] sm:$0xff] %v5149_v1 }
 0x124   : > { %1300 = vrot.lane.b32.xlu1 %v1223_v23, %s4254_s8  ;;  %1298 = vrot.lane.b32.xlu0 %v1222_v14, %s4254_s8  ;;  %v1227_v23 = vmul.f32 %v5019_v38, %v5127_v35  ;;  %v1226_v14 = vmul.f32 %v5019_v38, %v5131_v29  ;;  %v5159_v35 = vadd.f32 %v5003_v11, %v4883_v19 }
 0x125   : > { %v5163_v29 = vadd.f32 %v5003_v11, %v4900_v30 }
 0x126   : > { %6735 = vst [vmem:[#allocation84_spill] sm:$0xff] %v5159_v35 }
 0x127   : > { %6736 = vst [vmem:[#allocation85_spill] sm:$0xff] %v5163_v29 }
 0x128   : > { %1304 = vrot.lane.b32.xlu1 %v1225_v5, %s4254_s8  ;;  %1302 = vrot.lane.b32.xlu0 %v1224_v44, %s4254_s8  ;;  %v1229_v5 = vmul.f32 %v5019_v38, %v5135_v43  ;;  %v1228_v44 = vmul.f32 %v5019_v38, %v5145_v15  ;;  %v5173_v43 = vadd.f32 %v5003_v11, %v4903_v25 }
 0x129   : > { %v1233_v15 = vmul.f32 %v5019_v38, %v5163_v29  ;;  %v5201_v29 = vadd.f32 %v5003_v11, %v4943_v3 }
 0x12a   : > { %6737 = vst [vmem:[#allocation86_spill] sm:$0xff] %v5173_v43 }
 0x12b   : > { %6741 = vst [vmem:[#allocation90_spill] sm:$0xff] %v5201_v29 }
 0x12c   : > { %1308 = vrot.lane.b32.xlu1 %v1227_v23, %s4254_s8  ;;  %1306 = vrot.lane.b32.xlu0 %v1226_v14, %s4254_s8  ;;  %v1231_v23 = vmul.f32 %v5019_v38, %v5149_v1  ;;  %v1230_v14 = vmul.f32 %v5019_v38, %v5159_v35  ;;  %v5187_v1 = vadd.f32 %v5003_v11, %v4923_v60 }
 0x12d   : > { %v5191_v35 = vadd.f32 %v5003_v11, %v4940_v40 }
 0x12e   : > { %6739 = vst [vmem:[#allocation88_spill] sm:$0xff] %v5187_v1 }
 0x12f   : > { %6740 = vst [vmem:[#allocation89_spill] sm:$0xff] %v5191_v35 }
 0x130   : > { %1312 = vrot.lane.b32.xlu1 %v1229_v5, %s4254_s8  ;;  %1310 = vrot.lane.b32.xlu0 %v1228_v44, %s4254_s8  ;;  %v1232_v5 = vmul.f32 %v5019_v38, %v5173_v43  ;;  %v5183_v44 = vadd.f32 %v5003_v11, %v4920_v59  ;;  %v1237_v43 = vmul.f32 %v5019_v38, %v5191_v35 }
 0x131   : > { %v5221_v35 = vadd.f32 %v5003_v11, %v4984_v46 }
 0x132   : > { %6738 = vst [vmem:[#allocation87_spill] sm:$0xff] %v5183_v44 }
 0x133   : > { %6744 = vst [vmem:[#allocation93_spill] sm:$0xff] %v5221_v35 }
 0x134   : > { %1316 = vrot.lane.b32.xlu1 %v1231_v23, %s4254_s8  ;;  %1314 = vrot.lane.b32.xlu0 %v1230_v14, %s4254_s8  ;;  %v1235_v23 = vmul.f32 %v5019_v38, %v5183_v44  ;;  %v1234_v14 = vmul.f32 %v5019_v38, %v5187_v1  ;;  %v5215_v44 = vadd.f32 %v5003_v11, %v4964_v53 }
 0x136   : > { %6743 = vst [vmem:[#allocation92_spill] sm:$0xff] %v5215_v44 }
 0x138   : > { %1320 = vrot.lane.b32.xlu1 %v1233_v15, %s4254_s8  ;;  %1318 = vrot.lane.b32.xlu0 %v1232_v5, %s4254_s8  ;;  %v1236_v15 = vmul.f32 %v5019_v38, %v5201_v29  ;;  %v5211_v5 = vadd.f32 %v5003_v11, %v4961_v47  ;;  %v5231_v29 = vadd.f32 %v5003_v11, %v4987_v48 }
 0x13a   : > { %6742 = vst [vmem:[#allocation91_spill] sm:$0xff] %v5211_v5  ;;  %6745 = vst [vmem:[#allocation94_spill] sm:$0xff] %v5231_v29 }
 0x13c   : > { %1324 = vrot.lane.b32.xlu1 %v1235_v23, %s4254_s8  ;;  %1322 = vrot.lane.b32.xlu0 %v1234_v14, %s4254_s8  ;;  %v1239_v23 = vmul.f32 %v5019_v38, %v5211_v5  ;;  %v1238_v14 = vmul.f32 %v5019_v38, %v5215_v44 }
 0x13e   : > { %v5217_v1 = vpop.permute.xlu1 %1083  ;;  %v1080_v12 = vpop.permute.xlu0 %1079 }
 0x140   : > { %1328 = vrot.lane.b32.xlu1 %v1237_v43, %s4254_s8  ;;  %1326 = vrot.lane.b32.xlu0 %v1236_v15, %s4254_s8  ;;  %v1241_v43 = vmul.f32 %v5019_v38, %v5221_v35  ;;  %v1240_v15 = vmul.f32 %v5019_v38, %v5231_v29 }
 0x142   : > { %v1086_v54 = vpop.permute.xlu1 %1085  ;;  %v1082_v10 = vpop.permute.xlu0 %1081 }
 0x143   : > { %v1176_v9 = vadd.f32 %v1082_v10, %v981_v4  ;;  %v5346_v10 = vadd.f32 %v5287_v13, %v4743_v32 }
 0x144   : > { %1332 = vrot.lane.b32.xlu1 %v1239_v23, %s4254_s8  ;;  %1330 = vrot.lane.b32.xlu0 %v1238_v14, %s4254_s8 }
 0x146   : > { %v5239_v5 = vpop.permute.xlu1 %1089  ;;  %v5241_v41 = vpop.permute.xlu0 %1087 }
 0x148   : > { %1336 = vrot.lane.b32.xlu1 %v1241_v43, %s4254_s8  ;;  %1334 = vrot.lane.b32.xlu0 %v1240_v15, %s4254_s8 }
 0x14a   : > { %v5245_v11 = vpop.permute.xlu1 %1093  ;;  %v5247_v23 = vpop.permute.xlu0 %1091 }
 0x14e   : > { %v5249_v14 = vpop.permute.xlu1 %1097  ;;  %v5251_v44 = vpop.permute.xlu0 %1095 }
 0x152   : > { %v5253_v35 = vpop.permute.xlu1 %1101  ;;  %v5255_v38 = vpop.permute.xlu0 %1099 }
 0x156   : > { %v5257_v29 = vpop.permute.xlu1 %1105  ;;  %v5259_v6 = vpop.permute.xlu0 %1103 }
 0x15a   : > { %v5261_v43 = vpop.permute.xlu1 %1109  ;;  %v5263_v15 = vpop.permute.xlu0 %1107 }
 0x15e   : > { %v5265_v37 = vpop.permute.xlu1 %1113  ;;  %v5267_v2 = vpop.permute.xlu0 %1111 }
 0x162   : > { %v5269_v0 = vpop.permute.xlu1 %1117  ;;  %v5271_v18 = vpop.permute.xlu0 %1115 }
 0x166   : > { %v5273_v58 = vpop.permute.xlu1 %1121  ;;  %v5275_v61 = vpop.permute.xlu0 %1119 }
 0x16a   : > { %v5278_v49 = vpop.permute.xlu1 %1125  ;;  %v5280_v50 = vpop.permute.xlu0 %1123 }
 0x16b   : > { %6746 = vst [vmem:[#allocation95_spill] sm:$0xff] %v5280_v50 }
 0x16e   : > { %v5283_v45 = vpop.permute.xlu1 %1129  ;;  %v5285_v33 = vpop.permute.xlu0 %1127 }
 0x16f   : > { %6747 = vst [vmem:[#allocation96_spill] sm:$0xff] %v5283_v45  ;;  %6748 = vst [vmem:[#allocation97_spill] sm:$0xff] %v5285_v33  ;;  %v5309_v33 = vadd.f32 %v5287_v13, %v4684_v17  ;;  %v5329_v17 = vadd.f32 %v5287_v13, %v4719_v28  ;;  %v5341_v28 = vadd.f32 %v5287_v13, %v4740_v26 }
 0x170   : > { %v5352_v26 = vadd.f32 %v5287_v13, %v4760_v34 }
 0x171   : > { %6755 = vst [vmem:[#allocation104_spill] sm:$0xff] %v5309_v33  ;;  %v984_v50 = vmul.f32 %v5301_v24, %v5329_v17 }
 0x172   : > { %v5289_v31 = vpop.permute.xlu1 %1133  ;;  %v5291_v8 = vpop.permute.xlu0 %1131  ;;  %v989_v34 = vmul.f32 %v5301_v24, %v5352_v26 }
 0x173   : > { %6749 = vst [vmem:[#allocation98_spill] sm:$0xff] %v5289_v31  ;;  %6750 = vst [vmem:[#allocation99_spill] sm:$0xff] %v5291_v8  ;;  %v980_v8 = vmul.f32 %v5301_v24, %v5295_v22  ;;  %v982_v22 = vmul.f32 %v5301_v24, %v5309_v33 }
 0x175   : > { %v1175_v21 = vadd.f32 %v1080_v12, %v980_v8  ;;  %v1177_v8 = vadd.f32 %v5217_v1, %v982_v22  ;;  %v5356_v22 = vadd.f32 %v5287_v13, %v4763_v51  ;;  %v5366_v51 = vadd.f32 %v5287_v13, %v4780_v56 }
 0x176   : > { %v5303_v48 = vpop.permute.xlu1 %1137  ;;  %v5305_v46 = vpop.permute.xlu0 %1135 }
 0x177   : > { %6753 = vst [vmem:[#allocation102_spill] sm:$0xff] %v5303_v48  ;;  %6754 = vst [vmem:[#allocation103_spill] sm:$0xff] %v5305_v46  ;;  %v5325_v46 = vadd.f32 %v5287_v13, %v4712_v27  ;;  %v983_v48 = vmul.f32 %v5301_v24, %v5315_v20  ;;  %v991_v56 = vmul.f32 %v5301_v24, %v5366_v51 }
 0x179   : > { %v985_v27 = vmul.f32 %v5301_v24, %v5325_v46  ;;  %v1178_v12 = vadd.f32 %v1086_v54, %v983_v48  ;;  %v1179_v54 = vadd.f32 %v5241_v41, %v984_v50 }
 0x17a   : > { %v5319_v31 = vpop.permute.xlu1 %1141  ;;  %v5321_v45 = vpop.permute.xlu0 %1139 }
 0x17b   : > { %6757 = vst [vmem:[#allocation106_spill] sm:$0xff] %v5319_v31  ;;  %6758 = vst [vmem:[#allocation107_spill] sm:$0xff] %v5321_v45  ;;  %v1180_v32 = vadd.f32 %v5239_v5, %v985_v27  ;;  %v5370_v5 = vadd.f32 %v5287_v13, %v4783_v57  ;;  %v988_v27 = vmul.f32 %v5301_v24, %v5356_v22 }
 0x17c   : > { %v5380_v57 = vadd.f32 %v5287_v13, %v4800_v62 }
 0x17e   : > { %v1277_v53 = vpop.permute.xlu1 %1276  ;;  %v1275_v31 = vpop.permute.xlu0 %1274  ;;  %v993_v62 = vmul.f32 %v5301_v24, %v5380_v57 }
 0x17f   : > { %v1371_v47 = vadd.f32 %v1277_v53, %v1176_v9  ;;  %v1370_v45 = vadd.f32 %v1275_v31, %v1175_v21  ;;  %v987_v21 = vmul.f32 %v5301_v24, %v5341_v28 }
 0x181   : > { %1409 = vperm.xlu1 %4070, %v1371_v47   ;;  %1404 = vperm.xlu0 %4069, %v1370_v45   ;;  %v986_v45 = vmul.f32 %v5301_v24, %v5346_v10  ;;  %v1182_v50 = vadd.f32 %v5245_v11, %v987_v21  ;;  %v5384_v11 = vadd.f32 %v5287_v13, %v4803_v63 }
 0x182   : > { %v1281_v9 = vpop.permute.xlu1 %1280  ;;  %v1279_v31 = vpop.permute.xlu0 %1278  ;;  %v990_v21 = vmul.f32 %v5301_v24, %v5370_v5 }
 0x183   : > { %v1373_v53 = vadd.f32 %v1281_v9, %v1178_v12  ;;  %v1372_v4 = vadd.f32 %v1279_v31, %v1177_v8  ;;  %v1181_v41 = vadd.f32 %v5247_v23, %v986_v45  ;;  %v1184_v23 = vadd.f32 %v5249_v14, %v989_v34 }
 0x184   : > { %v992_v63 = vmul.f32 %v5301_v24, %v5384_v11  ;;  %v5396_v14 = vadd.f32 %v5287_v13, %v4820_v36  ;;  %v5408_v36 = vadd.f32 %v5287_v13, %v4840_v39 }
 0x185   : > { %1414 = vperm.xlu1 %4070, %v1372_v4   ;;  %1419 = vperm.xlu0 %4069, %v1373_v53   ;;  %v1183_v4 = vadd.f32 %v5251_v44, %v988_v27  ;;  %v1186_v44 = vadd.f32 %v5253_v35, %v991_v56  ;;  %v5412_v35 = vadd.f32 %v5287_v13, %v4843_v52 }
 0x186   : > { %v1285_v48 = vpop.permute.xlu1 %1284  ;;  %v1283_v47 = vpop.permute.xlu0 %1282  ;;  %v995_v27 = vmul.f32 %v5301_v24, %v5396_v14  ;;  %v997_v39 = vmul.f32 %v5301_v24, %v5408_v36  ;;  %v5422_v52 = vadd.f32 %v5287_v13, %v4860_v42 }
 0x187   : > { %v1375_v1 = vadd.f32 %v1285_v48, %v1180_v32  ;;  %v1374_v8 = vadd.f32 %v1283_v47, %v1179_v54  ;;  %v1185_v47 = vadd.f32 %v5255_v38, %v990_v21  ;;  %v1187_v38 = vadd.f32 %v5259_v6, %v992_v63 }
 0x188   : > { %v1190_v6 = vadd.f32 %v5261_v43, %v995_v27  ;;  %v999_v42 = vmul.f32 %v5301_v24, %v5422_v52  ;;  %v5440_v43 = vadd.f32 %v5287_v13, %v4883_v19 }
 0x189   : > { %1424 = vperm.xlu1 %4070, %v1374_v8   ;;  %1429 = vperm.xlu0 %4069, %v1375_v1   ;;  %v5402_v1 = vadd.f32 %v5287_v13, %v4823_v55  ;;  %v1188_v55 = vadd.f32 %v5257_v29, %v993_v62  ;;  %v5426_v29 = vadd.f32 %v5287_v13, %v4863_v7 }
 0x18a   : > { %v1289_v12 = vpop.permute.xlu1 %1288  ;;  %v1287_v9 = vpop.permute.xlu0 %1286  ;;  %v5436_v7 = vadd.f32 %v5287_v13, %v4880_v16  ;;  %v1000_v19 = vmul.f32 %v5301_v24, %v5440_v43 }
 0x18b   : > { %v1377_v31 = vadd.f32 %v1289_v12, %v1182_v50  ;;  %v1376_v53 = vadd.f32 %v1287_v9, %v1181_v41  ;;  %v994_v12 = vmul.f32 %v5301_v24, %v5402_v1  ;;  %v998_v62 = vmul.f32 %v5301_v24, %v5426_v29 }
 0x18c   : > { %v1001_v16 = vmul.f32 %v5301_v24, %v5436_v7 }
 0x18d   : > { %1434 = vperm.xlu1 %4070, %v1376_v53   ;;  %1439 = vperm.xlu0 %4069, %v1377_v31  }
 0x18e   : > { %v1293_v32 = vpop.permute.xlu1 %1292  ;;  %v1291_v54 = vpop.permute.xlu0 %1290 }
 0x18f   : > { %v1379_v45 = vadd.f32 %v1293_v32, %v1184_v23  ;;  %v1378_v48 = vadd.f32 %v1291_v54, %v1183_v4  ;;  %v1189_v23 = vadd.f32 %v5263_v15, %v994_v12  ;;  %v996_v4 = vmul.f32 %v5301_v24, %v5412_v35 }
 0x190   : > { %v1192_v15 = vadd.f32 %v5265_v37, %v997_v39  ;;  %v5452_v37 = vadd.f32 %v5287_v13, %v4900_v30  ;;  %v5464_v30 = vadd.f32 %v5287_v13, %v4920_v59 }
 0x191   : > { %1444 = vperm.xlu1 %4070, %v1378_v48   ;;  %1449 = vperm.xlu0 %4069, %v1379_v45   ;;  %v1191_v48 = vadd.f32 %v5267_v2, %v996_v4  ;;  %v1194_v2 = vadd.f32 %v5269_v0, %v999_v42  ;;  %v5468_v0 = vadd.f32 %v5287_v13, %v4923_v60  ;;  %v6762_v42 = vld [vmem:[#allocation55_spill] sm:$0xff] }
 0x192   : > { %v1297_v8 = vpop.permute.xlu1 %1296  ;;  %v1295_v34 = vpop.permute.xlu0 %1294  ;;  %v1003_v12 = vmul.f32 %v5301_v24, %v5452_v37  ;;  %v1005_v59 = vmul.f32 %v5301_v24, %v5464_v30  ;;  %v5478_v60 = vadd.f32 %v5287_v13, %v4940_v40 }
 0x193   : > { %v1381_v50 = vadd.f32 %v1297_v8, %v1186_v44  ;;  %v1380_v41 = vadd.f32 %v1295_v34, %v1185_v47  ;;  %v1193_v34 = vadd.f32 %v5271_v18, %v998_v62  ;;  %v1196_v18 = vadd.f32 %v5273_v58, %v1001_v16 }
 0x194   : > { %6759 = vst [vmem:[#allocation108_spill] sm:$0xff] %v5478_v60  ;;  %v5482_v58 = vadd.f32 %v5287_v13, %v4943_v3  ;;  %v1004_v4 = vmul.f32 %v5301_v24, %v5468_v0  ;;  %v1007_v40 = vmul.f32 %v5301_v24, %v5478_v60  ;;  %v5492_v3 = vadd.f32 %v5287_v13, %v6762_v42  ;;  %v6776_v42 = vld [vmem:[#allocation106_spill] sm:$0xff] }
 0x195   : > { %1454 = vperm.xlu1 %4070, %v1380_v41   ;;  %1459 = vperm.xlu0 %4069, %v1381_v50   ;;  %v5458_v50 = vadd.f32 %v5287_v13, %v4903_v25  ;;  %v1195_v25 = vadd.f32 %v5275_v61, %v1000_v19  ;;  %v1198_v61 = vadd.f32 %v5278_v49, %v1003_v12  ;;  %v6764_v49 = vld [vmem:[#allocation56_spill] sm:$0xff] }
 0x196   : > { %v1301_v9 = vpop.permute.xlu1 %1300  ;;  %v1299_v31 = vpop.permute.xlu0 %1298  ;;  %6760 = vst [vmem:[#allocation109_spill] sm:$0xff] %v5482_v58 }
 0x197   : > { %v1383_v53 = vadd.f32 %v1301_v9, %v1188_v55  ;;  %v1382_v56 = vadd.f32 %v1299_v31, %v1187_v38  ;;  %v1002_v9 = vmul.f32 %v5301_v24, %v5458_v50 }
 0x199   : > { %1464 = vperm.xlu1 %4070, %v1382_v56   ;;  %1469 = vperm.xlu0 %4069, %v1383_v53  }
 0x19a   : > { %v1305_v21 = vpop.permute.xlu1 %1304  ;;  %v1303_v32 = vpop.permute.xlu0 %1302 }
 0x19b   : > { %v1385_v54 = vadd.f32 %v1305_v21, %v1190_v6  ;;  %v1384_v45 = vadd.f32 %v1303_v32, %v1189_v23  ;;  %v6761_v6 = vld [vmem:[#allocation95_spill] sm:$0xff] }
 0x19c   : > { %v1197_v23 = vadd.f32 %v6761_v6, %v1002_v9  ;;  %6763 = vst [vmem:[#allocation95_spill] sm:$0xff] %v5492_v3  ;;  %v6772_v9 = vld [vmem:[#allocation60_spill] sm:$0xff]  ;;  %v6774_v6 = vld [vmem:[#allocation102_spill] sm:$0xff] }
 0x19d   : > { %1474 = vperm.xlu1 %4070, %v1384_v45   ;;  %1479 = vperm.xlu0 %4069, %v1385_v54  }
 0x19e   : > { %v1309_v63 = vpop.permute.xlu1 %1308  ;;  %v1307_v44 = vpop.permute.xlu0 %1306 }
 0x19f   : > { %v1387_v47 = vadd.f32 %v1309_v63, %v1192_v15  ;;  %v1386_v8 = vadd.f32 %v1307_v44, %v1191_v48  ;;  %v5496_v15 = vadd.f32 %v5287_v13, %v6764_v49  ;;  %v6766_v48 = vld [vmem:[#allocation96_spill] sm:$0xff]  ;;  %v6767_v63 = vld [vmem:[#allocation97_spill] sm:$0xff] }
 0x1a0   : > { %v1200_v62 = vadd.f32 %v6766_v48, %v1005_v59  ;;  %v1199_v44 = vadd.f32 %v6767_v63, %v1004_v4  ;;  %v6775_v4 = vld [vmem:[#allocation103_spill] sm:$0xff] }
 0x1a1   : > { %1484 = vperm.xlu1 %4070, %v1386_v8   ;;  %1489 = vperm.xlu0 %4069, %v1387_v47   ;;  %6765 = vst [vmem:[#allocation55_spill] sm:$0xff] %v5496_v15  ;;  %v1006_v47 = vmul.f32 %v5301_v24, %v5482_v58  ;;  %v6777_v48 = vld [vmem:[#allocation107_spill] sm:$0xff] }
 0x1a2   : > { %v1313_v41 = vpop.permute.xlu1 %1312  ;;  %v1311_v27 = vpop.permute.xlu0 %1310 }
 0x1a3   : > { %v1389_v55 = vadd.f32 %v1313_v41, %v1194_v2  ;;  %v1388_v38 = vadd.f32 %v1311_v27, %v1193_v34  ;;  %v1009_v34 = vmul.f32 %v5301_v24, %v5492_v3  ;;  %v1008_v41 = vmul.f32 %v5301_v24, %v5496_v15  ;;  %v6768_v27 = vld [vmem:[#allocation59_spill] sm:$0xff] }
 0x1a5   : > { %1494 = vperm.xlu1 %4070, %v1388_v38   ;;  %1499 = vperm.xlu0 %4069, %v1389_v55   ;;  %v5509_v55 = vadd.f32 %v5287_v13, %v6768_v27  ;;  %v6770_v38 = vld [vmem:[#allocation98_spill] sm:$0xff] }
 0x1a6   : > { %v1317_v31 = vpop.permute.xlu1 %1316  ;;  %v1315_v53 = vpop.permute.xlu0 %1314  ;;  %v1202_v12 = vadd.f32 %v6770_v38, %v1007_v40  ;;  %v6781_v38 = vld [vmem:[#allocation29_spill] sm:$0xff] }
 0x1a7   : > { %v1391_v56 = vadd.f32 %v1317_v31, %v1196_v18  ;;  %v1390_v39 = vadd.f32 %v1315_v53, %v1195_v25  ;;  %6769 = vst [vmem:[#allocation56_spill] sm:$0xff] %v5509_v55  ;;  %v6771_v18 = vld [vmem:[#allocation99_spill] sm:$0xff]  ;;  %v5515_v31 = vadd.f32 %v5287_v13, %v6772_v9 }
 0x1a8   : > { %v1201_v25 = vadd.f32 %v6771_v18, %v1006_v47  ;;  %v5525_v47 = vstv %s1629_s1  ;;  %v6782_v18 = vld [vmem:[#allocation32_spill] sm:$0xff]  ;;  %v6783_v9 = vld [vmem:[#allocation31_spill] sm:$0xff] }
 0x1a9   : > { %1504 = vperm.xlu1 %4070, %v1390_v39   ;;  %1509 = vperm.xlu0 %4069, %v1391_v56   ;;  %6773 = vst [vmem:[#allocation96_spill] sm:$0xff] %v5515_v31 }
 0x1aa   : > { %v1321_v21 = vpop.permute.xlu1 %1320  ;;  %v1319_v32 = vpop.permute.xlu0 %1318 }
 0x1ab   : > { %v1393_v54 = vadd.f32 %v1321_v21, %v1198_v61  ;;  %v1392_v45 = vadd.f32 %v1319_v32, %v1197_v23  ;;  %v1011_v61 = vmul.f32 %v5301_v24, %v5509_v55  ;;  %v1204_v23 = vadd.f32 %v6774_v6, %v1009_v34  ;;  %v6786_v6 = vld [vmem:[#allocation36_spill] sm:$0xff] }
 0x1ac   : > { %v1203_v21 = vadd.f32 %v6775_v4, %v1008_v41  ;;  %v1010_v32 = vmul.f32 %v5301_v24, %v5515_v31  ;;  %v6778_v24 = vld [vmem:[#allocation28_spill] sm:$0xff]  ;;  %v6780_v41 = vld [vmem:[#allocation27_spill] sm:$0xff] }
 0x1ad   : > { %1514 = vperm.xlu1 %4070, %v1392_v45   ;;  %1519 = vperm.xlu0 %4069, %v1393_v54   ;;  %v1206_v49 = vadd.f32 %v6776_v42, %v1011_v61  ;;  %v1633_v27 = vmul.f32 %v5525_v47, %v6780_v41  ;;  %v6787_v4 = vld [vmem:[#allocation35_spill] sm:$0xff]  ;;  %v6848_v41 = vld [vmem:[#allocation100_spill] sm:$0xff] }
 0x1ae   : > { %v1325_v8 = vpop.permute.xlu1 %1324  ;;  %v1323_v16 = vpop.permute.xlu0 %1322 }
 0x1af   : > { %v1395_v19 = vadd.f32 %v1325_v8, %v1200_v62  ;;  %v1394_v2 = vadd.f32 %v1323_v16, %v1199_v44  ;;  %v1205_v62 = vadd.f32 %v6777_v48, %v1010_v32  ;;  %v6788_v32 = vld [vmem:[#allocation38_spill] sm:$0xff] }
 0x1b1   : > { %1524 = vperm.xlu1 %4070, %v1394_v2   ;;  %1529 = vperm.xlu0 %4069, %v1395_v19   ;;  %v1631_v19 = vmul.f32 %v5525_v47, %v6778_v24  ;;  %v6779_v2 = vld [vmem:[#allocation30_spill] sm:$0xff]  ;;  %v6849_v24 = vld [vmem:[#allocation101_spill] sm:$0xff] }
 0x1b2   : > { %v1329_v53 = vpop.permute.xlu1 %1328  ;;  %v1327_v56 = vpop.permute.xlu0 %1326  ;;  %v1632_v34 = vmul.f32 %v5525_v47, %v6779_v2 }
 0x1b3   : > { %v1397_v39 = vadd.f32 %v1329_v53, %v1202_v12  ;;  %v1396_v59 = vadd.f32 %v1327_v56, %v1201_v25  ;;  %v1634_v12 = vmul.f32 %v5525_v47, %v6781_v38  ;;  %v1635_v25 = vmul.f32 %v5525_v47, %v6782_v18  ;;  %v6784_v56 = vld [vmem:[#allocation34_spill] sm:$0xff] }
 0x1b4   : > { %v1636_v53 = vmul.f32 %v5525_v47, %v6783_v9  ;;  %v5764_v9 = vstv %s1594_s13 }
 0x1b5   : > { %1534 = vperm.xlu1 %4070, %v1396_v59   ;;  %1539 = vperm.xlu0 %4069, %v1397_v39   ;;  %v1637_v39 = vmul.f32 %v5525_v47, %v6784_v56  ;;  %v6785_v59 = vld [vmem:[#allocation33_spill] sm:$0xff]  ;;  %v1596_v2 = vmul.f32 %v5764_v9, %v6848_v41  ;;  %v1597_v55 = vmul.f32 %v5764_v9, %v6849_v24 }
 0x1b6   : > { %v1333_v13 = vpop.permute.xlu1 %1332  ;;  %v1331_v54 = vpop.permute.xlu0 %1330  ;;  %v1638_v61 = vmul.f32 %v5525_v47, %v6785_v59  ;;  %v1600_v41 = vmul.f32 %v5764_v9, %v5329_v17 }
 0x1b7   : > { %v1399_v45 = vadd.f32 %v1333_v13, %v1204_v23  ;;  %v1398_v40 = vadd.f32 %v1331_v54, %v1203_v21  ;;  %v1639_v23 = vmul.f32 %v5525_v47, %v6786_v6  ;;  %v1640_v21 = vmul.f32 %v5525_v47, %v6787_v4  ;;  %v6789_v54 = vld [vmem:[#allocation37_spill] sm:$0xff] }
 0x1b8   : > { %v1641_v13 = vmul.f32 %v5525_v47, %v6788_v32 }
 0x1b9   : > { %1544 = vperm.xlu1 %4070, %v1398_v40   ;;  %1549 = vperm.xlu0 %4069, %v1399_v45   ;;  %v1642_v45 = vmul.f32 %v5525_v47, %v6789_v54  ;;  %v6790_v40 = vld [vmem:[#allocation40_spill] sm:$0xff] }
 0x1ba   : > { %v1337_v63 = vpop.permute.xlu1 %1336  ;;  %v1335_v44 = vpop.permute.xlu0 %1334  ;;  %v1643_v42 = vmul.f32 %v5525_v47, %v6790_v40 }
 0x1bb   : > { %v1401_v8 = vadd.f32 %v1337_v63, %v1206_v49  ;;  %v1400_v16 = vadd.f32 %v1335_v44, %v1205_v62  ;;  %v6791_v49 = vld [vmem:[#allocation39_spill] sm:$0xff]  ;;  %v6792_v62 = vld [vmem:[#allocation42_spill] sm:$0xff]  ;;  %v6793_v44 = vld [vmem:[#allocation41_spill] sm:$0xff] }
 0x1bc   : > { %v1644_v48 = vmul.f32 %v5525_v47, %v6791_v49  ;;  %v1645_v63 = vmul.f32 %v5525_v47, %v6792_v62 }
 0x1bd   : > { %1554 = vperm.xlu1 %4070, %v1400_v16   ;;  %1559 = vperm.xlu0 %4069, %v1401_v8   ;;  %v1646_v8 = vmul.f32 %v5525_v47, %v6793_v44  ;;  %v6794_v16 = vld [vmem:[#allocation44_spill] sm:$0xff] }
 0x1c1   : > { %1695 = vrot.lane.b32.xlu1 %v1631_v19, %s4252_s25  ;;  %1697 = vrot.lane.b32.xlu0 %v1632_v34, %s4252_s25  ;;  %v1647_v19 = vmul.f32 %v5525_v47, %v6794_v16  ;;  %v6795_v34 = vld [vmem:[#allocation43_spill] sm:$0xff] }
 0x1c5   : > { %1699 = vrot.lane.b32.xlu1 %v1633_v27, %s4252_s25  ;;  %1701 = vrot.lane.b32.xlu0 %v1634_v12, %s4252_s25  ;;  %v1648_v27 = vmul.f32 %v5525_v47, %v6795_v34  ;;  %v6796_v12 = vld [vmem:[#allocation46_spill] sm:$0xff] }
 0x1c9   : > { %1703 = vrot.lane.b32.xlu1 %v1635_v25, %s4252_s25  ;;  %1705 = vrot.lane.b32.xlu0 %v1636_v53, %s4252_s25  ;;  %v1649_v25 = vmul.f32 %v5525_v47, %v6796_v12  ;;  %v6797_v53 = vld [vmem:[#allocation45_spill] sm:$0xff] }
 0x1cd   : > { %1707 = vrot.lane.b32.xlu1 %v1637_v39, %s4252_s25  ;;  %1709 = vrot.lane.b32.xlu0 %v1638_v61, %s4252_s25  ;;  %v1650_v39 = vmul.f32 %v5525_v47, %v6797_v53  ;;  %v6798_v61 = vld [vmem:[#allocation48_spill] sm:$0xff] }
 0x1d1   : > { %1711 = vrot.lane.b32.xlu1 %v1639_v23, %s4252_s25  ;;  %1713 = vrot.lane.b32.xlu0 %v1640_v21, %s4252_s25  ;;  %v1651_v23 = vmul.f32 %v5525_v47, %v6798_v61  ;;  %v6799_v21 = vld [vmem:[#allocation47_spill] sm:$0xff] }
 0x1d5   : > { %1715 = vrot.lane.b32.xlu1 %v1641_v13, %s4252_s25  ;;  %1717 = vrot.lane.b32.xlu0 %v1642_v45, %s4252_s25  ;;  %v1652_v13 = vmul.f32 %v5525_v47, %v6799_v21  ;;  %v6800_v45 = vld [vmem:[#allocation50_spill] sm:$0xff] }
 0x1d9   : > { %1719 = vrot.lane.b32.xlu1 %v1643_v42, %s4252_s25  ;;  %1721 = vrot.lane.b32.xlu0 %v1644_v48, %s4252_s25  ;;  %v1653_v42 = vmul.f32 %v5525_v47, %v6800_v45  ;;  %v6801_v48 = vld [vmem:[#allocation49_spill] sm:$0xff]  ;;  %v5622_v45 = vstv %s1824_s9 }
 0x1dd   : > { %1723 = vrot.lane.b32.xlu1 %v1645_v63, %s4252_s25  ;;  %1725 = vrot.lane.b32.xlu0 %v1646_v8, %s4252_s25  ;;  %v1654_v63 = vmul.f32 %v5525_v47, %v6801_v48  ;;  %v6802_v8 = vld [vmem:[#allocation52_spill] sm:$0xff] }
 0x1e1   : > { %1727 = vrot.lane.b32.xlu1 %v1647_v19, %s4252_s25  ;;  %1729 = vrot.lane.b32.xlu0 %v1648_v27, %s4252_s25  ;;  %v1655_v19 = vmul.f32 %v5525_v47, %v6802_v8  ;;  %v6803_v27 = vld [vmem:[#allocation51_spill] sm:$0xff] }
 0x1e5   : > { %1731 = vrot.lane.b32.xlu1 %v1649_v25, %s4252_s25  ;;  %1733 = vrot.lane.b32.xlu0 %v1650_v39, %s4252_s25  ;;  %v1656_v25 = vmul.f32 %v5525_v47, %v6803_v27  ;;  %v6804_v39 = vld [vmem:[#allocation54_spill] sm:$0xff]  ;;  %v6807_v27 = vld [vmem:[#allocation57_spill] sm:$0xff] }
 0x1e6   : > { %v1660_v8 = vmul.f32 %v5525_v47, %v6807_v27  ;;  %v6810_v27 = vld [vmem:[#allocation64_spill] sm:$0xff] }
 0x1e9   : > { %1735 = vrot.lane.b32.xlu1 %v1651_v23, %s4252_s25  ;;  %1737 = vrot.lane.b32.xlu0 %v1652_v13, %s4252_s25  ;;  %v1657_v23 = vmul.f32 %v5525_v47, %v6804_v39  ;;  %v6805_v13 = vld [vmem:[#allocation53_spill] sm:$0xff] }
 0x1ea   : > { %v1658_v48 = vmul.f32 %v5525_v47, %v6805_v13  ;;  %v6809_v39 = vld [vmem:[#allocation61_spill] sm:$0xff] }
 0x1eb   : > { %v1662_v13 = vmul.f32 %v5525_v47, %v6809_v39 }
 0x1ed   : > { %1739 = vrot.lane.b32.xlu1 %v1653_v42, %s4252_s25  ;;  %1741 = vrot.lane.b32.xlu0 %v1654_v63, %s4252_s25  ;;  %v6806_v42 = vld [vmem:[#allocation58_spill] sm:$0xff] }
 0x1ee   : > { %v1659_v63 = vmul.f32 %v5525_v47, %v6806_v42 }
 0x1f1   : > { %1743 = vrot.lane.b32.xlu1 %v1655_v19, %s4252_s25  ;;  %1745 = vrot.lane.b32.xlu0 %v1656_v25, %s4252_s25  ;;  %v6808_v19 = vld [vmem:[#allocation62_spill] sm:$0xff] }
 0x1f2   : > { %v1661_v25 = vmul.f32 %v5525_v47, %v6808_v19  ;;  %v6812_v47 = vld [vmem:[#allocation66_spill] sm:$0xff] }
 0x1f5   : > { %1747 = vrot.lane.b32.xlu1 %v1657_v23, %s4252_s25  ;;  %1749 = vrot.lane.b32.xlu0 %v1658_v48, %s4252_s25 }
 0x1f9   : > { %1751 = vrot.lane.b32.xlu1 %v1659_v63, %s4252_s25  ;;  %1753 = vrot.lane.b32.xlu0 %v1660_v8, %s4252_s25  ;;  %v1826_v63 = vmul.f32 %v5622_v45, %v6810_v27  ;;  %v6811_v8 = vld [vmem:[#allocation63_spill] sm:$0xff] }
 0x1fa   : > { %v1827_v42 = vmul.f32 %v5622_v45, %v6811_v8 }
 0x1fc   : > { %v1410_v23 = vpop.permute.xlu1 %1409  ;;  %v1405_v48 = vpop.permute.xlu0 %1404 }
 0x1fd   : > { %1563 = vst [vmem:[#allocation3] sm:$0xff] %v1410_v23  ;;  %1562 = vst [vmem:[#allocation3 + $0xb0] sm:$0xff] %v1405_v48  ;;  %1755 = vrot.lane.b32.xlu1 %v1661_v25, %s4252_s25  ;;  %1757 = vrot.lane.b32.xlu0 %v1662_v13, %s4252_s25  ;;  %v1828_v23 = vmul.f32 %v5622_v45, %v6812_v47  ;;  %v6813_v25 = vld [vmem:[#allocation65_spill] sm:$0xff] }
 0x1fe   : > { %v1829_v13 = vmul.f32 %v5622_v45, %v6813_v25 }
 0x200   : > { %v1415_v19 = vpop.permute.xlu1 %1414  ;;  %v1420_v21 = vpop.permute.xlu0 %1419 }
 0x201   : > { %1564 = vst [vmem:[#allocation3 + $0xd8] sm:$0xff] %v1415_v19  ;;  %1565 = vst [vmem:[#allocation3 + $0x18] sm:$0xff] %v1420_v21  ;;  %1890 = vrot.lane.b32.xlu1 %v1826_v63, %s4254_s8  ;;  %1892 = vrot.lane.b32.xlu0 %v1827_v42, %s4254_s8  ;;  %v6814_v19 = vld [vmem:[#allocation68_spill] sm:$0xff]  ;;  %v6815_v63 = vld [vmem:[#allocation67_spill] sm:$0xff] }
 0x202   : > { %v1830_v21 = vmul.f32 %v5622_v45, %v6814_v19  ;;  %v1831_v42 = vmul.f32 %v5622_v45, %v6815_v63 }
 0x204   : > { %v1425_v48 = vpop.permute.xlu1 %1424  ;;  %v1430_v39 = vpop.permute.xlu0 %1429 }
 0x205   : > { %1566 = vst [vmem:[#allocation3 + $0x50] sm:$0xff] %v1425_v48  ;;  %1567 = vst [vmem:[#allocation3 + $0x68] sm:$0xff] %v1430_v39  ;;  %1894 = vrot.lane.b32.xlu1 %v1828_v23, %s4254_s8  ;;  %1896 = vrot.lane.b32.xlu0 %v1829_v13, %s4254_s8  ;;  %v6816_v48 = vld [vmem:[#allocation70_spill] sm:$0xff]  ;;  %v6817_v23 = vld [vmem:[#allocation69_spill] sm:$0xff] }
 0x206   : > { %v1832_v39 = vmul.f32 %v5622_v45, %v6816_v48  ;;  %v1833_v13 = vmul.f32 %v5622_v45, %v6817_v23 }
 0x208   : > { %v1435_v8 = vpop.permute.xlu1 %1434  ;;  %v1440_v27 = vpop.permute.xlu0 %1439 }
 0x209   : > { %1568 = vst [vmem:[#allocation3 + $0x30] sm:$0xff] %v1435_v8  ;;  %1569 = vst [vmem:[#allocation3 + $0x48] sm:$0xff] %v1440_v27  ;;  %1898 = vrot.lane.b32.xlu1 %v1830_v21, %s4254_s8  ;;  %1900 = vrot.lane.b32.xlu0 %v1831_v42, %s4254_s8  ;;  %v6818_v8 = vld [vmem:[#allocation72_spill] sm:$0xff]  ;;  %v6819_v21 = vld [vmem:[#allocation71_spill] sm:$0xff] }
 0x20a   : > { %v1834_v27 = vmul.f32 %v5622_v45, %v6818_v8  ;;  %v1835_v42 = vmul.f32 %v5622_v45, %v6819_v21 }
 0x20c   : > { %v1445_v25 = vpop.permute.xlu1 %1444  ;;  %v1450_v47 = vpop.permute.xlu0 %1449 }
 0x20d   : > { %1570 = vst [vmem:[#allocation3 + $0x80] sm:$0xff] %v1445_v25  ;;  %1571 = vst [vmem:[#allocation3 + $0x88] sm:$0xff] %v1450_v47  ;;  %1902 = vrot.lane.b32.xlu1 %v1832_v39, %s4254_s8  ;;  %1904 = vrot.lane.b32.xlu0 %v1833_v13, %s4254_s8  ;;  %v6820_v25 = vld [vmem:[#allocation74_spill] sm:$0xff]  ;;  %v6821_v39 = vld [vmem:[#allocation73_spill] sm:$0xff] }
 0x20e   : > { %v1836_v47 = vmul.f32 %v5622_v45, %v6820_v25  ;;  %v1837_v13 = vmul.f32 %v5622_v45, %v6821_v39 }
 0x210   : > { %v1455_v63 = vpop.permute.xlu1 %1454  ;;  %v1460_v19 = vpop.permute.xlu0 %1459 }
 0x211   : > { %1572 = vst [vmem:[#allocation3 + $0xe8] sm:$0xff] %v1455_v63  ;;  %1573 = vst [vmem:[#allocation3 + $0xb8] sm:$0xff] %v1460_v19  ;;  %1906 = vrot.lane.b32.xlu1 %v1834_v27, %s4254_s8  ;;  %1908 = vrot.lane.b32.xlu0 %v1835_v42, %s4254_s8  ;;  %v6822_v63 = vld [vmem:[#allocation76_spill] sm:$0xff]  ;;  %v6823_v27 = vld [vmem:[#allocation75_spill] sm:$0xff] }
 0x212   : > { %v1838_v19 = vmul.f32 %v5622_v45, %v6822_v63  ;;  %v1839_v42 = vmul.f32 %v5622_v45, %v6823_v27 }
 0x214   : > { %v1465_v23 = vpop.permute.xlu1 %1464  ;;  %v1470_v48 = vpop.permute.xlu0 %1469 }
 0x215   : > { %1574 = vst [vmem:[#allocation3 + $0x60] sm:$0xff] %v1465_v23  ;;  %1575 = vst [vmem:[#allocation3 + $0xf0] sm:$0xff] %v1470_v48  ;;  %1910 = vrot.lane.b32.xlu1 %v1836_v47, %s4254_s8  ;;  %1912 = vrot.lane.b32.xlu0 %v1837_v13, %s4254_s8  ;;  %v6824_v23 = vld [vmem:[#allocation78_spill] sm:$0xff]  ;;  %v6825_v47 = vld [vmem:[#allocation77_spill] sm:$0xff] }
 0x216   : > { %v1840_v48 = vmul.f32 %v5622_v45, %v6824_v23  ;;  %v1841_v13 = vmul.f32 %v5622_v45, %v6825_v47 }
 0x218   : > { %v1475_v21 = vpop.permute.xlu1 %1474  ;;  %v1480_v8 = vpop.permute.xlu0 %1479 }
 0x219   : > { %1576 = vst [vmem:[#allocation3 + $0x8] sm:$0xff] %v1475_v21  ;;  %1577 = vst [vmem:[#allocation3 + $0x78] sm:$0xff] %v1480_v8  ;;  %1914 = vrot.lane.b32.xlu1 %v1838_v19, %s4254_s8  ;;  %1916 = vrot.lane.b32.xlu0 %v1839_v42, %s4254_s8  ;;  %v6826_v21 = vld [vmem:[#allocation80_spill] sm:$0xff]  ;;  %v6827_v19 = vld [vmem:[#allocation79_spill] sm:$0xff] }
 0x21a   : > { %v1842_v8 = vmul.f32 %v5622_v45, %v6826_v21  ;;  %v1843_v42 = vmul.f32 %v5622_v45, %v6827_v19 }
 0x21c   : > { %v1485_v39 = vpop.permute.xlu1 %1484  ;;  %v1490_v25 = vpop.permute.xlu0 %1489 }
 0x21d   : > { %1578 = vst [vmem:[#allocation3 + $0x38] sm:$0xff] %v1485_v39  ;;  %1579 = vst [vmem:[#allocation3 + $0x58] sm:$0xff] %v1490_v25  ;;  %1918 = vrot.lane.b32.xlu1 %v1840_v48, %s4254_s8  ;;  %1920 = vrot.lane.b32.xlu0 %v1841_v13, %s4254_s8  ;;  %v6828_v39 = vld [vmem:[#allocation82_spill] sm:$0xff]  ;;  %v6829_v48 = vld [vmem:[#allocation81_spill] sm:$0xff] }
 0x21e   : > { %v1844_v25 = vmul.f32 %v5622_v45, %v6828_v39  ;;  %v1845_v13 = vmul.f32 %v5622_v45, %v6829_v48 }
 0x220   : > { %v1495_v27 = vpop.permute.xlu1 %1494  ;;  %v1500_v63 = vpop.permute.xlu0 %1499 }
 0x221   : > { %1580 = vst [vmem:[#allocation3 + $0x40] sm:$0xff] %v1495_v27  ;;  %1581 = vst [vmem:[#allocation3 + $0xc8] sm:$0xff] %v1500_v63  ;;  %1922 = vrot.lane.b32.xlu1 %v1842_v8, %s4254_s8  ;;  %1924 = vrot.lane.b32.xlu0 %v1843_v42, %s4254_s8  ;;  %v6830_v27 = vld [vmem:[#allocation84_spill] sm:$0xff]  ;;  %v6831_v8 = vld [vmem:[#allocation83_spill] sm:$0xff] }
 0x222   : > { %v1846_v63 = vmul.f32 %v5622_v45, %v6830_v27  ;;  %v1847_v42 = vmul.f32 %v5622_v45, %v6831_v8 }
 0x224   : > { %v1505_v47 = vpop.permute.xlu1 %1504  ;;  %v1510_v23 = vpop.permute.xlu0 %1509 }
 0x225   : > { %1582 = vst [vmem:[#allocation3 + $0xe0] sm:$0xff] %v1505_v47  ;;  %1583 = vst [vmem:[#allocation3 + $0x90] sm:$0xff] %v1510_v23  ;;  %1926 = vrot.lane.b32.xlu1 %v1844_v25, %s4254_s8  ;;  %1928 = vrot.lane.b32.xlu0 %v1845_v13, %s4254_s8  ;;  %v6832_v47 = vld [vmem:[#allocation86_spill] sm:$0xff]  ;;  %v6833_v25 = vld [vmem:[#allocation85_spill] sm:$0xff] }
 0x226   : > { %v1848_v23 = vmul.f32 %v5622_v45, %v6832_v47  ;;  %v1849_v13 = vmul.f32 %v5622_v45, %v6833_v25 }
 0x228   : > { %v1515_v19 = vpop.permute.xlu1 %1514  ;;  %v1520_v21 = vpop.permute.xlu0 %1519 }
 0x229   : > { %1584 = vst [vmem:[#allocation3 + $0x70] sm:$0xff] %v1515_v19  ;;  %1585 = vst [vmem:[#allocation3 + $0xc0] sm:$0xff] %v1520_v21  ;;  %1930 = vrot.lane.b32.xlu1 %v1846_v63, %s4254_s8  ;;  %1932 = vrot.lane.b32.xlu0 %v1847_v42, %s4254_s8  ;;  %v6834_v19 = vld [vmem:[#allocation88_spill] sm:$0xff]  ;;  %v6835_v63 = vld [vmem:[#allocation87_spill] sm:$0xff] }
 0x22a   : > { %v1850_v21 = vmul.f32 %v5622_v45, %v6834_v19  ;;  %v1851_v42 = vmul.f32 %v5622_v45, %v6835_v63 }
 0x22c   : > { %v1525_v48 = vpop.permute.xlu1 %1524  ;;  %v1530_v39 = vpop.permute.xlu0 %1529 }
 0x22d   : > { %1586 = vst [vmem:[#allocation3 + $0xa8] sm:$0xff] %v1525_v48  ;;  %1587 = vst [vmem:[#allocation3 + $0xd0] sm:$0xff] %v1530_v39  ;;  %1934 = vrot.lane.b32.xlu1 %v1848_v23, %s4254_s8  ;;  %1936 = vrot.lane.b32.xlu0 %v1849_v13, %s4254_s8  ;;  %v6836_v48 = vld [vmem:[#allocation90_spill] sm:$0xff]  ;;  %v6837_v23 = vld [vmem:[#allocation89_spill] sm:$0xff] }
 0x22e   : > { %v1852_v39 = vmul.f32 %v5622_v45, %v6836_v48  ;;  %v1853_v13 = vmul.f32 %v5622_v45, %v6837_v23 }
 0x230   : > { %v1535_v8 = vpop.permute.xlu1 %1534  ;;  %v1540_v27 = vpop.permute.xlu0 %1539 }
 0x231   : > { %1588 = vst [vmem:[#allocation3 + $0x10] sm:$0xff] %v1535_v8  ;;  %1589 = vst [vmem:[#allocation3 + $0x28] sm:$0xff] %v1540_v27  ;;  %1938 = vrot.lane.b32.xlu1 %v1850_v21, %s4254_s8  ;;  %1940 = vrot.lane.b32.xlu0 %v1851_v42, %s4254_s8  ;;  %v6838_v8 = vld [vmem:[#allocation92_spill] sm:$0xff]  ;;  %v6839_v21 = vld [vmem:[#allocation91_spill] sm:$0xff] }
 0x232   : > { %v1854_v27 = vmul.f32 %v5622_v45, %v6838_v8  ;;  %v1855_v42 = vmul.f32 %v5622_v45, %v6839_v21 }
 0x234   : > { %v1545_v25 = vpop.permute.xlu1 %1544  ;;  %v1550_v47 = vpop.permute.xlu0 %1549 }
 0x235   : > { %1590 = vst [vmem:[#allocation3 + $0xa0] sm:$0xff] %v1545_v25  ;;  %1591 = vst [vmem:[#allocation3 + $0xf8] sm:$0xff] %v1550_v47  ;;  %1942 = vrot.lane.b32.xlu1 %v1852_v39, %s4254_s8  ;;  %1944 = vrot.lane.b32.xlu0 %v1853_v13, %s4254_s8  ;;  %v6840_v25 = vld [vmem:[#allocation94_spill] sm:$0xff]  ;;  %v6841_v39 = vld [vmem:[#allocation93_spill] sm:$0xff] }
 0x236   : > { %v1856_v47 = vmul.f32 %v5622_v45, %v6840_v25  ;;  %v1857_v13 = vmul.f32 %v5622_v45, %v6841_v39 }
 0x238   : > { %v1555_v63 = vpop.permute.xlu1 %1554  ;;  %v1560_v19 = vpop.permute.xlu0 %1559 }
 0x239   : > { %1592 = vst [vmem:[#allocation3 + $0x20] sm:$0xff] %v1555_v63  ;;  %1593 = vst [vmem:[#allocation3 + $0x98] sm:$0xff] %v1560_v19  ;;  %1946 = vrot.lane.b32.xlu1 %v1854_v27, %s4254_s8  ;;  %1948 = vrot.lane.b32.xlu0 %v1855_v42, %s4254_s8 }
 0x23c   : > { %v1696_v23 = vpop.permute.xlu1 %1695  ;;  %v1698_v48 = vpop.permute.xlu0 %1697 }
 0x23d   : > { %1950 = vrot.lane.b32.xlu1 %v1856_v47, %s4254_s8  ;;  %1952 = vrot.lane.b32.xlu0 %v1857_v13, %s4254_s8  ;;  %v1791_v15 = vadd.f32 %v1696_v23, %v1596_v2 }
 0x240   : > { %v1700_v21 = vpop.permute.xlu1 %1699  ;;  %v1702_v8 = vpop.permute.xlu0 %1701 }
 0x244   : > { %v1704_v63 = vpop.permute.xlu1 %1703  ;;  %v1706_v19 = vpop.permute.xlu0 %1705 }
 0x248   : > { %v1708_v61 = vpop.permute.xlu1 %1707  ;;  %v1710_v27 = vpop.permute.xlu0 %1709 }
 0x24c   : > { %v5722_v53 = vpop.permute.xlu1 %1711  ;;  %v5724_v42 = vpop.permute.xlu0 %1713 }
 0x250   : > { %v5726_v25 = vpop.permute.xlu1 %1715  ;;  %v5728_v45 = vpop.permute.xlu0 %1717 }
 0x254   : > { %v5730_v39 = vpop.permute.xlu1 %1719  ;;  %v5732_v47 = vpop.permute.xlu0 %1721 }
 0x258   : > { %v5734_v13 = vpop.permute.xlu1 %1723  ;;  %v5736_v12 = vpop.permute.xlu0 %1725 }
 0x25c   : > { %v5738_v34 = vpop.permute.xlu1 %1727  ;;  %v5740_v16 = vpop.permute.xlu0 %1729 }
 0x260   : > { %v5742_v44 = vpop.permute.xlu1 %1731  ;;  %v5744_v62 = vpop.permute.xlu0 %1733 }
 0x264   : > { %v5746_v49 = vpop.permute.xlu1 %1735  ;;  %v5748_v40 = vpop.permute.xlu0 %1737 }
 0x268   : > { %v5750_v54 = vpop.permute.xlu1 %1739  ;;  %v5752_v32 = vpop.permute.xlu0 %1741 }
 0x26c   : > { %v5756_v4 = vpop.permute.xlu1 %1743  ;;  %v5758_v6 = vpop.permute.xlu0 %1745 }
 0x26d   : > { %6842 = vst [vmem:[#allocation97_spill] sm:$0xff] %v5756_v4  ;;  %6843 = vst [vmem:[#allocation59_spill] sm:$0xff] %v5758_v6 }
 0x270   : > { %v5760_v59 = vpop.permute.xlu1 %1747  ;;  %v5762_v56 = vpop.permute.xlu0 %1749 }
 0x271   : > { %6844 = vst [vmem:[#allocation98_spill] sm:$0xff] %v5760_v59  ;;  %6845 = vst [vmem:[#allocation99_spill] sm:$0xff] %v5762_v56  ;;  %v1792_v59 = vadd.f32 %v1698_v48, %v1597_v55  ;;  %v1598_v56 = vmul.f32 %v5764_v9, %v5309_v33  ;;  %v1795_v33 = vadd.f32 %v1704_v63, %v1600_v41 }
 0x272   : > { %v1606_v63 = vmul.f32 %v5764_v9, %v5370_v5 }
 0x273   : > { %v1793_v24 = vadd.f32 %v1700_v21, %v1598_v56 }
 0x274   : > { %v5766_v18 = vpop.permute.xlu1 %1751  ;;  %v5768_v38 = vpop.permute.xlu0 %1753 }
 0x275   : > { %6846 = vst [vmem:[#allocation60_spill] sm:$0xff] %v5766_v18  ;;  %6847 = vst [vmem:[#allocation102_spill] sm:$0xff] %v5768_v38  ;;  %v1599_v18 = vmul.f32 %v5764_v9, %v5315_v20  ;;  %v1602_v20 = vmul.f32 %v5764_v9, %v5346_v10 }
 0x277   : > { %v1794_v58 = vadd.f32 %v1702_v8, %v1599_v18 }
 0x278   : > { %v5774_v31 = vpop.permute.xlu1 %1755  ;;  %v5776_v3 = vpop.permute.xlu0 %1757 }
 0x279   : > { %6850 = vst [vmem:[#allocation103_spill] sm:$0xff] %v5776_v3  ;;  %v1601_v3 = vmul.f32 %v5764_v9, %v5325_v46 }
 0x27c   : > { %v1891_v60 = vpop.permute.xlu1 %1890  ;;  %v1893_v38 = vpop.permute.xlu0 %1892 }
 0x27d   : > { %v1986_v6 = vadd.f32 %v1891_v60, %v1791_v15  ;;  %v1987_v4 = vadd.f32 %v1893_v38, %v1792_v59  ;;  %v1796_v60 = vadd.f32 %v1706_v19, %v1601_v3  ;;  %v1603_v15 = vmul.f32 %v5764_v9, %v5341_v28 }
 0x27f   : > { %2020 = vperm.xlu1 %4070, %v1986_v6   ;;  %2025 = vperm.xlu0 %4069, %v1987_v4   ;;  %v1604_v6 = vmul.f32 %v5764_v9, %v5356_v22  ;;  %v1797_v4 = vadd.f32 %v1708_v61, %v1602_v20  ;;  %v1607_v20 = vmul.f32 %v5764_v9, %v5366_v51 }
 0x280   : > { %v1895_v55 = vpop.permute.xlu1 %1894  ;;  %v1897_v2 = vpop.permute.xlu0 %1896 }
 0x281   : > { %v1988_v48 = vadd.f32 %v1895_v55, %v1793_v24  ;;  %v1989_v23 = vadd.f32 %v1897_v2, %v1794_v58  ;;  %v1798_v24 = vadd.f32 %v1710_v27, %v1603_v15  ;;  %v1605_v58 = vmul.f32 %v5764_v9, %v5352_v26 }
 0x283   : > { %2030 = vperm.xlu1 %4070, %v1988_v48   ;;  %2035 = vperm.xlu0 %4069, %v1989_v23   ;;  %v1800_v19 = vadd.f32 %v5724_v42, %v1605_v58  ;;  %v1608_v48 = vmul.f32 %v5764_v9, %v5384_v11  ;;  %v1801_v23 = vadd.f32 %v5726_v25, %v1606_v63 }
 0x284   : > { %v1899_v38 = vpop.permute.xlu1 %1898  ;;  %v1901_v18 = vpop.permute.xlu0 %1900  ;;  %v1611_v25 = vmul.f32 %v5764_v9, %v5396_v14 }
 0x285   : > { %v1990_v56 = vadd.f32 %v1899_v38, %v1795_v33  ;;  %v1991_v59 = vadd.f32 %v1901_v18, %v1796_v60  ;;  %v1799_v33 = vadd.f32 %v5722_v53, %v1604_v6  ;;  %v1802_v60 = vadd.f32 %v5728_v45, %v1607_v20 }
 0x286   : > { %v1609_v53 = vmul.f32 %v5764_v9, %v5380_v57 }
 0x287   : > { %2040 = vperm.xlu1 %4070, %v1990_v56   ;;  %2045 = vperm.xlu0 %4069, %v1991_v59   ;;  %v1610_v56 = vmul.f32 %v5764_v9, %v5402_v1  ;;  %v1803_v59 = vadd.f32 %v5730_v39, %v1608_v48  ;;  %v1613_v39 = vmul.f32 %v5764_v9, %v5408_v36 }
 0x288   : > { %v1903_v3 = vpop.permute.xlu1 %1902  ;;  %v1905_v41 = vpop.permute.xlu0 %1904  ;;  %v1804_v6 = vadd.f32 %v5732_v47, %v1609_v53  ;;  %v1616_v48 = vmul.f32 %v5764_v9, %v5440_v43 }
 0x289   : > { %v1992_v8 = vadd.f32 %v1903_v3, %v1797_v4  ;;  %v1993_v21 = vadd.f32 %v1905_v41, %v1798_v24  ;;  %v1612_v3 = vmul.f32 %v5764_v9, %v5412_v35  ;;  %v1805_v41 = vadd.f32 %v5734_v13, %v1610_v56 }
 0x28a   : > { %v1615_v13 = vmul.f32 %v5764_v9, %v5422_v52 }
 0x28b   : > { %2050 = vperm.xlu1 %4070, %v1992_v8   ;;  %2055 = vperm.xlu0 %4069, %v1993_v21   ;;  %v1806_v8 = vadd.f32 %v5736_v12, %v1611_v25  ;;  %v1807_v20 = vadd.f32 %v5738_v34, %v1612_v3  ;;  %v1617_v34 = vmul.f32 %v5764_v9, %v5436_v7 }
 0x28c   : > { %v1907_v61 = vpop.permute.xlu1 %1906  ;;  %v1909_v27 = vpop.permute.xlu0 %1908 }
 0x28d   : > { %v1994_v55 = vadd.f32 %v1907_v61, %v1799_v33  ;;  %v1995_v2 = vadd.f32 %v1909_v27, %v1800_v19  ;;  %v1614_v19 = vmul.f32 %v5764_v9, %v5426_v29  ;;  %v1808_v61 = vadd.f32 %v5740_v16, %v1613_v39 }
 0x28e   : > { %v1812_v56 = vadd.f32 %v5748_v40, %v1617_v34 }
 0x28f   : > { %2060 = vperm.xlu1 %4070, %v1994_v55   ;;  %2065 = vperm.xlu0 %4069, %v1995_v2  }
 0x290   : > { %v1911_v42 = vpop.permute.xlu1 %1910  ;;  %v1913_v15 = vpop.permute.xlu0 %1912 }
 0x291   : > { %v1996_v38 = vadd.f32 %v1911_v42, %v1801_v23  ;;  %v1997_v18 = vadd.f32 %v1913_v15, %v1802_v60  ;;  %v1809_v23 = vadd.f32 %v5742_v44, %v1614_v19  ;;  %v1810_v60 = vadd.f32 %v5744_v62, %v1615_v13 }
 0x292   : > { %v1619_v44 = vmul.f32 %v5764_v9, %v5452_v37 }
 0x293   : > { %2070 = vperm.xlu1 %4070, %v1996_v38   ;;  %2075 = vperm.xlu0 %4069, %v1997_v18   ;;  %v1618_v38 = vmul.f32 %v5764_v9, %v5458_v50  ;;  %v1811_v18 = vadd.f32 %v5746_v49, %v1616_v48  ;;  %v1621_v49 = vmul.f32 %v5764_v9, %v5464_v30  ;;  %v6857_v48 = vld [vmem:[#allocation99_spill] sm:$0xff] }
 0x294   : > { %v1915_v45 = vpop.permute.xlu1 %1914  ;;  %v1917_v4 = vpop.permute.xlu0 %1916 }
 0x295   : > { %v1998_v24 = vadd.f32 %v1915_v45, %v1803_v59  ;;  %v1999_v58 = vadd.f32 %v1917_v4, %v1804_v6  ;;  %v1620_v45 = vmul.f32 %v5764_v9, %v5468_v0  ;;  %v1813_v4 = vadd.f32 %v5750_v54, %v1618_v38  ;;  %v6854_v54 = vld [vmem:[#allocation108_spill] sm:$0xff] }
 0x296   : > { %v6859_v38 = vld [vmem:[#allocation96_spill] sm:$0xff] }
 0x297   : > { %2080 = vperm.xlu1 %4070, %v1998_v24   ;;  %2085 = vperm.xlu0 %4069, %v1999_v58   ;;  %v1814_v24 = vadd.f32 %v5752_v32, %v1619_v44  ;;  %v1623_v32 = vmul.f32 %v5764_v9, %v6854_v54 }
 0x298   : > { %v1919_v47 = vpop.permute.xlu1 %1918  ;;  %v1921_v21 = vpop.permute.xlu0 %1920 }
 0x299   : > { %v2000_v63 = vadd.f32 %v1919_v47, %v1805_v41  ;;  %v2001_v33 = vadd.f32 %v1921_v21, %v1806_v8  ;;  %v6851_v8 = vld [vmem:[#allocation109_spill] sm:$0xff] }
 0x29a   : > { %v1622_v39 = vmul.f32 %v5764_v9, %v6851_v8  ;;  %v6852_v47 = vld [vmem:[#allocation97_spill] sm:$0xff] }
 0x29b   : > { %2090 = vperm.xlu1 %4070, %v2000_v63   ;;  %2095 = vperm.xlu0 %4069, %v2001_v33   ;;  %v1815_v21 = vadd.f32 %v6852_v47, %v1620_v45  ;;  %v6853_v63 = vld [vmem:[#allocation59_spill] sm:$0xff]  ;;  %v5863_v47 = vstv %s2245_s17 }
 0x29c   : > { %v1923_v12 = vpop.permute.xlu1 %1922  ;;  %v1925_v27 = vpop.permute.xlu0 %1924  ;;  %v1816_v33 = vadd.f32 %v6853_v63, %v1621_v49 }
 0x29d   : > { %v2002_v55 = vadd.f32 %v1923_v12, %v1807_v20  ;;  %v2003_v2 = vadd.f32 %v1925_v27, %v1808_v61  ;;  %v6855_v12 = vld [vmem:[#allocation55_spill] sm:$0xff] }
 0x29e   : > { %v1624_v27 = vmul.f32 %v5764_v9, %v6855_v12  ;;  %v6938_v12 = vld [vmem:[#allocation105_spill] sm:$0xff] }
 0x29f   : > { %2100 = vperm.xlu1 %4070, %v2002_v55   ;;  %2105 = vperm.xlu0 %4069, %v2003_v2   ;;  %v6856_v55 = vld [vmem:[#allocation98_spill] sm:$0xff] }
 0x2a0   : > { %v1927_v16 = vpop.permute.xlu1 %1926  ;;  %v1929_v53 = vpop.permute.xlu0 %1928  ;;  %v1817_v2 = vadd.f32 %v6856_v55, %v1622_v39 }
 0x2a1   : > { %v2004_v42 = vadd.f32 %v1927_v16, %v1809_v23  ;;  %v2005_v15 = vadd.f32 %v1929_v53, %v1810_v60  ;;  %v1818_v23 = vadd.f32 %v6857_v48, %v1623_v32  ;;  %v6858_v60 = vld [vmem:[#allocation95_spill] sm:$0xff]  ;;  %v6865_v32 = vld [vmem:[#allocation30_spill] sm:$0xff] }
 0x2a2   : > { %v1625_v34 = vmul.f32 %v5764_v9, %v6858_v60 }
 0x2a3   : > { %2110 = vperm.xlu1 %4070, %v2004_v42   ;;  %2115 = vperm.xlu0 %4069, %v2005_v15  }
 0x2a4   : > { %v1931_v62 = vpop.permute.xlu1 %1930  ;;  %v1933_v59 = vpop.permute.xlu0 %1932 }
 0x2a5   : > { %v2006_v6 = vadd.f32 %v1931_v62, %v1811_v18  ;;  %v2007_v25 = vadd.f32 %v1933_v59, %v1812_v56  ;;  %v1626_v18 = vmul.f32 %v5764_v9, %v6859_v38  ;;  %v6860_v56 = vld [vmem:[#allocation60_spill] sm:$0xff]  ;;  %v6861_v62 = vld [vmem:[#allocation102_spill] sm:$0xff] }
 0x2a6   : > { %v1819_v44 = vadd.f32 %v6860_v56, %v1624_v27  ;;  %v1820_v59 = vadd.f32 %v6861_v62, %v1625_v34  ;;  %v6868_v27 = vld [vmem:[#allocation32_spill] sm:$0xff] }
 0x2a7   : > { %2120 = vperm.xlu1 %4070, %v2006_v6   ;;  %2125 = vperm.xlu0 %4069, %v2007_v25   ;;  %v6862_v6 = vld [vmem:[#allocation56_spill] sm:$0xff]  ;;  %v2251_v55 = vmul.f32 %v5863_v47, %v6868_v27 }
 0x2a8   : > { %v1935_v40 = vpop.permute.xlu1 %1934  ;;  %v1937_v58 = vpop.permute.xlu0 %1936  ;;  %v1627_v25 = vmul.f32 %v5764_v9, %v6862_v6  ;;  %v6864_v9 = vld [vmem:[#allocation28_spill] sm:$0xff] }
 0x2a9   : > { %v2008_v3 = vadd.f32 %v1935_v40, %v1813_v4  ;;  %v2009_v41 = vadd.f32 %v1937_v58, %v1814_v24  ;;  %v1821_v40 = vadd.f32 %v5774_v31, %v1626_v18  ;;  %v6863_v58 = vld [vmem:[#allocation103_spill] sm:$0xff] }
 0x2aa   : > { %v6866_v31 = vld [vmem:[#allocation27_spill] sm:$0xff] }
 0x2ab   : > { %2130 = vperm.xlu1 %4070, %v2008_v3   ;;  %2135 = vperm.xlu0 %4069, %v2009_v41   ;;  %v1822_v3 = vadd.f32 %v6863_v58, %v1627_v25  ;;  %v6873_v18 = vld [vmem:[#allocation35_spill] sm:$0xff] }
 0x2ac   : > { %v1939_v19 = vpop.permute.xlu1 %1938  ;;  %v1941_v20 = vpop.permute.xlu0 %1940  ;;  %v2256_v56 = vmul.f32 %v5863_v47, %v6873_v18 }
 0x2ad   : > { %v2010_v61 = vadd.f32 %v1939_v19, %v1815_v21  ;;  %v2011_v13 = vadd.f32 %v1941_v20, %v1816_v33  ;;  %v2247_v33 = vmul.f32 %v5863_v47, %v6864_v9  ;;  %v2248_v19 = vmul.f32 %v5863_v47, %v6865_v32 }
 0x2ae   : > { %v2249_v20 = vmul.f32 %v5863_v47, %v6866_v31 }
 0x2af   : > { %2140 = vperm.xlu1 %4070, %v2010_v61   ;;  %2145 = vperm.xlu0 %4069, %v2011_v13   ;;  %v6867_v61 = vld [vmem:[#allocation29_spill] sm:$0xff] }
 0x2b0   : > { %v1943_v16 = vpop.permute.xlu1 %1942  ;;  %v1945_v53 = vpop.permute.xlu0 %1944  ;;  %v2250_v13 = vmul.f32 %v5863_v47, %v6867_v61 }
 0x2b1   : > { %v2012_v42 = vadd.f32 %v1943_v16, %v1817_v2  ;;  %v2013_v15 = vadd.f32 %v1945_v53, %v1818_v23  ;;  %v6869_v2 = vld [vmem:[#allocation31_spill] sm:$0xff]  ;;  %v6870_v23 = vld [vmem:[#allocation34_spill] sm:$0xff]  ;;  %v6871_v16 = vld [vmem:[#allocation33_spill] sm:$0xff] }
 0x2b2   : > { %v2252_v48 = vmul.f32 %v5863_v47, %v6869_v2  ;;  %v2253_v34 = vmul.f32 %v5863_v47, %v6870_v23  ;;  %v2254_v53 = vmul.f32 %v5863_v47, %v6871_v16 }
 0x2b3   : > { %2150 = vperm.xlu1 %4070, %v2012_v42   ;;  %2155 = vperm.xlu0 %4069, %v2013_v15   ;;  %v6872_v42 = vld [vmem:[#allocation36_spill] sm:$0xff] }
 0x2b4   : > { %v1947_v45 = vpop.permute.xlu1 %1946  ;;  %v1949_v4 = vpop.permute.xlu0 %1948  ;;  %v2255_v15 = vmul.f32 %v5863_v47, %v6872_v42 }
 0x2b5   : > { %v2014_v24 = vadd.f32 %v1947_v45, %v1819_v44  ;;  %v2015_v49 = vadd.f32 %v1949_v4, %v1820_v59  ;;  %v6874_v44 = vld [vmem:[#allocation38_spill] sm:$0xff]  ;;  %v6875_v59 = vld [vmem:[#allocation37_spill] sm:$0xff]  ;;  %v6876_v45 = vld [vmem:[#allocation40_spill] sm:$0xff] }
 0x2b6   : > { %v2257_v62 = vmul.f32 %v5863_v47, %v6874_v44  ;;  %v2258_v25 = vmul.f32 %v5863_v47, %v6875_v59  ;;  %v2259_v4 = vmul.f32 %v5863_v47, %v6876_v45 }
 0x2b7   : > { %2160 = vperm.xlu1 %4070, %v2014_v24   ;;  %2165 = vperm.xlu0 %4069, %v2015_v49   ;;  %v6877_v24 = vld [vmem:[#allocation39_spill] sm:$0xff] }
 0x2b8   : > { %v1951_v41 = vpop.permute.xlu1 %1950  ;;  %v1953_v39 = vpop.permute.xlu0 %1952  ;;  %v2260_v49 = vmul.f32 %v5863_v47, %v6877_v24 }
 0x2b9   : > { %v2016_v21 = vadd.f32 %v1951_v41, %v1821_v40  ;;  %v2017_v63 = vadd.f32 %v1953_v39, %v1822_v3  ;;  %v6878_v40 = vld [vmem:[#allocation42_spill] sm:$0xff]  ;;  %v6879_v3 = vld [vmem:[#allocation41_spill] sm:$0xff]  ;;  %v6880_v39 = vld [vmem:[#allocation44_spill] sm:$0xff] }
 0x2ba   : > { %v2261_v58 = vmul.f32 %v5863_v47, %v6878_v40  ;;  %v2262_v41 = vmul.f32 %v5863_v47, %v6879_v3 }
 0x2bb   : > { %2170 = vperm.xlu1 %4070, %v2016_v21   ;;  %2175 = vperm.xlu0 %4069, %v2017_v63   ;;  %v2263_v21 = vmul.f32 %v5863_v47, %v6880_v39  ;;  %v6881_v63 = vld [vmem:[#allocation43_spill] sm:$0xff]  ;;  %v6896_v39 = vld [vmem:[#allocation64_spill] sm:$0xff] }
 0x2bc   : > { %v2264_v9 = vmul.f32 %v5863_v47, %v6881_v63  ;;  %v6897_v63 = vld [vmem:[#allocation63_spill] sm:$0xff] }
 0x2bf   : > { %2311 = vrot.lane.b32.xlu1 %v2247_v33, %s4252_s25  ;;  %2313 = vrot.lane.b32.xlu0 %v2248_v19, %s4252_s25  ;;  %v6882_v33 = vld [vmem:[#allocation46_spill] sm:$0xff]  ;;  %v6883_v19 = vld [vmem:[#allocation45_spill] sm:$0xff] }
 0x2c0   : > { %v2265_v32 = vmul.f32 %v5863_v47, %v6882_v33  ;;  %v2266_v31 = vmul.f32 %v5863_v47, %v6883_v19 }
 0x2c3   : > { %2315 = vrot.lane.b32.xlu1 %v2249_v20, %s4252_s25  ;;  %2317 = vrot.lane.b32.xlu0 %v2250_v13, %s4252_s25  ;;  %v6884_v20 = vld [vmem:[#allocation48_spill] sm:$0xff]  ;;  %v6885_v13 = vld [vmem:[#allocation47_spill] sm:$0xff] }
 0x2c4   : > { %v2267_v61 = vmul.f32 %v5863_v47, %v6884_v20  ;;  %v2268_v27 = vmul.f32 %v5863_v47, %v6885_v13 }
 0x2c7   : > { %2319 = vrot.lane.b32.xlu1 %v2251_v55, %s4252_s25  ;;  %2321 = vrot.lane.b32.xlu0 %v2252_v48, %s4252_s25  ;;  %v6886_v55 = vld [vmem:[#allocation50_spill] sm:$0xff]  ;;  %v6887_v48 = vld [vmem:[#allocation49_spill] sm:$0xff] }
 0x2c8   : > { %v2269_v2 = vmul.f32 %v5863_v47, %v6886_v55  ;;  %v2270_v23 = vmul.f32 %v5863_v47, %v6887_v48 }
 0x2cb   : > { %2323 = vrot.lane.b32.xlu1 %v2253_v34, %s4252_s25  ;;  %2325 = vrot.lane.b32.xlu0 %v2254_v53, %s4252_s25  ;;  %v6888_v34 = vld [vmem:[#allocation52_spill] sm:$0xff]  ;;  %v6889_v53 = vld [vmem:[#allocation51_spill] sm:$0xff] }
 0x2cc   : > { %v2271_v16 = vmul.f32 %v5863_v47, %v6888_v34  ;;  %v2272_v42 = vmul.f32 %v5863_v47, %v6889_v53 }
 0x2cf   : > { %2327 = vrot.lane.b32.xlu1 %v2255_v15, %s4252_s25  ;;  %2329 = vrot.lane.b32.xlu0 %v2256_v56, %s4252_s25  ;;  %v6890_v15 = vld [vmem:[#allocation54_spill] sm:$0xff]  ;;  %v6891_v56 = vld [vmem:[#allocation53_spill] sm:$0xff] }
 0x2d0   : > { %v2273_v18 = vmul.f32 %v5863_v47, %v6890_v15  ;;  %v2274_v44 = vmul.f32 %v5863_v47, %v6891_v56 }
 0x2d3   : > { %2331 = vrot.lane.b32.xlu1 %v2257_v62, %s4252_s25  ;;  %2333 = vrot.lane.b32.xlu0 %v2258_v25, %s4252_s25  ;;  %v6892_v62 = vld [vmem:[#allocation58_spill] sm:$0xff]  ;;  %v6893_v25 = vld [vmem:[#allocation57_spill] sm:$0xff] }
 0x2d4   : > { %v2275_v59 = vmul.f32 %v5863_v47, %v6892_v62  ;;  %v2276_v45 = vmul.f32 %v5863_v47, %v6893_v25 }
 0x2d7   : > { %2335 = vrot.lane.b32.xlu1 %v2259_v4, %s4252_s25  ;;  %2337 = vrot.lane.b32.xlu0 %v2260_v49, %s4252_s25  ;;  %v6894_v4 = vld [vmem:[#allocation62_spill] sm:$0xff]  ;;  %v6895_v49 = vld [vmem:[#allocation61_spill] sm:$0xff] }
 0x2d8   : > { %v2277_v24 = vmul.f32 %v5863_v47, %v6894_v4  ;;  %v2278_v40 = vmul.f32 %v5863_v47, %v6895_v49  ;;  %v6898_v47 = vld [vmem:[#allocation66_spill] sm:$0xff] }
 0x2db   : > { %2339 = vrot.lane.b32.xlu1 %v2261_v58, %s4252_s25  ;;  %2341 = vrot.lane.b32.xlu0 %v2262_v41, %s4252_s25  ;;  %v5960_v58 = vstv %s2440_s14 }
 0x2dc   : > { %v2444_v19 = vmul.f32 %v5960_v58, %v6898_v47 }
 0x2df   : > { %2343 = vrot.lane.b32.xlu1 %v2263_v21, %s4252_s25  ;;  %2345 = vrot.lane.b32.xlu0 %v2264_v9, %s4252_s25  ;;  %v2442_v21 = vmul.f32 %v5960_v58, %v6896_v39  ;;  %v2443_v9 = vmul.f32 %v5960_v58, %v6897_v63 }
 0x2e3   : > { %2347 = vrot.lane.b32.xlu1 %v2265_v32, %s4252_s25  ;;  %2349 = vrot.lane.b32.xlu0 %v2266_v31, %s4252_s25  ;;  %v6899_v31 = vld [vmem:[#allocation65_spill] sm:$0xff] }
 0x2e4   : > { %v2445_v20 = vmul.f32 %v5960_v58, %v6899_v31 }
 0x2e7   : > { %2351 = vrot.lane.b32.xlu1 %v2267_v61, %s4252_s25  ;;  %2353 = vrot.lane.b32.xlu0 %v2268_v27, %s4252_s25  ;;  %v6900_v27 = vld [vmem:[#allocation68_spill] sm:$0xff] }
 0x2e8   : > { %v2446_v55 = vmul.f32 %v5960_v58, %v6900_v27 }
 0x2eb   : > { %2355 = vrot.lane.b32.xlu1 %v2269_v2, %s4252_s25  ;;  %2357 = vrot.lane.b32.xlu0 %v2270_v23, %s4252_s25  ;;  %v6901_v2 = vld [vmem:[#allocation67_spill] sm:$0xff] }
 0x2ec   : > { %v2447_v48 = vmul.f32 %v5960_v58, %v6901_v2 }
 0x2ef   : > { %2359 = vrot.lane.b32.xlu1 %v2271_v16, %s4252_s25  ;;  %2361 = vrot.lane.b32.xlu0 %v2272_v42, %s4252_s25  ;;  %v6902_v16 = vld [vmem:[#allocation70_spill] sm:$0xff]  ;;  %v6903_v42 = vld [vmem:[#allocation69_spill] sm:$0xff] }
 0x2f0   : > { %v2448_v53 = vmul.f32 %v5960_v58, %v6902_v16  ;;  %v2449_v15 = vmul.f32 %v5960_v58, %v6903_v42 }
 0x2f3   : > { %2363 = vrot.lane.b32.xlu1 %v2273_v18, %s4252_s25  ;;  %2365 = vrot.lane.b32.xlu0 %v2274_v44, %s4252_s25  ;;  %v6904_v44 = vld [vmem:[#allocation72_spill] sm:$0xff] }
 0x2f4   : > { %v2450_v62 = vmul.f32 %v5960_v58, %v6904_v44 }
 0x2f7   : > { %2367 = vrot.lane.b32.xlu1 %v2275_v59, %s4252_s25  ;;  %2369 = vrot.lane.b32.xlu0 %v2276_v45, %s4252_s25  ;;  %v6905_v59 = vld [vmem:[#allocation71_spill] sm:$0xff] }
 0x2f8   : > { %v2451_v25 = vmul.f32 %v5960_v58, %v6905_v59 }
 0x2fa   : > { %v2021_v3 = vpop.permute.xlu1 %2020  ;;  %v2026_v41 = vpop.permute.xlu0 %2025 }
 0x2fb   : > { %2178 = vst [vmem:[#allocation4 + $0x80] sm:$0xff] %v2021_v3  ;;  %2179 = vst [vmem:[#allocation4 + $0xc8] sm:$0xff] %v2026_v41  ;;  %2371 = vrot.lane.b32.xlu1 %v2277_v24, %s4252_s25  ;;  %2373 = vrot.lane.b32.xlu0 %v2278_v40, %s4252_s25  ;;  %v6906_v24 = vld [vmem:[#allocation74_spill] sm:$0xff]  ;;  %v6907_v40 = vld [vmem:[#allocation73_spill] sm:$0xff] }
 0x2fc   : > { %v2452_v49 = vmul.f32 %v5960_v58, %v6906_v24  ;;  %v2453_v3 = vmul.f32 %v5960_v58, %v6907_v40 }
 0x2fe   : > { %v2031_v33 = vpop.permute.xlu1 %2030  ;;  %v2036_v32 = vpop.permute.xlu0 %2035 }
 0x2ff   : > { %2180 = vst [vmem:[#allocation4 + $0xe8] sm:$0xff] %v2031_v33  ;;  %2181 = vst [vmem:[#allocation4 + $0x78] sm:$0xff] %v2036_v32  ;;  %2506 = vrot.lane.b32.xlu1 %v2442_v21, %s4254_s8  ;;  %2508 = vrot.lane.b32.xlu0 %v2443_v9, %s4254_s8  ;;  %v6908_v21 = vld [vmem:[#allocation76_spill] sm:$0xff]  ;;  %v6909_v9 = vld [vmem:[#allocation75_spill] sm:$0xff] }
 0x300   : > { %v2454_v63 = vmul.f32 %v5960_v58, %v6908_v21  ;;  %v2455_v33 = vmul.f32 %v5960_v58, %v6909_v9 }
 0x302   : > { %v2041_v61 = vpop.permute.xlu1 %2040  ;;  %v2046_v13 = vpop.permute.xlu0 %2045 }
 0x303   : > { %2182 = vst [vmem:[#allocation4 + $0x8] sm:$0xff] %v2041_v61  ;;  %2183 = vst [vmem:[#allocation4 + $0x90] sm:$0xff] %v2046_v13  ;;  %2510 = vrot.lane.b32.xlu1 %v2444_v19, %s4254_s8  ;;  %2512 = vrot.lane.b32.xlu0 %v2445_v20, %s4254_s8  ;;  %v6910_v19 = vld [vmem:[#allocation78_spill] sm:$0xff]  ;;  %v6911_v20 = vld [vmem:[#allocation77_spill] sm:$0xff] }
 0x304   : > { %v2456_v31 = vmul.f32 %v5960_v58, %v6910_v19  ;;  %v2457_v61 = vmul.f32 %v5960_v58, %v6911_v20 }
 0x306   : > { %v2051_v23 = vpop.permute.xlu1 %2050  ;;  %v2056_v34 = vpop.permute.xlu0 %2055 }
 0x307   : > { %2184 = vst [vmem:[#allocation4 + $0x58] sm:$0xff] %v2051_v23  ;;  %2185 = vst [vmem:[#allocation4 + $0xa8] sm:$0xff] %v2056_v34  ;;  %2514 = vrot.lane.b32.xlu1 %v2446_v55, %s4254_s8  ;;  %2516 = vrot.lane.b32.xlu0 %v2447_v48, %s4254_s8  ;;  %v6912_v55 = vld [vmem:[#allocation80_spill] sm:$0xff]  ;;  %v6913_v48 = vld [vmem:[#allocation79_spill] sm:$0xff] }
 0x308   : > { %v2458_v2 = vmul.f32 %v5960_v58, %v6912_v55  ;;  %v2459_v23 = vmul.f32 %v5960_v58, %v6913_v48 }
 0x30a   : > { %v2061_v18 = vpop.permute.xlu1 %2060  ;;  %v2066_v56 = vpop.permute.xlu0 %2065 }
 0x30b   : > { %2186 = vst [vmem:[#allocation4 + $0xd0] sm:$0xff] %v2061_v18  ;;  %2187 = vst [vmem:[#allocation4 + $0xb0] sm:$0xff] %v2066_v56  ;;  %2518 = vrot.lane.b32.xlu1 %v2448_v53, %s4254_s8  ;;  %2520 = vrot.lane.b32.xlu0 %v2449_v15, %s4254_s8  ;;  %v6914_v53 = vld [vmem:[#allocation82_spill] sm:$0xff]  ;;  %v6915_v15 = vld [vmem:[#allocation81_spill] sm:$0xff] }
 0x30c   : > { %v2460_v42 = vmul.f32 %v5960_v58, %v6914_v53  ;;  %v2461_v18 = vmul.f32 %v5960_v58, %v6915_v15 }
 0x30e   : > { %v2071_v45 = vpop.permute.xlu1 %2070  ;;  %v2076_v4 = vpop.permute.xlu0 %2075 }
 0x30f   : > { %2188 = vst [vmem:[#allocation4 + $0x38] sm:$0xff] %v2071_v45  ;;  %2189 = vst [vmem:[#allocation4 + $0x40] sm:$0xff] %v2076_v4  ;;  %2522 = vrot.lane.b32.xlu1 %v2450_v62, %s4254_s8  ;;  %2524 = vrot.lane.b32.xlu0 %v2451_v25, %s4254_s8  ;;  %v6916_v62 = vld [vmem:[#allocation84_spill] sm:$0xff]  ;;  %v6917_v25 = vld [vmem:[#allocation83_spill] sm:$0xff] }
 0x310   : > { %v2462_v59 = vmul.f32 %v5960_v58, %v6916_v62  ;;  %v2463_v45 = vmul.f32 %v5960_v58, %v6917_v25 }
 0x312   : > { %v2081_v41 = vpop.permute.xlu1 %2080  ;;  %v2086_v39 = vpop.permute.xlu0 %2085 }
 0x313   : > { %2190 = vst [vmem:[#allocation4 + $0xe0] sm:$0xff] %v2081_v41  ;;  %2191 = vst [vmem:[#allocation4 + $0x60] sm:$0xff] %v2086_v39  ;;  %2526 = vrot.lane.b32.xlu1 %v2452_v49, %s4254_s8  ;;  %2528 = vrot.lane.b32.xlu0 %v2453_v3, %s4254_s8  ;;  %v6918_v49 = vld [vmem:[#allocation86_spill] sm:$0xff]  ;;  %v6919_v3 = vld [vmem:[#allocation85_spill] sm:$0xff] }
 0x314   : > { %v2464_v40 = vmul.f32 %v5960_v58, %v6918_v49  ;;  %v2465_v41 = vmul.f32 %v5960_v58, %v6919_v3 }
 0x316   : > { %v2091_v32 = vpop.permute.xlu1 %2090  ;;  %v2096_v47 = vpop.permute.xlu0 %2095 }
 0x317   : > { %2192 = vst [vmem:[#allocation4 + $0x18] sm:$0xff] %v2091_v32  ;;  %2193 = vst [vmem:[#allocation4 + $0x68] sm:$0xff] %v2096_v47  ;;  %2530 = vrot.lane.b32.xlu1 %v2454_v63, %s4254_s8  ;;  %2532 = vrot.lane.b32.xlu0 %v2455_v33, %s4254_s8  ;;  %v6920_v63 = vld [vmem:[#allocation88_spill] sm:$0xff]  ;;  %v6921_v33 = vld [vmem:[#allocation87_spill] sm:$0xff] }
 0x318   : > { %v2466_v9 = vmul.f32 %v5960_v58, %v6920_v63  ;;  %v2467_v32 = vmul.f32 %v5960_v58, %v6921_v33 }
 0x31a   : > { %v2101_v13 = vpop.permute.xlu1 %2100  ;;  %v2106_v27 = vpop.permute.xlu0 %2105 }
 0x31b   : > { %2194 = vst [vmem:[#allocation4 + $0x10] sm:$0xff] %v2101_v13  ;;  %2195 = vst [vmem:[#allocation4 + $0x70] sm:$0xff] %v2106_v27  ;;  %2534 = vrot.lane.b32.xlu1 %v2456_v31, %s4254_s8  ;;  %2536 = vrot.lane.b32.xlu0 %v2457_v61, %s4254_s8  ;;  %v6922_v31 = vld [vmem:[#allocation90_spill] sm:$0xff]  ;;  %v6923_v61 = vld [vmem:[#allocation89_spill] sm:$0xff] }
 0x31c   : > { %v2468_v20 = vmul.f32 %v5960_v58, %v6922_v31  ;;  %v2469_v13 = vmul.f32 %v5960_v58, %v6923_v61 }
 0x31e   : > { %v2111_v34 = vpop.permute.xlu1 %2110  ;;  %v2116_v16 = vpop.permute.xlu0 %2115 }
 0x31f   : > { %2196 = vst [vmem:[#allocation4 + $0x50] sm:$0xff] %v2111_v34  ;;  %2197 = vst [vmem:[#allocation4 + $0xa0] sm:$0xff] %v2116_v16  ;;  %2538 = vrot.lane.b32.xlu1 %v2458_v2, %s4254_s8  ;;  %2540 = vrot.lane.b32.xlu0 %v2459_v23, %s4254_s8  ;;  %v6924_v2 = vld [vmem:[#allocation92_spill] sm:$0xff]  ;;  %v6925_v23 = vld [vmem:[#allocation91_spill] sm:$0xff] }
 0x320   : > { %v2470_v48 = vmul.f32 %v5960_v58, %v6924_v2  ;;  %v2471_v34 = vmul.f32 %v5960_v58, %v6925_v23  ;;  %v6102_v23 = vstv %s2210_s15 }
 0x322   : > { %v2121_v56 = vpop.permute.xlu1 %2120  ;;  %v2126_v44 = vpop.permute.xlu0 %2125 }
 0x323   : > { %2198 = vst [vmem:[#allocation4 + $0xd8] sm:$0xff] %v2121_v56  ;;  %2199 = vst [vmem:[#allocation4 + $0x30] sm:$0xff] %v2126_v44  ;;  %2542 = vrot.lane.b32.xlu1 %v2460_v42, %s4254_s8  ;;  %2544 = vrot.lane.b32.xlu0 %v2461_v18, %s4254_s8  ;;  %v6926_v42 = vld [vmem:[#allocation94_spill] sm:$0xff]  ;;  %v6927_v18 = vld [vmem:[#allocation93_spill] sm:$0xff] }
 0x324   : > { %v2472_v15 = vmul.f32 %v5960_v58, %v6926_v42  ;;  %v2473_v56 = vmul.f32 %v5960_v58, %v6927_v18 }
 0x326   : > { %v2131_v4 = vpop.permute.xlu1 %2130  ;;  %v2136_v24 = vpop.permute.xlu0 %2135 }
 0x327   : > { %2200 = vst [vmem:[#allocation4 + $0x20] sm:$0xff] %v2131_v4  ;;  %2201 = vst [vmem:[#allocation4 + $0xf0] sm:$0xff] %v2136_v24  ;;  %2546 = vrot.lane.b32.xlu1 %v2462_v59, %s4254_s8  ;;  %2548 = vrot.lane.b32.xlu0 %v2463_v45, %s4254_s8 }
 0x32a   : > { %v2141_v39 = vpop.permute.xlu1 %2140  ;;  %v2146_v21 = vpop.permute.xlu0 %2145 }
 0x32b   : > { %2202 = vst [vmem:[#allocation4 + $0x88] sm:$0xff] %v2141_v39  ;;  %2203 = vst [vmem:[#allocation4 + $0x48] sm:$0xff] %v2146_v21  ;;  %2550 = vrot.lane.b32.xlu1 %v2464_v40, %s4254_s8  ;;  %2552 = vrot.lane.b32.xlu0 %v2465_v41, %s4254_s8 }
 0x32e   : > { %v2151_v47 = vpop.permute.xlu1 %2150  ;;  %v2156_v19 = vpop.permute.xlu0 %2155 }
 0x32f   : > { %2204 = vst [vmem:[#allocation4 + $0xf8] sm:$0xff] %v2151_v47  ;;  %2205 = vst [vmem:[#allocation4 + $0xc0] sm:$0xff] %v2156_v19  ;;  %2554 = vrot.lane.b32.xlu1 %v2466_v9, %s4254_s8  ;;  %2556 = vrot.lane.b32.xlu0 %v2467_v32, %s4254_s8 }
 0x332   : > { %v2161_v27 = vpop.permute.xlu1 %2160  ;;  %v2166_v55 = vpop.permute.xlu0 %2165 }
 0x333   : > { %2206 = vst [vmem:[#allocation4 + $0xb8] sm:$0xff] %v2161_v27  ;;  %2207 = vst [vmem:[#allocation4] sm:$0xff] %v2166_v55  ;;  %2558 = vrot.lane.b32.xlu1 %v2468_v20, %s4254_s8  ;;  %2560 = vrot.lane.b32.xlu0 %v2469_v13, %s4254_s8 }
 0x336   : > { %v2171_v16 = vpop.permute.xlu1 %2170  ;;  %v2176_v53 = vpop.permute.xlu0 %2175 }
 0x337   : > { %2208 = vst [vmem:[#allocation4 + $0x28] sm:$0xff] %v2171_v16  ;;  %2209 = vst [vmem:[#allocation4 + $0x98] sm:$0xff] %v2176_v53  ;;  %2562 = vrot.lane.b32.xlu1 %v2470_v48, %s4254_s8  ;;  %2564 = vrot.lane.b32.xlu0 %v2471_v34, %s4254_s8  ;;  %v6934_v53 = vld [vmem:[#allocation100_spill] sm:$0xff] }
 0x338   : > { %v2212_v42 = vmul.f32 %v6102_v23, %v6934_v53  ;;  %v2216_v53 = vmul.f32 %v6102_v23, %v5329_v17 }
 0x33a   : > { %v2312_v44 = vpop.permute.xlu1 %2311  ;;  %v2314_v62 = vpop.permute.xlu0 %2313 }
 0x33b   : > { %2566 = vrot.lane.b32.xlu1 %v2472_v15, %s4254_s8  ;;  %2568 = vrot.lane.b32.xlu0 %v2473_v56, %s4254_s8  ;;  %v6935_v15 = vld [vmem:[#allocation101_spill] sm:$0xff]  ;;  %v2407_v38 = vadd.f32 %v2312_v44, %v2212_v42 }
 0x33c   : > { %v2213_v18 = vmul.f32 %v6102_v23, %v6935_v15 }
 0x33e   : > { %v2316_v59 = vpop.permute.xlu1 %2315  ;;  %v2318_v25 = vpop.permute.xlu0 %2317  ;;  %v2408_v60 = vadd.f32 %v2314_v62, %v2213_v18 }
 0x342   : > { %v2320_v45 = vpop.permute.xlu1 %2319  ;;  %v2322_v4 = vpop.permute.xlu0 %2321 }
 0x343   : > { %v2411_v18 = vadd.f32 %v2320_v45, %v2216_v53  ;;  %v2224_v53 = vmul.f32 %v6102_v23, %v5384_v11 }
 0x346   : > { %v2324_v24 = vpop.permute.xlu1 %2323  ;;  %v2326_v49 = vpop.permute.xlu0 %2325 }
 0x34a   : > { %v6060_v40 = vpop.permute.xlu1 %2327  ;;  %v6062_v3 = vpop.permute.xlu0 %2329 }
 0x34e   : > { %v6064_v41 = vpop.permute.xlu1 %2331  ;;  %v6066_v58 = vpop.permute.xlu0 %2333 }
 0x352   : > { %v6068_v39 = vpop.permute.xlu1 %2335  ;;  %v6070_v21 = vpop.permute.xlu0 %2337 }
 0x356   : > { %v6072_v63 = vpop.permute.xlu1 %2339  ;;  %v6074_v9 = vpop.permute.xlu0 %2341 }
 0x35a   : > { %v6076_v33 = vpop.permute.xlu1 %2343  ;;  %v6078_v32 = vpop.permute.xlu0 %2345 }
 0x35e   : > { %v6080_v47 = vpop.permute.xlu1 %2347  ;;  %v6082_v19 = vpop.permute.xlu0 %2349 }
 0x362   : > { %v6084_v31 = vpop.permute.xlu1 %2351  ;;  %v6086_v20 = vpop.permute.xlu0 %2353 }
 0x366   : > { %v6088_v61 = vpop.permute.xlu1 %2355  ;;  %v6090_v13 = vpop.permute.xlu0 %2357 }
 0x36a   : > { %v6094_v27 = vpop.permute.xlu1 %2359  ;;  %v6096_v55 = vpop.permute.xlu0 %2361 }
 0x36b   : > { %6928 = vst [vmem:[#allocation106_spill] sm:$0xff] %v6094_v27  ;;  %6929 = vst [vmem:[#allocation107_spill] sm:$0xff] %v6096_v55 }
 0x36e   : > { %v6098_v2 = vpop.permute.xlu1 %2363  ;;  %v6100_v48 = vpop.permute.xlu0 %2365 }
 0x36f   : > { %6930 = vst [vmem:[#allocation97_spill] sm:$0xff] %v6098_v2  ;;  %6931 = vst [vmem:[#allocation59_spill] sm:$0xff] %v6100_v48  ;;  %v6937_v2 = vld [vmem:[#allocation104_spill] sm:$0xff] }
 0x370   : > { %v2214_v48 = vmul.f32 %v6102_v23, %v6937_v2 }
 0x372   : > { %v6104_v34 = vpop.permute.xlu1 %2367  ;;  %v6106_v16 = vpop.permute.xlu0 %2369  ;;  %v2409_v15 = vadd.f32 %v2316_v59, %v2214_v48 }
 0x373   : > { %6932 = vst [vmem:[#allocation98_spill] sm:$0xff] %v6104_v34  ;;  %6933 = vst [vmem:[#allocation99_spill] sm:$0xff] %v6106_v16  ;;  %v2215_v34 = vmul.f32 %v6102_v23, %v6938_v12  ;;  %v2218_v12 = vmul.f32 %v6102_v23, %v5346_v10 }
 0x375   : > { %v2410_v8 = vadd.f32 %v2318_v25, %v2215_v34  ;;  %v2220_v25 = vmul.f32 %v6102_v23, %v5356_v22  ;;  %v2223_v22 = vmul.f32 %v6102_v23, %v5366_v51 }
 0x376   : > { %v6112_v56 = vpop.permute.xlu1 %2371  ;;  %v6114_v6 = vpop.permute.xlu0 %2373 }
 0x377   : > { %6936 = vst [vmem:[#allocation60_spill] sm:$0xff] %v6114_v6  ;;  %v2217_v6 = vmul.f32 %v6102_v23, %v5325_v46  ;;  %v2415_v48 = vadd.f32 %v6060_v40, %v2220_v25  ;;  %v2225_v40 = vmul.f32 %v6102_v23, %v5380_v57 }
 0x379   : > { %v2420_v11 = vadd.f32 %v6070_v21, %v2225_v40  ;;  %v6942_v40 = vld [vmem:[#allocation108_spill] sm:$0xff] }
 0x37a   : > { %v2507_v54 = vpop.permute.xlu1 %2506  ;;  %v2509_v16 = vpop.permute.xlu0 %2508 }
 0x37b   : > { %v2602_v55 = vadd.f32 %v2507_v54, %v2407_v38  ;;  %v2603_v27 = vadd.f32 %v2509_v16, %v2408_v60  ;;  %v2412_v54 = vadd.f32 %v2322_v4, %v2217_v6  ;;  %v2219_v60 = vmul.f32 %v6102_v23, %v5341_v28 }
 0x37c   : > { %v2222_v4 = vmul.f32 %v6102_v23, %v5370_v5  ;;  %v2418_v5 = vadd.f32 %v6066_v58, %v2223_v22 }
 0x37d   : > { %2636 = vperm.xlu1 %4070, %v2602_v55   ;;  %2641 = vperm.xlu0 %4069, %v2603_v27   ;;  %v2413_v27 = vadd.f32 %v2324_v24, %v2218_v12  ;;  %v2414_v55 = vadd.f32 %v2326_v49, %v2219_v60 }
 0x37e   : > { %v2511_v44 = vpop.permute.xlu1 %2510  ;;  %v2513_v62 = vpop.permute.xlu0 %2512 }
 0x37f   : > { %v2604_v2 = vadd.f32 %v2511_v44, %v2409_v15  ;;  %v2605_v42 = vadd.f32 %v2513_v62, %v2410_v8  ;;  %v2221_v8 = vmul.f32 %v6102_v23, %v5352_v26  ;;  %v2417_v15 = vadd.f32 %v6064_v41, %v2222_v4 }
 0x380   : > { %v2227_v41 = vmul.f32 %v6102_v23, %v5396_v14 }
 0x381   : > { %2646 = vperm.xlu1 %4070, %v2604_v2   ;;  %2651 = vperm.xlu0 %4069, %v2605_v42   ;;  %v2416_v34 = vadd.f32 %v6062_v3, %v2221_v8  ;;  %v2226_v2 = vmul.f32 %v6102_v23, %v5402_v1  ;;  %v2419_v42 = vadd.f32 %v6068_v39, %v2224_v53  ;;  %v6940_v53 = vld [vmem:[#allocation106_spill] sm:$0xff] }
 0x382   : > { %v2515_v17 = vpop.permute.xlu1 %2514  ;;  %v2517_v38 = vpop.permute.xlu0 %2516  ;;  %v2422_v1 = vadd.f32 %v6074_v9, %v2227_v41  ;;  %v2229_v39 = vmul.f32 %v6102_v23, %v5408_v36 }
 0x383   : > { %v2606_v59 = vadd.f32 %v2515_v17, %v2411_v18  ;;  %v2607_v46 = vadd.f32 %v2517_v38, %v2412_v54  ;;  %v2228_v54 = vmul.f32 %v6102_v23, %v5412_v35  ;;  %v2421_v60 = vadd.f32 %v6072_v63, %v2226_v2  ;;  %v6944_v2 = vld [vmem:[#allocation97_spill] sm:$0xff] }
 0x384   : > { %v2424_v35 = vadd.f32 %v6078_v32, %v2229_v39  ;;  %v2231_v63 = vmul.f32 %v6102_v23, %v5422_v52 }
 0x385   : > { %2656 = vperm.xlu1 %4070, %v2606_v59   ;;  %2661 = vperm.xlu0 %4069, %v2607_v46   ;;  %v2230_v59 = vmul.f32 %v6102_v23, %v5426_v29  ;;  %v2423_v46 = vadd.f32 %v6076_v33, %v2228_v54  ;;  %v2233_v33 = vmul.f32 %v6102_v23, %v5436_v7 }
 0x386   : > { %v2519_v10 = vpop.permute.xlu1 %2518  ;;  %v2521_v6 = vpop.permute.xlu0 %2520  ;;  %v2426_v29 = vadd.f32 %v6082_v19, %v2231_v63 }
 0x387   : > { %v2608_v45 = vadd.f32 %v2519_v10, %v2413_v27  ;;  %v2609_v28 = vadd.f32 %v2521_v6, %v2414_v55  ;;  %v2232_v55 = vmul.f32 %v6102_v23, %v5440_v43  ;;  %v2425_v8 = vadd.f32 %v6080_v47, %v2230_v59  ;;  %v6950_v59 = vld [vmem:[#allocation56_spill] sm:$0xff] }
 0x388   : > { %v2428_v43 = vadd.f32 %v6086_v20, %v2233_v33  ;;  %v2235_v47 = vmul.f32 %v6102_v23, %v5452_v37 }
 0x389   : > { %2666 = vperm.xlu1 %4070, %v2608_v45   ;;  %2671 = vperm.xlu0 %4069, %v2609_v28   ;;  %v2234_v45 = vmul.f32 %v6102_v23, %v5458_v50  ;;  %v2427_v28 = vadd.f32 %v6084_v31, %v2232_v55  ;;  %v2237_v31 = vmul.f32 %v6102_v23, %v5464_v30 }
 0x38a   : > { %v2523_v24 = vpop.permute.xlu1 %2522  ;;  %v2525_v26 = vpop.permute.xlu0 %2524  ;;  %v2430_v50 = vadd.f32 %v6090_v13, %v2235_v47 }
 0x38b   : > { %v2610_v49 = vadd.f32 %v2523_v24, %v2415_v48  ;;  %v2611_v16 = vadd.f32 %v2525_v26, %v2416_v34  ;;  %v2236_v34 = vmul.f32 %v6102_v23, %v5468_v0  ;;  %v2429_v22 = vadd.f32 %v6088_v61, %v2234_v45 }
 0x38c   : > { %v2239_v61 = vmul.f32 %v6102_v23, %v6942_v40 }
 0x38d   : > { %2676 = vperm.xlu1 %4070, %v2610_v49   ;;  %2681 = vperm.xlu0 %4069, %v2611_v16   ;;  %v6939_v49 = vld [vmem:[#allocation109_spill] sm:$0xff] }
 0x38e   : > { %v2527_v3 = vpop.permute.xlu1 %2526  ;;  %v2529_v51 = vpop.permute.xlu0 %2528  ;;  %v2238_v16 = vmul.f32 %v6102_v23, %v6939_v49 }
 0x38f   : > { %v2612_v44 = vadd.f32 %v2527_v3, %v2417_v15  ;;  %v2613_v62 = vadd.f32 %v2529_v51, %v2418_v5  ;;  %v2431_v15 = vadd.f32 %v6940_v53, %v2236_v34  ;;  %v6941_v5 = vld [vmem:[#allocation107_spill] sm:$0xff] }
 0x390   : > { %v2432_v0 = vadd.f32 %v6941_v5, %v2237_v31 }
 0x391   : > { %2686 = vperm.xlu1 %4070, %v2612_v44   ;;  %2691 = vperm.xlu0 %4069, %v2613_v62   ;;  %v6943_v44 = vld [vmem:[#allocation55_spill] sm:$0xff] }
 0x392   : > { %v2531_v58 = vpop.permute.xlu1 %2530  ;;  %v2533_v57 = vpop.permute.xlu0 %2532  ;;  %v2240_v62 = vmul.f32 %v6102_v23, %v6943_v44 }
 0x393   : > { %v2614_v12 = vadd.f32 %v2531_v58, %v2419_v42  ;;  %v2615_v18 = vadd.f32 %v2533_v57, %v2420_v11  ;;  %v2433_v42 = vadd.f32 %v6944_v2, %v2238_v16  ;;  %v6945_v11 = vld [vmem:[#allocation59_spill] sm:$0xff] }
 0x394   : > { %v2434_v41 = vadd.f32 %v6945_v11, %v2239_v61  ;;  %v6946_v58 = vld [vmem:[#allocation95_spill] sm:$0xff] }
 0x395   : > { %2696 = vperm.xlu1 %4070, %v2614_v12   ;;  %2701 = vperm.xlu0 %4069, %v2615_v18   ;;  %v2241_v57 = vmul.f32 %v6102_v23, %v6946_v58 }
 0x396   : > { %v2535_v21 = vpop.permute.xlu1 %2534  ;;  %v2537_v14 = vpop.permute.xlu0 %2536 }
 0x397   : > { %v2616_v17 = vadd.f32 %v2535_v21, %v2421_v60  ;;  %v2617_v38 = vadd.f32 %v2537_v14, %v2422_v1  ;;  %v6947_v1 = vld [vmem:[#allocation96_spill] sm:$0xff]  ;;  %v6948_v21 = vld [vmem:[#allocation98_spill] sm:$0xff] }
 0x398   : > { %v2242_v39 = vmul.f32 %v6102_v23, %v6947_v1  ;;  %v2435_v14 = vadd.f32 %v6948_v21, %v2240_v62 }
 0x399   : > { %2706 = vperm.xlu1 %4070, %v2616_v17   ;;  %2711 = vperm.xlu0 %4069, %v2617_v38   ;;  %v6949_v17 = vld [vmem:[#allocation99_spill] sm:$0xff] }
 0x39a   : > { %v2539_v9 = vpop.permute.xlu1 %2538  ;;  %v2541_v36 = vpop.permute.xlu0 %2540  ;;  %v2436_v38 = vadd.f32 %v6949_v17, %v2241_v57 }
 0x39b   : > { %v2618_v25 = vadd.f32 %v2539_v9, %v2423_v46  ;;  %v2619_v27 = vadd.f32 %v2541_v36, %v2424_v35  ;;  %v2243_v46 = vmul.f32 %v6102_v23, %v6950_v59 }
 0x39d   : > { %2716 = vperm.xlu1 %4070, %v2618_v25   ;;  %2721 = vperm.xlu0 %4069, %v2619_v27   ;;  %v2437_v25 = vadd.f32 %v6112_v56, %v2242_v39  ;;  %v6951_v27 = vld [vmem:[#allocation60_spill] sm:$0xff] }
 0x39e   : > { %v2543_v32 = vpop.permute.xlu1 %2542  ;;  %v2545_v52 = vpop.permute.xlu0 %2544  ;;  %v2438_v55 = vadd.f32 %v6951_v27, %v2243_v46 }
 0x39f   : > { %v2620_v10 = vadd.f32 %v2543_v32, %v2425_v8  ;;  %v2621_v6 = vadd.f32 %v2545_v52, %v2426_v29  ;;  %v4255_v8 = vmov 1e+30  }
 0x3a0   : > { %2826 = vst [vmem:[#allocation6 + $0x98] sm:$0xff] %v4255_v8  ;;  %2827 = vst [vmem:[#allocation6 + $0x48] sm:$0xff] %v4255_v8 }
 0x3a1   : > { %2726 = vperm.xlu1 %4070, %v2620_v10   ;;  %2731 = vperm.xlu0 %4069, %v2621_v6   ;;  %2828 = vst [vmem:[#allocation6 + $0xc0] sm:$0xff] %v4255_v8  ;;  %2829 = vst [vmem:[#allocation6 + $0xe0] sm:$0xff] %v4255_v8 }
 0x3a2   : > { %v2547_v19 = vpop.permute.xlu1 %2546  ;;  %v2549_v7 = vpop.permute.xlu0 %2548  ;;  %2830 = vst [vmem:[#allocation6 + $0x38] sm:$0xff] %v4255_v8  ;;  %2831 = vst [vmem:[#allocation6 + $0x88] sm:$0xff] %v4255_v8 }
 0x3a3   : > { %v2622_v4 = vadd.f32 %v2547_v19, %v2427_v28  ;;  %v2623_v48 = vadd.f32 %v2549_v7, %v2428_v43  ;;  %2832 = vst [vmem:[#allocation6 + $0xb8] sm:$0xff] %v4255_v8  ;;  %2833 = vst [vmem:[#allocation6 + $0xb0] sm:$0xff] %v4255_v8 }
 0x3a4   : > { %2834 = vst [vmem:[#allocation6 + $0xd0] sm:$0xff] %v4255_v8  ;;  %2835 = vst [vmem:[#allocation6 + $0xe8] sm:$0xff] %v4255_v8 }
 0x3a5   : > { %2736 = vperm.xlu1 %4070, %v2622_v4   ;;  %2741 = vperm.xlu0 %4069, %v2623_v48   ;;  %2836 = vst [vmem:[#allocation6 + $0x50] sm:$0xff] %v4255_v8  ;;  %2837 = vst [vmem:[#allocation6 + $0x70] sm:$0xff] %v4255_v8 }
 0x3a6   : > { %v2551_v20 = vpop.permute.xlu1 %2550  ;;  %v2553_v37 = vpop.permute.xlu0 %2552  ;;  %2838 = vst [vmem:[#allocation6 + $0x78] sm:$0xff] %v4255_v8  ;;  %2839 = vst [vmem:[#allocation6] sm:$0xff] %v4255_v8 }
 0x3a7   : > { %v2624_v24 = vadd.f32 %v2551_v20, %v2429_v22  ;;  %v2625_v26 = vadd.f32 %v2553_v37, %v2430_v50  ;;  %2840 = vst [vmem:[#allocation6 + $0x8] sm:$0xff] %v4255_v8  ;;  %2841 = vst [vmem:[#allocation6 + $0x40] sm:$0xff] %v4255_v8 }
 0x3a8   : > { %2842 = vst [vmem:[#allocation6 + $0x90] sm:$0xff] %v4255_v8  ;;  %2843 = vst [vmem:[#allocation6 + $0x18] sm:$0xff] %v4255_v8 }
 0x3a9   : > { %2746 = vperm.xlu1 %4070, %v2624_v24   ;;  %2751 = vperm.xlu0 %4069, %v2625_v26   ;;  %2844 = vst [vmem:[#allocation6 + $0xa0] sm:$0xff] %v4255_v8  ;;  %2845 = vst [vmem:[#allocation6 + $0xd8] sm:$0xff] %v4255_v8 }
 0x3aa   : > { %v2555_v13 = vpop.permute.xlu1 %2554  ;;  %v2557_v30 = vpop.permute.xlu0 %2556  ;;  %2846 = vst [vmem:[#allocation6 + $0x28] sm:$0xff] %v4255_v8  ;;  %2847 = vst [vmem:[#allocation6 + $0x30] sm:$0xff] %v4255_v8 }
 0x3ab   : > { %v2626_v3 = vadd.f32 %v2555_v13, %v2431_v15  ;;  %v2627_v51 = vadd.f32 %v2557_v30, %v2432_v0  ;;  %2848 = vst [vmem:[#allocation6 + $0x80] sm:$0xff] %v4255_v8  ;;  %2849 = vst [vmem:[#allocation6 + $0xa8] sm:$0xff] %v4255_v8 }
 0x3ac   : > { %2850 = vst [vmem:[#allocation6 + $0xf8] sm:$0xff] %v4255_v8  ;;  %2851 = vst [vmem:[#allocation6 + $0xf0] sm:$0xff] %v4255_v8 }
 0x3ad   : > { %2756 = vperm.xlu1 %4070, %v2626_v3   ;;  %2761 = vperm.xlu0 %4069, %v2627_v51   ;;  %2852 = vst [vmem:[#allocation6 + $0x68] sm:$0xff] %v4255_v8  ;;  %2853 = vst [vmem:[#allocation6 + $0x58] sm:$0xff] %v4255_v8 }
 0x3ae   : > { %v2559_v12 = vpop.permute.xlu1 %2558  ;;  %v2561_v18 = vpop.permute.xlu0 %2560  ;;  %2854 = vst [vmem:[#allocation6 + $0x10] sm:$0xff] %v4255_v8  ;;  %2855 = vst [vmem:[#allocation6 + $0x20] sm:$0xff] %v4255_v8 }
 0x3af   : > { %v2628_v54 = vadd.f32 %v2559_v12, %v2433_v42  ;;  %v2629_v60 = vadd.f32 %v2561_v18, %v2434_v41  ;;  %2856 = vst [vmem:[#allocation6 + $0x60] sm:$0xff] %v4255_v8  ;;  %2857 = vst [vmem:[#allocation6 + $0xc8] sm:$0xff] %v4255_v8 }
 0x3b1   : > { %2766 = vperm.xlu1 %4070, %v2628_v54   ;;  %2771 = vperm.xlu0 %4069, %v2629_v60  }
 0x3b2   : > { %v2563_v35 = vpop.permute.xlu1 %2562  ;;  %v2565_v63 = vpop.permute.xlu0 %2564 }
 0x3b3   : > { %v2630_v9 = vadd.f32 %v2563_v35, %v2435_v14  ;;  %v2631_v36 = vadd.f32 %v2565_v63, %v2436_v38 }
 0x3b5   : > { %2776 = vperm.xlu1 %4070, %v2630_v9   ;;  %2781 = vperm.xlu0 %4069, %v2631_v36  }
 0x3b6   : > { %v2567_v23 = vpop.permute.xlu1 %2566  ;;  %v2569_v56 = vpop.permute.xlu0 %2568 }
 0x3b7   : > { %v2632_v29 = vadd.f32 %v2567_v23, %v2437_v25  ;;  %v2633_v33 = vadd.f32 %v2569_v56, %v2438_v55 }
 0x3b9   : > { %2786 = vperm.xlu1 %4070, %v2632_v29   ;;  %2791 = vperm.xlu0 %4069, %v2633_v33  }
 0x3f8   : > { %v2637_v32 = vpop.permute.xlu1 %2636  ;;  %v2642_v52 = vpop.permute.xlu0 %2641 }
 0x3f9   : > { %2794 = vst [vmem:[#allocation5 + $0xb0] sm:$0xff] %v2637_v32  ;;  %2795 = vst [vmem:[#allocation5 + $0xb8] sm:$0xff] %v2642_v52 }
 0x3fc   : > { %v2647_v10 = vpop.permute.xlu1 %2646  ;;  %v2652_v6 = vpop.permute.xlu0 %2651 }
 0x3fd   : > { %2796 = vst [vmem:[#allocation5 + $0xc0] sm:$0xff] %v2647_v10  ;;  %2797 = vst [vmem:[#allocation5 + $0x10] sm:$0xff] %v2652_v6 }
 0x400   : > { %v2657_v45 = vpop.permute.xlu1 %2656  ;;  %v2662_v28 = vpop.permute.xlu0 %2661 }
 0x401   : > { %2798 = vst [vmem:[#allocation5 + $0x28] sm:$0xff] %v2657_v45  ;;  %2799 = vst [vmem:[#allocation5 + $0x30] sm:$0xff] %v2662_v28 }
 0x404   : > { %v2667_v43 = vpop.permute.xlu1 %2666  ;;  %v2672_v47 = vpop.permute.xlu0 %2671 }
 0x405   : > { %2800 = vst [vmem:[#allocation5 + $0xd0] sm:$0xff] %v2667_v43  ;;  %2801 = vst [vmem:[#allocation5 + $0x68] sm:$0xff] %v2672_v47 }
 0x408   : > { %v2677_v19 = vpop.permute.xlu1 %2676  ;;  %v2682_v7 = vpop.permute.xlu0 %2681 }
 0x409   : > { %2802 = vst [vmem:[#allocation5 + $0x58] sm:$0xff] %v2677_v19  ;;  %2803 = vst [vmem:[#allocation5] sm:$0xff] %v2682_v7 }
 0x40c   : > { %v2687_v4 = vpop.permute.xlu1 %2686  ;;  %v2692_v48 = vpop.permute.xlu0 %2691 }
 0x40d   : > { %2804 = vst [vmem:[#allocation5 + $0x48] sm:$0xff] %v2687_v4  ;;  %2805 = vst [vmem:[#allocation5 + $0x40] sm:$0xff] %v2692_v48 }
 0x410   : > { %v2697_v34 = vpop.permute.xlu1 %2696  ;;  %v2702_v22 = vpop.permute.xlu0 %2701 }
 0x411   : > { %2806 = vst [vmem:[#allocation5 + $0x78] sm:$0xff] %v2697_v34  ;;  %2807 = vst [vmem:[#allocation5 + $0xd8] sm:$0xff] %v2702_v22 }
 0x414   : > { %v2707_v50 = vpop.permute.xlu1 %2706  ;;  %v2712_v31 = vpop.permute.xlu0 %2711 }
 0x415   : > { %2808 = vst [vmem:[#allocation5 + $0xe0] sm:$0xff] %v2707_v50  ;;  %2809 = vst [vmem:[#allocation5 + $0x80] sm:$0xff] %v2712_v31 }
 0x418   : > { %v2717_v20 = vpop.permute.xlu1 %2716  ;;  %v2722_v37 = vpop.permute.xlu0 %2721 }
 0x419   : > { %2810 = vst [vmem:[#allocation5 + $0xa0] sm:$0xff] %v2717_v20  ;;  %2811 = vst [vmem:[#allocation5 + $0x18] sm:$0xff] %v2722_v37 }
 0x41c   : > { %v2727_v24 = vpop.permute.xlu1 %2726  ;;  %v2732_v26 = vpop.permute.xlu0 %2731 }
 0x41d   : > { %2812 = vst [vmem:[#allocation5 + $0xf8] sm:$0xff] %v2727_v24  ;;  %2813 = vst [vmem:[#allocation5 + $0xe8] sm:$0xff] %v2732_v26 }
 0x420   : > { %v2737_v49 = vpop.permute.xlu1 %2736  ;;  %v2742_v16 = vpop.permute.xlu0 %2741 }
 0x421   : > { %2814 = vst [vmem:[#allocation5 + $0x90] sm:$0xff] %v2737_v49  ;;  %2815 = vst [vmem:[#allocation5 + $0x20] sm:$0xff] %v2742_v16 }
 0x424   : > { %v2747_v53 = vpop.permute.xlu1 %2746  ;;  %v2752_v15 = vpop.permute.xlu0 %2751 }
 0x425   : > { %2816 = vst [vmem:[#allocation5 + $0x38] sm:$0xff] %v2747_v53  ;;  %2817 = vst [vmem:[#allocation5 + $0x70] sm:$0xff] %v2752_v15 }
 0x428   : > { %v2757_v5 = vpop.permute.xlu1 %2756  ;;  %v2762_v0 = vpop.permute.xlu0 %2761 }
 0x429   : > { %2818 = vst [vmem:[#allocation5 + $0xa8] sm:$0xff] %v2757_v5  ;;  %2819 = vst [vmem:[#allocation5 + $0xf0] sm:$0xff] %v2762_v0 }
 0x42c   : > { %v2767_v40 = vpop.permute.xlu1 %2766  ;;  %v2772_v61 = vpop.permute.xlu0 %2771 }
 0x42d   : > { %2820 = vst [vmem:[#allocation5 + $0x50] sm:$0xff] %v2767_v40  ;;  %2821 = vst [vmem:[#allocation5 + $0x88] sm:$0xff] %v2772_v61 }
 0x430   : > { %v2777_v13 = vpop.permute.xlu1 %2776  ;;  %v2782_v30 = vpop.permute.xlu0 %2781 }
 0x431   : > { %2822 = vst [vmem:[#allocation5 + $0xc8] sm:$0xff] %v2777_v13  ;;  %2823 = vst [vmem:[#allocation5 + $0x98] sm:$0xff] %v2782_v30 }
 0x434   : > { %v2787_v3 = vpop.permute.xlu1 %2786  ;;  %v2792_v51 = vpop.permute.xlu0 %2791 }
 0x435   : > { %2824 = vst [vmem:[#allocation5 + $0x60] sm:$0xff] %v2787_v3  ;;  %2825 = vst [vmem:[#allocation5 + $0x8] sm:$0xff] %v2792_v51 }
 0x436 LB: >> { %s3929_s2 = sshll.u32 %s4243_s20, 7  ;;  %v2875_v44 = vld [vmem:[#allocation3 + $0xb0] sm:$0xff]  ;;  %v2877_v62 = vld [vmem:[#allocation4 + $0x80] sm:$0xff]  ;;  %v2892_v11 = vld [vmem:[#allocation4 + $0xc8] sm:$0xff]  ;;  %s2863_s20 = sadd.s32 1, %s4243_s20   ;;  %s4243_s20 = sphi %s6200_s20, %s2863_s20  }
 0x437   : >> { %s6206_s25 = sshra.s32 %s3929_s2, 7  ;;  %v2879_v2 = vld [vmem:[#allocation5 + $0xb0] sm:$0xff]  ;;  %v2890_v42 = vld [vmem:[#allocation3] sm:$0xff]  ;;  %v2894_v41 = vld [vmem:[#allocation5 + $0xb8] sm:$0xff]  ;;  %p2860_p11 = scmp.ge.s32.totalorder %s2863_s20, 8  }
 0x438   : >> { %s3930_s3 = sshll.u32 %s6206_s25, 3  ;;  %v2905_v58 = vld [vmem:[#allocation3 + $0xd8] sm:$0xff]  ;;  %v2907_v57 = vld [vmem:[#allocation4 + $0xe8] sm:$0xff]  ;;  %v2909_v14 = vld [vmem:[#allocation5 + $0xc0] sm:$0xff]  ;;  %s3932_s27 = sshll.u32 (%p2860_p11), %s4223_s24, 8  ;;  %vm3584_vm4 = vcmask (%p2860_p11), 7168  }
 0x439   : >> { %s2868_s4 = scalar_lea.vmem [#allocation2], %s3930_s3  ;;  %v2920_v35 = vld [vmem:[#allocation3 + $0x18] sm:$0xff]  ;;  %v2924_v55 = vld [vmem:[#allocation5 + $0x10] sm:$0xff]  ;;  %v2937_v45 = vld [vmem:[#allocation4 + $0x8] sm:$0xff]  ;;  %s2873_s26 = scalar_lea.vmem [#allocation7], %s3930_s3 }
 0x43a   : >> { %v6211_v12 = vld [vmem:[%s2868_s4] ss:$0 sm:$0xff]  ;;  %v6213_v18 = vld [vmem:[%s2868_s4 + $0x1] ss:$0 sm:$0xff]  ;;  %v6215_v54 = vld [vmem:[%s2868_s4 + $0x2] ss:$0 sm:$0xff] }
 0x43b   : >> { %v2876_v60 = vsub.f32 %v2875_v44, %v6211_v12  ;;  %v2878_v1 = vsub.f32 %v2877_v62, %v6213_v18  ;;  %v2880_v39 = vsub.f32 %v2879_v2, %v6215_v54  ;;  %v2891_v21 = vsub.f32 %v2890_v42, %v6211_v12  ;;  %v2922_v63 = vld [vmem:[#allocation4 + $0x78] sm:$0xff]  ;;  %v2935_v8 = vld [vmem:[#allocation3 + $0x50] sm:$0xff]  ;;  %v2939_v28 = vld [vmem:[#allocation5 + $0x28] sm:$0xff]  ;;  %s3551_s8 = sld [smem:[#allocation8]] (%p2860_p11)  ;;  %p3933_p12 = scmp.ne.s32.totalorder (%p2860_p11), %s4223_s24, 2 }
 0x43c   : >> { %v2893_v17 = vsub.f32 %v2892_v11, %v6213_v18  ;;  %v2895_v38 = vsub.f32 %v2894_v41, %v6215_v54  ;;  %v2906_v59 = vsub.f32 %v2905_v58, %v6211_v12  ;;  %v2908_v46 = vsub.f32 %v2907_v57, %v6213_v18  ;;  %v2886_v43 = vld [vmem:[#allocation6 + $0x98] sm:$0xff]  ;;  %v2901_v34 = vld [vmem:[#allocation6 + $0x48] sm:$0xff]  ;;  %v2916_v37 = vld [vmem:[#allocation6 + $0xc0] sm:$0xff] }
 0x43d   : >> { %v2881_v9 = vmul.f32 %v2876_v60, %v2876_v60  ;;  %v2882_v36 = vmul.f32 %v2878_v1, %v2878_v1  ;;  %v2884_v25 = vmul.f32 %v2880_v39, %v2880_v39  ;;  %v2896_v27 = vmul.f32 %v2891_v21, %v2891_v21  ;;  %v2950_v16 = vld [vmem:[#allocation3 + $0x68] sm:$0xff]  ;;  %v2952_v53 = vld [vmem:[#allocation4 + $0x90] sm:$0xff]  ;;  %v2931_v51 = vld [vmem:[#allocation6 + $0xe0] sm:$0xff] }
 0x43e   : >> { %v2897_v23 = vmul.f32 %v2893_v17, %v2893_v17  ;;  %v2899_v56 = vmul.f32 %v2895_v38, %v2895_v38  ;;  %v2910_v29 = vsub.f32 %v2909_v14, %v6215_v54  ;;  %v2911_v33 = vmul.f32 %v2906_v59, %v2906_v59  ;;  %v2954_v61 = vld [vmem:[#allocation5 + $0x30] sm:$0xff]  ;;  %v2967_v2 = vld [vmem:[#allocation4 + $0x58] sm:$0xff]  ;;  %v2980_v14 = vld [vmem:[#allocation3 + $0x48] sm:$0xff] }
 0x43f   : >> { %v2883_v32 = vadd.f32 %v2882_v36, %v2881_v9  ;;  %v2912_v52 = vmul.f32 %v2908_v46, %v2908_v46  ;;  %v2921_v10 = vsub.f32 %v2920_v35, %v6211_v12  ;;  %v2923_v6 = vsub.f32 %v2922_v63, %v6213_v18  ;;  %v2965_v13 = vld [vmem:[#allocation3 + $0x30] sm:$0xff]  ;;  %v2946_v38 = vld [vmem:[#allocation6 + $0x38] sm:$0xff]  ;;  %v2982_v63 = vld [vmem:[#allocation4 + $0xa8] sm:$0xff] }
 0x440   : >> { %v2898_v47 = vadd.f32 %v2897_v23, %v2896_v27  ;;  %v2914_v19 = vmul.f32 %v2910_v29, %v2910_v29  ;;  %v2925_v7 = vsub.f32 %v2924_v55, %v6215_v54  ;;  %v2936_v4 = vsub.f32 %v2935_v8, %v6211_v12  ;;  %v2969_v57 = vld [vmem:[#allocation5 + $0xd0] sm:$0xff]  ;;  %v2984_v55 = vld [vmem:[#allocation5 + $0x68] sm:$0xff] }
 0x441   : >> { %v2885_v48 = vadd.f32 %v2884_v25, %v2883_v32  ;;  %v2913_v22 = vadd.f32 %v2912_v52, %v2911_v33  ;;  %v2926_v50 = vmul.f32 %v2921_v10, %v2921_v10  ;;  %v2927_v31 = vmul.f32 %v2923_v6, %v2923_v6  ;;  %v2995_v33 = vld [vmem:[#allocation3 + $0x80] sm:$0xff]  ;;  %v2997_v32 = vld [vmem:[#allocation4 + $0xd0] sm:$0xff]  ;;  %v2999_v52 = vld [vmem:[#allocation5 + $0x58] sm:$0xff] }
 0x442   : >> { %v2900_v20 = vadd.f32 %v2899_v56, %v2898_v47  ;;  %v2929_v24 = vmul.f32 %v2925_v7, %v2925_v7  ;;  %v2938_v26 = vsub.f32 %v2937_v45, %v6213_v18  ;;  %v2940_v49 = vsub.f32 %v2939_v28, %v6215_v54  ;;  %v2961_v45 = vld [vmem:[#allocation6 + $0x88] sm:$0xff] }
 0x443   : >> { %v2887_v15 = vmin.f32 %v2886_v43, %v2885_v48  ;;  %v2915_v5 = vadd.f32 %v2914_v19, %v2913_v22  ;;  %v2928_v0 = vadd.f32 %v2927_v31, %v2926_v50  ;;  %v2941_v40 = vmul.f32 %v2936_v4, %v2936_v4 }
 0x444   : >> { %v2889_v30 = vmin.f32 %v2900_v20, %v2885_v48  ;;  %v2902_v3 = vmin.f32 %v2901_v34, %v2900_v20  ;;  %v2942_v44 = vmul.f32 %v2938_v26, %v2938_v26  ;;  %v2944_v62 = vmul.f32 %v2940_v49, %v2940_v49  ;;  %v2976_v48 = vld [vmem:[#allocation6 + $0xb8] sm:$0xff]  ;;  %v3010_v20 = vld [vmem:[#allocation3 + $0x88] sm:$0xff] }
 0x445   : >> { %2888 = vst [vmem:[#allocation6 + $0x98] sm:$0xff] %v2887_v15  ;;  %v2917_v42 = vmin.f32 %v2916_v37, %v2915_v5  ;;  %v2930_v11 = vadd.f32 %v2929_v24, %v2928_v0  ;;  %v2951_v41 = vsub.f32 %v2950_v16, %v6211_v12  ;;  %v2953_v58 = vsub.f32 %v2952_v53, %v6213_v18  ;;  %v3012_v37 = vld [vmem:[#allocation4 + $0xb0] sm:$0xff]  ;;  %v3014_v53 = vld [vmem:[#allocation5] sm:$0xff]  ;;  %v3025_v15 = vld [vmem:[#allocation3 + $0xe8] sm:$0xff] }
 0x446   : >> { %2903 = vst [vmem:[#allocation6 + $0x48] sm:$0xff] %v2902_v3  ;;  %v2904_v60 = vmin.f32 %v2889_v30, %v2915_v5  ;;  %v2943_v1 = vadd.f32 %v2942_v44, %v2941_v40  ;;  %v2955_v39 = vsub.f32 %v2954_v61, %v6215_v54  ;;  %v2966_v21 = vsub.f32 %v2965_v13, %v6211_v12  ;;  %v3027_v13 = vld [vmem:[#allocation4 + $0x38] sm:$0xff]  ;;  %v3029_v30 = vld [vmem:[#allocation5 + $0x48] sm:$0xff]  ;;  %v2991_v44 = vld [vmem:[#allocation6 + $0xb0] sm:$0xff] }
 0x447   : >> { %2918 = vst [vmem:[#allocation6 + $0xc0] sm:$0xff] %v2917_v42  ;;  %v2932_v17 = vmin.f32 %v2931_v51, %v2930_v11  ;;  %v2956_v59 = vmul.f32 %v2951_v41, %v2951_v41  ;;  %v2957_v46 = vmul.f32 %v2953_v58, %v2953_v58  ;;  %v2968_v35 = vsub.f32 %v2967_v2, %v6213_v18 }
 0x448   : >> { %v2919_v9 = vmin.f32 %v2904_v60, %v2930_v11  ;;  %v2945_v36 = vadd.f32 %v2944_v62, %v2943_v1  ;;  %v2959_v25 = vmul.f32 %v2955_v39, %v2955_v39  ;;  %v2970_v27 = vsub.f32 %v2969_v57, %v6215_v54  ;;  %v3006_v57 = vld [vmem:[#allocation6 + $0xd0] sm:$0xff] }
 0x449   : >> { %2933 = vst [vmem:[#allocation6 + $0xe0] sm:$0xff] %v2932_v17  ;;  %v2958_v8 = vadd.f32 %v2957_v46, %v2956_v59  ;;  %v2971_v23 = vmul.f32 %v2966_v21, %v2966_v21  ;;  %v2972_v56 = vmul.f32 %v2968_v35, %v2968_v35  ;;  %v2981_v29 = vsub.f32 %v2980_v14, %v6211_v12  ;;  %v3040_v14 = vld [vmem:[#allocation3 + $0xb8] sm:$0xff]  ;;  %v3042_v17 = vld [vmem:[#allocation4 + $0x40] sm:$0xff] }
 0x44a   : >> { %v2934_v10 = vmin.f32 %v2919_v9, %v2945_v36  ;;  %v2947_v6 = vmin.f32 %v2946_v38, %v2945_v36  ;;  %v2974_v28 = vmul.f32 %v2970_v27, %v2970_v27  ;;  %v2983_v43 = vsub.f32 %v2982_v63, %v6213_v18  ;;  %v3044_v63 = vld [vmem:[#allocation5 + $0x40] sm:$0xff] }
 0x44b   : >> { %v2960_v47 = vadd.f32 %v2959_v25, %v2958_v8  ;;  %v2973_v19 = vadd.f32 %v2972_v56, %v2971_v23  ;;  %v2985_v7 = vsub.f32 %v2984_v55, %v6215_v54  ;;  %v2986_v4 = vmul.f32 %v2981_v29, %v2981_v29  ;;  %v3055_v9 = vld [vmem:[#allocation3 + $0x60] sm:$0xff]  ;;  %v3059_v23 = vld [vmem:[#allocation5 + $0x78] sm:$0xff] }
 0x44c   : >> { %2948 = vst [vmem:[#allocation6 + $0x38] sm:$0xff] %v2947_v6  ;;  %v2987_v34 = vmul.f32 %v2983_v43, %v2983_v43  ;;  %v2996_v22 = vsub.f32 %v2995_v33, %v6211_v12  ;;  %v2998_v50 = vsub.f32 %v2997_v32, %v6213_v18  ;;  %v3000_v31 = vsub.f32 %v2999_v52, %v6215_v54  ;;  %v3057_v8 = vld [vmem:[#allocation4 + $0xe0] sm:$0xff]  ;;  %v3021_v33 = vld [vmem:[#allocation6 + $0xe8] sm:$0xff]  ;;  %v3036_v43 = vld [vmem:[#allocation6 + $0x50] sm:$0xff] }
 0x44d   : >> { %v2949_v24 = vmin.f32 %v2934_v10, %v2960_v47  ;;  %v2962_v26 = vmin.f32 %v2961_v45, %v2960_v47  ;;  %v2975_v49 = vadd.f32 %v2974_v28, %v2973_v19  ;;  %v2989_v16 = vmul.f32 %v2985_v7, %v2985_v7 }
 0x44e   : >> { %v2988_v5 = vadd.f32 %v2987_v34, %v2986_v4  ;;  %v3001_v0 = vmul.f32 %v2996_v22, %v2996_v22  ;;  %v3002_v40 = vmul.f32 %v2998_v50, %v2998_v50  ;;  %v3004_v61 = vmul.f32 %v3000_v31, %v3000_v31  ;;  %v3072_v34 = vld [vmem:[#allocation4 + $0x60] sm:$0xff] }
 0x44f   : >> { %2963 = vst [vmem:[#allocation6 + $0x88] sm:$0xff] %v2962_v26  ;;  %v2964_v3 = vmin.f32 %v2949_v24, %v2975_v49  ;;  %v2977_v51 = vmin.f32 %v2976_v48, %v2975_v49  ;;  %v3011_v62 = vsub.f32 %v3010_v20, %v6211_v12  ;;  %v3013_v2 = vsub.f32 %v3012_v37, %v6213_v18  ;;  %v3070_v48 = vld [vmem:[#allocation3 + $0xf0] sm:$0xff]  ;;  %v3074_v37 = vld [vmem:[#allocation5 + $0xd8] sm:$0xff]  ;;  %v3085_v24 = vld [vmem:[#allocation3 + $0x8] sm:$0xff] }
 0x450   : >> { %v2990_v42 = vadd.f32 %v2989_v16, %v2988_v5  ;;  %v3003_v11 = vadd.f32 %v3002_v40, %v3001_v0  ;;  %v3015_v41 = vsub.f32 %v3014_v53, %v6215_v54  ;;  %v3026_v58 = vsub.f32 %v3025_v15, %v6211_v12  ;;  %v3087_v15 = vld [vmem:[#allocation4 + $0x18] sm:$0xff]  ;;  %v3089_v5 = vld [vmem:[#allocation5 + $0xe0] sm:$0xff] }
 0x451   : >> { %2978 = vst [vmem:[#allocation6 + $0xb8] sm:$0xff] %v2977_v51  ;;  %v3016_v60 = vmul.f32 %v3011_v62, %v3011_v62  ;;  %v3017_v1 = vmul.f32 %v3013_v2, %v3013_v2  ;;  %v3028_v39 = vsub.f32 %v3027_v13, %v6213_v18  ;;  %v3030_v21 = vsub.f32 %v3029_v30, %v6215_v54  ;;  %v3066_v2 = vld [vmem:[#allocation6 + $0x78] sm:$0xff] }
 0x452   : >> { %v2979_v38 = vmin.f32 %v2964_v3, %v2990_v42  ;;  %v2992_v59 = vmin.f32 %v2991_v44, %v2990_v42  ;;  %v3005_v46 = vadd.f32 %v3004_v61, %v3003_v11  ;;  %v3019_v35 = vmul.f32 %v3015_v41, %v3015_v41  ;;  %v3051_v61 = vld [vmem:[#allocation6 + $0x70] sm:$0xff] }
 0x453   : >> { %v3018_v36 = vadd.f32 %v3017_v1, %v3016_v60  ;;  %v3031_v25 = vmul.f32 %v3026_v58, %v3026_v58  ;;  %v3032_v27 = vmul.f32 %v3028_v39, %v3028_v39  ;;  %v3034_v55 = vmul.f32 %v3030_v21, %v3030_v21  ;;  %v3102_v60 = vld [vmem:[#allocation4 + $0x68] sm:$0xff] }
 0x454   : >> { %2993 = vst [vmem:[#allocation6 + $0xb0] sm:$0xff] %v2992_v59  ;;  %v2994_v56 = vmin.f32 %v2979_v38, %v3005_v46  ;;  %v3007_v29 = vmin.f32 %v3006_v57, %v3005_v46  ;;  %v3041_v32 = vsub.f32 %v3040_v14, %v6211_v12  ;;  %v3043_v52 = vsub.f32 %v3042_v17, %v6213_v18  ;;  %v3100_v57 = vld [vmem:[#allocation3 + $0x78] sm:$0xff]  ;;  %v3104_v17 = vld [vmem:[#allocation5 + $0x80] sm:$0xff] }
 0x455   : >> { %v3020_v10 = vadd.f32 %v3019_v35, %v3018_v36  ;;  %v3033_v6 = vadd.f32 %v3032_v27, %v3031_v25  ;;  %v3045_v45 = vsub.f32 %v3044_v63, %v6215_v54  ;;  %v3056_v28 = vsub.f32 %v3055_v9, %v6211_v12  ;;  %v3115_v38 = vld [vmem:[#allocation3 + $0x38] sm:$0xff]  ;;  %v3117_v9 = vld [vmem:[#allocation4 + $0x10] sm:$0xff]  ;;  %v3119_v36 = vld [vmem:[#allocation5 + $0xa0] sm:$0xff] }
 0x456   : >> { %3008 = vst [vmem:[#allocation6 + $0xd0] sm:$0xff] %v3007_v29  ;;  %v3046_v47 = vmul.f32 %v3041_v32, %v3041_v32  ;;  %v3047_v19 = vmul.f32 %v3043_v52, %v3043_v52  ;;  %v3058_v7 = vsub.f32 %v3057_v8, %v6213_v18  ;;  %v3060_v4 = vsub.f32 %v3059_v23, %v6215_v54  ;;  %v3096_v52 = vld [vmem:[#allocation6 + $0x8] sm:$0xff] }
 0x457   : >> { %v3009_v22 = vmin.f32 %v2994_v56, %v3020_v10  ;;  %v3022_v50 = vmin.f32 %v3021_v33, %v3020_v10  ;;  %v3035_v31 = vadd.f32 %v3034_v55, %v3033_v6  ;;  %v3049_v20 = vmul.f32 %v3045_v45, %v3045_v45  ;;  %v3081_v55 = vld [vmem:[#allocation6] sm:$0xff] }
 0x458   : >> { %v3048_v26 = vadd.f32 %v3047_v19, %v3046_v47  ;;  %v3061_v49 = vmul.f32 %v3056_v28, %v3056_v28  ;;  %v3062_v16 = vmul.f32 %v3058_v7, %v3058_v7  ;;  %v3064_v53 = vmul.f32 %v3060_v4, %v3060_v4  ;;  %v3132_v47 = vld [vmem:[#allocation4 + $0x70] sm:$0xff] }
 0x459   : >> { %3023 = vst [vmem:[#allocation6 + $0xe8] sm:$0xff] %v3022_v50  ;;  %v3024_v0 = vmin.f32 %v3009_v22, %v3035_v31  ;;  %v3037_v40 = vmin.f32 %v3036_v43, %v3035_v31  ;;  %v3071_v13 = vsub.f32 %v3070_v48, %v6211_v12  ;;  %v3073_v30 = vsub.f32 %v3072_v34, %v6213_v18  ;;  %v3130_v43 = vld [vmem:[#allocation3 + $0x58] sm:$0xff]  ;;  %v3145_v22 = vld [vmem:[#allocation3 + $0x40] sm:$0xff] }
 0x45a   : >> { %v3050_v3 = vadd.f32 %v3049_v20, %v3048_v26  ;;  %v3063_v51 = vadd.f32 %v3062_v16, %v3061_v49  ;;  %v3075_v44 = vsub.f32 %v3074_v37, %v6215_v54  ;;  %v3086_v62 = vsub.f32 %v3085_v24, %v6211_v12  ;;  %v3134_v34 = vld [vmem:[#allocation5 + $0x18] sm:$0xff]  ;;  %v3147_v24 = vld [vmem:[#allocation4 + $0x50] sm:$0xff] }
 0x45b   : >> { %3038 = vst [vmem:[#allocation6 + $0x50] sm:$0xff] %v3037_v40  ;;  %v3076_v42 = vmul.f32 %v3071_v13, %v3071_v13  ;;  %v3077_v11 = vmul.f32 %v3073_v30, %v3073_v30  ;;  %v3088_v41 = vsub.f32 %v3087_v15, %v6213_v18  ;;  %v3090_v58 = vsub.f32 %v3089_v5, %v6215_v54  ;;  %v3149_v26 = vld [vmem:[#allocation5 + $0xf8] sm:$0xff]  ;;  %v3126_v30 = vld [vmem:[#allocation6 + $0x90] sm:$0xff] }
 0x45c   : >> { %v3039_v1 = vmin.f32 %v3024_v0, %v3050_v3  ;;  %v3052_v39 = vmin.f32 %v3051_v61, %v3050_v3  ;;  %v3065_v21 = vadd.f32 %v3064_v53, %v3063_v51  ;;  %v3079_v14 = vmul.f32 %v3075_v44, %v3075_v44  ;;  %v3111_v53 = vld [vmem:[#allocation6 + $0x40] sm:$0xff] }
 0x45d   : >> { %v3078_v59 = vadd.f32 %v3077_v11, %v3076_v42  ;;  %v3091_v46 = vmul.f32 %v3086_v62, %v3086_v62  ;;  %v3092_v35 = vmul.f32 %v3088_v41, %v3088_v41  ;;  %v3094_v63 = vmul.f32 %v3090_v58, %v3090_v58  ;;  %v3162_v42 = vld [vmem:[#allocation4 + $0xa0] sm:$0xff] }
 0x45e   : >> { %3053 = vst [vmem:[#allocation6 + $0x70] sm:$0xff] %v3052_v39  ;;  %v3054_v25 = vmin.f32 %v3039_v1, %v3065_v21  ;;  %v3067_v27 = vmin.f32 %v3066_v2, %v3065_v21  ;;  %v3101_v8 = vsub.f32 %v3100_v57, %v6211_v12  ;;  %v3103_v23 = vsub.f32 %v3102_v60, %v6213_v18  ;;  %v3160_v2 = vld [vmem:[#allocation3 + $0xc8] sm:$0xff]  ;;  %v3175_v1 = vld [vmem:[#allocation3 + $0xe0] sm:$0xff] }
 0x45f   : >> { %v3080_v56 = vadd.f32 %v3079_v14, %v3078_v59  ;;  %v3093_v29 = vadd.f32 %v3092_v35, %v3091_v46  ;;  %v3105_v33 = vsub.f32 %v3104_v17, %v6215_v54  ;;  %v3116_v32 = vsub.f32 %v3115_v38, %v6211_v12  ;;  %v3164_v60 = vld [vmem:[#allocation5 + $0xe8] sm:$0xff]  ;;  %v3177_v38 = vld [vmem:[#allocation4 + $0xd8] sm:$0xff]  ;;  %v3179_v59 = vld [vmem:[#allocation5 + $0x90] sm:$0xff] }
 0x460   : >> { %3068 = vst [vmem:[#allocation6 + $0x78] sm:$0xff] %v3067_v27  ;;  %v3106_v10 = vmul.f32 %v3101_v8, %v3101_v8  ;;  %v3107_v6 = vmul.f32 %v3103_v23, %v3103_v23  ;;  %v3118_v45 = vsub.f32 %v3117_v9, %v6213_v18  ;;  %v3120_v28 = vsub.f32 %v3119_v36, %v6215_v54  ;;  %v3156_v23 = vld [vmem:[#allocation6 + $0xa0] sm:$0xff] }
 0x461   : >> { %v3069_v19 = vmin.f32 %v3054_v25, %v3080_v56  ;;  %v3082_v7 = vmin.f32 %v3081_v55, %v3080_v56  ;;  %v3095_v4 = vadd.f32 %v3094_v63, %v3093_v29  ;;  %v3109_v48 = vmul.f32 %v3105_v33, %v3105_v33  ;;  %v3141_v63 = vld [vmem:[#allocation6 + $0x18] sm:$0xff] }
 0x462   : >> { %v3108_v50 = vadd.f32 %v3107_v6, %v3106_v10  ;;  %v3121_v31 = vmul.f32 %v3116_v32, %v3116_v32  ;;  %v3122_v20 = vmul.f32 %v3118_v45, %v3118_v45  ;;  %v3124_v37 = vmul.f32 %v3120_v28, %v3120_v28  ;;  %v3192_v10 = vld [vmem:[#allocation4 + $0x30] sm:$0xff] }
 0x463   : >> { %3083 = vst [vmem:[#allocation6] sm:$0xff] %v3082_v7  ;;  %v3084_v49 = vmin.f32 %v3069_v19, %v3095_v4  ;;  %v3097_v16 = vmin.f32 %v3096_v52, %v3095_v4  ;;  %v3131_v15 = vsub.f32 %v3130_v43, %v6211_v12  ;;  %v3133_v5 = vsub.f32 %v3132_v47, %v6213_v18  ;;  %v3190_v52 = vld [vmem:[#allocation3 + $0x90] sm:$0xff]  ;;  %v3194_v47 = vld [vmem:[#allocation5 + $0x20] sm:$0xff] }
 0x464   : >> { %v3110_v0 = vadd.f32 %v3109_v48, %v3108_v50  ;;  %v3123_v40 = vadd.f32 %v3122_v20, %v3121_v31  ;;  %v3135_v61 = vsub.f32 %v3134_v34, %v6215_v54  ;;  %v3146_v13 = vsub.f32 %v3145_v22, %v6211_v12  ;;  %v3205_v19 = vld [vmem:[#allocation3 + $0x70] sm:$0xff]  ;;  %v3207_v22 = vld [vmem:[#allocation4 + $0x20] sm:$0xff]  ;;  %v3209_v50 = vld [vmem:[#allocation5 + $0x38] sm:$0xff] }
 0x465   : >> { %3098 = vst [vmem:[#allocation6 + $0x8] sm:$0xff] %v3097_v16  ;;  %v3136_v3 = vmul.f32 %v3131_v15, %v3131_v15  ;;  %v3137_v51 = vmul.f32 %v3133_v5, %v3133_v5  ;;  %v3148_v44 = vsub.f32 %v3147_v24, %v6213_v18  ;;  %v3150_v62 = vsub.f32 %v3149_v26, %v6215_v54  ;;  %v3186_v5 = vld [vmem:[#allocation6 + $0x28] sm:$0xff] }
 0x466   : >> { %v3099_v11 = vmin.f32 %v3084_v49, %v3110_v0  ;;  %v3112_v41 = vmin.f32 %v3111_v53, %v3110_v0  ;;  %v3125_v58 = vadd.f32 %v3124_v37, %v3123_v40  ;;  %v3139_v57 = vmul.f32 %v3135_v61, %v3135_v61  ;;  %v3171_v37 = vld [vmem:[#allocation6 + $0xd8] sm:$0xff] }
 0x467   : >> { %v3138_v39 = vadd.f32 %v3137_v51, %v3136_v3  ;;  %v3151_v21 = vmul.f32 %v3146_v13, %v3146_v13  ;;  %v3152_v14 = vmul.f32 %v3148_v44, %v3148_v44  ;;  %v3154_v17 = vmul.f32 %v3150_v62, %v3150_v62  ;;  %v3222_v3 = vld [vmem:[#allocation4 + $0xf0] sm:$0xff] }
 0x468   : >> { %3113 = vst [vmem:[#allocation6 + $0x40] sm:$0xff] %v3112_v41  ;;  %v3114_v46 = vmin.f32 %v3099_v11, %v3125_v58  ;;  %v3127_v35 = vmin.f32 %v3126_v30, %v3125_v58  ;;  %v3161_v9 = vsub.f32 %v3160_v2, %v6211_v12  ;;  %v3163_v36 = vsub.f32 %v3162_v42, %v6213_v18  ;;  %v3220_v30 = vld [vmem:[#allocation3 + $0xc0] sm:$0xff]  ;;  %v3224_v42 = vld [vmem:[#allocation5 + $0x70] sm:$0xff]  ;;  %v3235_v11 = vld [vmem:[#allocation3 + $0xa8] sm:$0xff] }
 0x469   : >> { %v3140_v25 = vadd.f32 %v3139_v57, %v3138_v39  ;;  %v3153_v27 = vadd.f32 %v3152_v14, %v3151_v21  ;;  %v3165_v55 = vsub.f32 %v3164_v60, %v6215_v54  ;;  %v3176_v8 = vsub.f32 %v3175_v1, %v6211_v12  ;;  %v3237_v1 = vld [vmem:[#allocation4 + $0x88] sm:$0xff] }
 0x46a   : >> { %3128 = vst [vmem:[#allocation6 + $0x90] sm:$0xff] %v3127_v35  ;;  %v3166_v56 = vmul.f32 %v3161_v9, %v3161_v9  ;;  %v3167_v29 = vmul.f32 %v3163_v36, %v3163_v36  ;;  %v3178_v33 = vsub.f32 %v3177_v38, %v6213_v18  ;;  %v3180_v32 = vsub.f32 %v3179_v59, %v6215_v54  ;;  %v3239_v39 = vld [vmem:[#allocation5 + $0xa8] sm:$0xff]  ;;  %v3216_v36 = vld [vmem:[#allocation6 + $0x80] sm:$0xff] }
 0x46b   : >> { %v3129_v6 = vmin.f32 %v3114_v46, %v3140_v25  ;;  %v3142_v45 = vmin.f32 %v3141_v63, %v3140_v25  ;;  %v3155_v28 = vadd.f32 %v3154_v17, %v3153_v27  ;;  %v3169_v43 = vmul.f32 %v3165_v55, %v3165_v55  ;;  %v3201_v17 = vld [vmem:[#allocation6 + $0x30] sm:$0xff] }
 0x46c   : >> { %v3168_v7 = vadd.f32 %v3167_v29, %v3166_v56  ;;  %v3181_v4 = vmul.f32 %v3176_v8, %v3176_v8  ;;  %v3182_v48 = vmul.f32 %v3178_v33, %v3178_v33  ;;  %v3184_v34 = vmul.f32 %v3180_v32, %v3180_v32  ;;  %v3252_v56 = vld [vmem:[#allocation4 + $0x48] sm:$0xff] }
 0x46d   : >> { %3143 = vst [vmem:[#allocation6 + $0x18] sm:$0xff] %v3142_v45  ;;  %v3144_v31 = vmin.f32 %v3129_v6, %v3155_v28  ;;  %v3157_v20 = vmin.f32 %v3156_v23, %v3155_v28  ;;  %v3191_v24 = vsub.f32 %v3190_v52, %v6211_v12  ;;  %v3193_v26 = vsub.f32 %v3192_v10, %v6213_v18  ;;  %v3250_v23 = vld [vmem:[#allocation3 + $0xd0] sm:$0xff] }
 0x46e   : >> { %v3170_v49 = vadd.f32 %v3169_v43, %v3168_v7  ;;  %v3183_v16 = vadd.f32 %v3182_v48, %v3181_v4  ;;  %v3195_v53 = vsub.f32 %v3194_v47, %v6215_v54  ;;  %v3206_v15 = vsub.f32 %v3205_v19, %v6211_v12  ;;  %v3254_v10 = vld [vmem:[#allocation5 + $0xf0] sm:$0xff]  ;;  %v3267_v19 = vld [vmem:[#allocation4 + $0xf8] sm:$0xff] }
 0x46f   : >> { %3158 = vst [vmem:[#allocation6 + $0xa0] sm:$0xff] %v3157_v20  ;;  %v3196_v0 = vmul.f32 %v3191_v24, %v3191_v24  ;;  %v3197_v40 = vmul.f32 %v3193_v26, %v3193_v26  ;;  %v3208_v61 = vsub.f32 %v3207_v22, %v6213_v18  ;;  %v3210_v13 = vsub.f32 %v3209_v50, %v6215_v54  ;;  %v3265_v6 = vld [vmem:[#allocation3 + $0x10] sm:$0xff]  ;;  %v3246_v26 = vld [vmem:[#allocation6 + $0xf8] sm:$0xff] }
 0x470   : >> { %v3159_v51 = vmin.f32 %v3144_v31, %v3170_v49  ;;  %v3172_v44 = vmin.f32 %v3171_v37, %v3170_v49  ;;  %v3185_v62 = vadd.f32 %v3184_v34, %v3183_v16  ;;  %v3199_v2 = vmul.f32 %v3195_v53, %v3195_v53  ;;  %v3269_v7 = vld [vmem:[#allocation5 + $0x50] sm:$0xff]  ;;  %v3231_v34 = vld [vmem:[#allocation6 + $0xa8] sm:$0xff] }
 0x471   : >> { %v3198_v41 = vadd.f32 %v3197_v40, %v3196_v0  ;;  %v3211_v58 = vmul.f32 %v3206_v15, %v3206_v15  ;;  %v3212_v57 = vmul.f32 %v3208_v61, %v3208_v61  ;;  %v3214_v60 = vmul.f32 %v3210_v13, %v3210_v13  ;;  %v3282_v0 = vld [vmem:[#allocation4 + $0xc0] sm:$0xff] }
 0x472   : >> { %3173 = vst [vmem:[#allocation6 + $0xd8] sm:$0xff] %v3172_v44  ;;  %v3174_v21 = vmin.f32 %v3159_v51, %v3185_v62  ;;  %v3187_v14 = vmin.f32 %v3186_v5, %v3185_v62  ;;  %v3221_v38 = vsub.f32 %v3220_v30, %v6211_v12  ;;  %v3223_v59 = vsub.f32 %v3222_v3, %v6213_v18  ;;  %v3280_v5 = vld [vmem:[#allocation3 + $0x28] sm:$0xff]  ;;  %v3295_v51 = vld [vmem:[#allocation3 + $0xa0] sm:$0xff] }
 0x473   : >> { %v3200_v46 = vadd.f32 %v3199_v2, %v3198_v41  ;;  %v3213_v35 = vadd.f32 %v3212_v57, %v3211_v58  ;;  %v3225_v63 = vsub.f32 %v3224_v42, %v6215_v54  ;;  %v3236_v9 = vsub.f32 %v3235_v11, %v6211_v12  ;;  %v3284_v3 = vld [vmem:[#allocation5 + $0x88] sm:$0xff]  ;;  %v3297_v11 = vld [vmem:[#allocation4 + $0xb8] sm:$0xff] }
 0x474   : >> { %3188 = vst [vmem:[#allocation6 + $0x28] sm:$0xff] %v3187_v14  ;;  %v3226_v25 = vmul.f32 %v3221_v38, %v3221_v38  ;;  %v3227_v27 = vmul.f32 %v3223_v59, %v3223_v59  ;;  %v3238_v55 = vsub.f32 %v3237_v1, %v6213_v18  ;;  %v3240_v8 = vsub.f32 %v3239_v39, %v6215_v54  ;;  %v3299_v41 = vld [vmem:[#allocation5 + $0xc8] sm:$0xff] }
 0x475   : >> { %v3189_v29 = vmin.f32 %v3174_v21, %v3200_v46  ;;  %v3202_v33 = vmin.f32 %v3201_v17, %v3200_v46  ;;  %v3215_v32 = vadd.f32 %v3214_v60, %v3213_v35  ;;  %v3229_v52 = vmul.f32 %v3225_v63, %v3225_v63  ;;  %v3261_v60 = vld [vmem:[#allocation6 + $0xf0] sm:$0xff]  ;;  %v3276_v59 = vld [vmem:[#allocation6 + $0x68] sm:$0xff] }
 0x476   : >> { %v3228_v45 = vadd.f32 %v3227_v27, %v3226_v25  ;;  %v3241_v28 = vmul.f32 %v3236_v9, %v3236_v9  ;;  %v3242_v43 = vmul.f32 %v3238_v55, %v3238_v55  ;;  %v3244_v47 = vmul.f32 %v3240_v8, %v3240_v8  ;;  %v3312_v25 = vld [vmem:[#allocation4] sm:$0xff] }
 0x477   : >> { %3203 = vst [vmem:[#allocation6 + $0x30] sm:$0xff] %v3202_v33  ;;  %v3204_v4 = vmin.f32 %v3189_v29, %v3215_v32  ;;  %v3217_v48 = vmin.f32 %v3216_v36, %v3215_v32  ;;  %v3251_v22 = vsub.f32 %v3250_v23, %v6211_v12  ;;  %v3253_v50 = vsub.f32 %v3252_v56, %v6213_v18  ;;  %v3310_v36 = vld [vmem:[#allocation3 + $0xf8] sm:$0xff]  ;;  %v3325_v29 = vld [vmem:[#allocation3 + $0x20] sm:$0xff] }
 0x478   : >> { %v3230_v31 = vadd.f32 %v3229_v52, %v3228_v45  ;;  %v3243_v20 = vadd.f32 %v3242_v43, %v3241_v28  ;;  %v3255_v37 = vsub.f32 %v3254_v10, %v6215_v54  ;;  %v3266_v24 = vsub.f32 %v3265_v6, %v6211_v12  ;;  %v3314_v56 = vld [vmem:[#allocation5 + $0x98] sm:$0xff]  ;;  %v3327_v6 = vld [vmem:[#allocation4 + $0x28] sm:$0xff]  ;;  %v3329_v45 = vld [vmem:[#allocation5 + $0x60] sm:$0xff] }
 0x479   : >> { %3218 = vst [vmem:[#allocation6 + $0x80] sm:$0xff] %v3217_v48  ;;  %v3256_v49 = vmul.f32 %v3251_v22, %v3251_v22  ;;  %v3257_v16 = vmul.f32 %v3253_v50, %v3253_v50  ;;  %v3268_v53 = vsub.f32 %v3267_v19, %v6213_v18  ;;  %v3270_v15 = vsub.f32 %v3269_v7, %v6215_v54  ;;  %v3306_v50 = vld [vmem:[#allocation6 + $0x10] sm:$0xff] }
 0x47a   : >> { %v3219_v40 = vmin.f32 %v3204_v4, %v3230_v31  ;;  %v3232_v61 = vmin.f32 %v3231_v34, %v3230_v31  ;;  %v3245_v13 = vadd.f32 %v3244_v47, %v3243_v20  ;;  %v3259_v30 = vmul.f32 %v3255_v37, %v3255_v37  ;;  %v3291_v47 = vld [vmem:[#allocation6 + $0x58] sm:$0xff] }
 0x47b   : >> { %v3258_v44 = vadd.f32 %v3257_v16, %v3256_v49  ;;  %v3271_v62 = vmul.f32 %v3266_v24, %v3266_v24  ;;  %v3272_v2 = vmul.f32 %v3268_v53, %v3268_v53  ;;  %v3274_v42 = vmul.f32 %v3270_v15, %v3270_v15  ;;  %v3342_v49 = vld [vmem:[#allocation4 + $0x98] sm:$0xff] }
 0x47c   : >> { %3233 = vst [vmem:[#allocation6 + $0xa8] sm:$0xff] %v3232_v61  ;;  %v3234_v58 = vmin.f32 %v3219_v40, %v3245_v13  ;;  %v3247_v57 = vmin.f32 %v3246_v26, %v3245_v13  ;;  %v3281_v1 = vsub.f32 %v3280_v5, %v6211_v12  ;;  %v3283_v39 = vsub.f32 %v3282_v0, %v6213_v18  ;;  %v3340_v26 = vld [vmem:[#allocation3 + $0x98] sm:$0xff]  ;;  %v3344_v0 = vld [vmem:[#allocation5 + $0x8] sm:$0xff] }
 0x47d   : >> { %v3260_v21 = vadd.f32 %v3259_v30, %v3258_v44  ;;  %v3273_v14 = vadd.f32 %v3272_v2, %v3271_v62  ;;  %v3285_v17 = vsub.f32 %v3284_v3, %v6215_v54  ;;  %v3296_v38 = vsub.f32 %v3295_v51, %v6211_v12  ;;  %v3321_v44 = vld [vmem:[#allocation6 + $0x20] sm:$0xff] }
 0x47e   : >> { %3248 = vst [vmem:[#allocation6 + $0xf8] sm:$0xff] %v3247_v57  ;;  %v3286_v46 = vmul.f32 %v3281_v1, %v3281_v1  ;;  %v3287_v35 = vmul.f32 %v3283_v39, %v3283_v39  ;;  %v3298_v63 = vsub.f32 %v3297_v11, %v6213_v18  ;;  %v3300_v9 = vsub.f32 %v3299_v41, %v6215_v54 }
 0x47f   : >> { %v3249_v27 = vmin.f32 %v3234_v58, %v3260_v21  ;;  %v3262_v55 = vmin.f32 %v3261_v60, %v3260_v21  ;;  %v3275_v8 = vadd.f32 %v3274_v42, %v3273_v14  ;;  %v3289_v23 = vmul.f32 %v3285_v17, %v3285_v17  ;;  %v3336_v58 = vld [vmem:[#allocation6 + $0x60] sm:$0xff] }
 0x480   : >> { %v3288_v33 = vadd.f32 %v3287_v35, %v3286_v46  ;;  %v3301_v32 = vmul.f32 %v3296_v38, %v3296_v38  ;;  %v3302_v52 = vmul.f32 %v3298_v63, %v3298_v63  ;;  %v3304_v10 = vmul.f32 %v3300_v9, %v3300_v9  ;;  %v3455_v9 = vld [vmem:[#allocation6 + $0x98] sm:$0xff] (%p2860_p11) }
 0x481   : >> { %3263 = vst [vmem:[#allocation6 + $0xf0] sm:$0xff] %v3262_v55  ;;  %v3264_v28 = vmin.f32 %v3249_v27, %v3275_v8  ;;  %v3277_v43 = vmin.f32 %v3276_v59, %v3275_v8  ;;  %v3311_v19 = vsub.f32 %v3310_v36, %v6211_v12  ;;  %v3313_v7 = vsub.f32 %v3312_v25, %v6213_v18  ;;  %v3457_v36 = vld [vmem:[#allocation6 + $0xc0] sm:$0xff] (%p2860_p11)  ;;  %v3456_v25 = vld [vmem:[#allocation6 + $0x48] sm:$0xff] (%p2860_p11)  ;;  %v3459_v55 = vld [vmem:[#allocation6 + $0x38] sm:$0xff] (%p2860_p11) }
 0x482   : >> { %v3290_v4 = vadd.f32 %v3289_v23, %v3288_v33  ;;  %v3303_v48 = vadd.f32 %v3302_v52, %v3301_v32  ;;  %v3315_v34 = vsub.f32 %v3314_v56, %v6215_v54  ;;  %v3326_v22 = vsub.f32 %v3325_v29, %v6211_v12  ;;  %3487 = vmin.xlane.f32.xlu0 (%p2860_p11), %v3455_v9  ;;  %v3458_v27 = vld [vmem:[#allocation6 + $0xe0] sm:$0xff] (%p2860_p11)  ;;  %v3460_v8 = vld [vmem:[#allocation6 + $0x88] sm:$0xff] (%p2860_p11)  ;;  %v3461_v23 = vld [vmem:[#allocation6 + $0xb8] sm:$0xff] (%p2860_p11) }
 0x483   : >> { %3278 = vst [vmem:[#allocation6 + $0x68] sm:$0xff] %v3277_v43  ;;  %v3316_v31 = vmul.f32 %v3311_v19, %v3311_v19  ;;  %v3317_v20 = vmul.f32 %v3313_v7, %v3313_v7  ;;  %v3328_v37 = vsub.f32 %v3327_v6, %v6213_v18  ;;  %v3330_v24 = vsub.f32 %v3329_v45, %v6215_v54  ;;  %v3462_v56 = vld [vmem:[#allocation6 + $0xb0] sm:$0xff] (%p2860_p11)  ;;  %v3464_v33 = vld [vmem:[#allocation6 + $0xe8] sm:$0xff] (%p2860_p11)  ;;  %v3468_v6 = vld [vmem:[#allocation6] sm:$0xff] (%p2860_p11) }
 0x484   : >> { %v3279_v16 = vmin.f32 %v3264_v28, %v3290_v4  ;;  %v3292_v53 = vmin.f32 %v3291_v47, %v3290_v4  ;;  %v3305_v15 = vadd.f32 %v3304_v10, %v3303_v48  ;;  %v3319_v5 = vmul.f32 %v3315_v34, %v3315_v34  ;;  %3491 = vmin.xlane.f32.xlu1 (%p2860_p11), %v3457_v36  ;;  %v3463_v29 = vld [vmem:[#allocation6 + $0xd0] sm:$0xff] (%p2860_p11)  ;;  %v3467_v10 = vld [vmem:[#allocation6 + $0x78] sm:$0xff] (%p2860_p11)  ;;  %v3469_v45 = vld [vmem:[#allocation6 + $0x8] sm:$0xff] (%p2860_p11) }
 0x485   : >> { %v3318_v40 = vadd.f32 %v3317_v20, %v3316_v31  ;;  %v3331_v61 = vmul.f32 %v3326_v22, %v3326_v22  ;;  %v3332_v13 = vmul.f32 %v3328_v37, %v3328_v37  ;;  %v3334_v30 = vmul.f32 %v3330_v24, %v3330_v24  ;;  %v3465_v32 = vld [vmem:[#allocation6 + $0x50] sm:$0xff] (%p2860_p11)  ;;  %v3470_v28 = vld [vmem:[#allocation6 + $0x40] sm:$0xff] (%p2860_p11)  ;;  %v3472_v47 = vld [vmem:[#allocation6 + $0x18] sm:$0xff] (%p2860_p11) }
 0x486   : >> { %3293 = vst [vmem:[#allocation6 + $0x58] sm:$0xff] %v3292_v53  ;;  %v3294_v3 = vmin.f32 %v3279_v16, %v3305_v15  ;;  %v3307_v51 = vmin.f32 %v3306_v50, %v3305_v15  ;;  %v3341_v62 = vsub.f32 %v3340_v26, %v6211_v12  ;;  %v3343_v2 = vsub.f32 %v3342_v49, %v6213_v18  ;;  %v3351_v12 = vld [vmem:[#allocation6 + $0xc8] sm:$0xff]  ;;  %v2874_v18 = vld [vmem:[%s2873_s26] sm:$0xff]  ;;  %v3466_v52 = vld [vmem:[#allocation6 + $0x70] sm:$0xff] (%p2860_p11) }
 0x487   : >> { %v3320_v42 = vadd.f32 %v3319_v5, %v3318_v40  ;;  %v3333_v11 = vadd.f32 %v3332_v13, %v3331_v61  ;;  %v3345_v41 = vsub.f32 %v3344_v0, %v6215_v54  ;;  %3489 = vmin.xlane.f32.xlu0 (%p2860_p11), %v3456_v25  ;;  %v3471_v43 = vld [vmem:[#allocation6 + $0x90] sm:$0xff] (%p2860_p11)  ;;  %v3473_v19 = vld [vmem:[#allocation6 + $0xa0] sm:$0xff] (%p2860_p11)  ;;  %v3474_v7 = vld [vmem:[#allocation6 + $0xd8] sm:$0xff] (%p2860_p11)  ;;  %v3356_v53 = vlaneseq (%p2860_p11) }
 0x488   : >> { %3308 = vst [vmem:[#allocation6 + $0x10] sm:$0xff] %v3307_v51  ;;  %v3346_v57 = vmul.f32 %v3341_v62, %v3341_v62  ;;  %v3347_v60 = vmul.f32 %v3343_v2, %v3343_v2  ;;  %3493 = vmin.xlane.f32.xlu1 (%p2860_p11), %v3458_v27  ;;  %v3475_v4 = vld [vmem:[#allocation6 + $0x28] sm:$0xff] (%p2860_p11)  ;;  %v3476_v48 = vld [vmem:[#allocation6 + $0x30] sm:$0xff] (%p2860_p11)  ;;  %v3477_v34 = vld [vmem:[#allocation6 + $0x80] sm:$0xff] (%p2860_p11)  ;;  %v6322_v5 = vstv (%p2860_p11), %s3932_s27 }
 0x489   : >> { %v3309_v1 = vmin.f32 %v3294_v3, %v3320_v42  ;;  %v3322_v39 = vmin.f32 %v3321_v44, %v3320_v42  ;;  %v3335_v21 = vadd.f32 %v3334_v30, %v3333_v11  ;;  %v3349_v14 = vmul.f32 %v3345_v41, %v3345_v41  ;;  %v3478_v22 = vld [vmem:[#allocation6 + $0xa8] sm:$0xff] (%p2860_p11)  ;;  %v3479_v50 = vld [vmem:[#allocation6 + $0xf8] sm:$0xff] (%p2860_p11)  ;;  %v3480_v31 = vld [vmem:[#allocation6 + $0xf0] sm:$0xff] (%p2860_p11) }
 0x48a   : >> { %v3348_v17 = vadd.f32 %v3347_v60, %v3346_v57  ;;  %v3481_v20 = vld [vmem:[#allocation6 + $0x68] sm:$0xff] (%p2860_p11)  ;;  %v6320_v15 = vshrl.u32 (%p2860_p11), %v3356_v53, 7 }
 0x48b   : >> { %3323 = vst [vmem:[#allocation6 + $0x20] sm:$0xff] %v3322_v39  ;;  %v3324_v38 = vmin.f32 %v3309_v1, %v3335_v21  ;;  %v3337_v59 = vmin.f32 %v3336_v58, %v3335_v21  ;;  %3495 = vmin.xlane.f32.xlu0 (%p2860_p11), %v3459_v55 }
 0x48c   : >> { %v3350_v46 = vadd.f32 %v3349_v14, %v3348_v17  ;;  %3497 = vmin.xlane.f32.xlu1 (%p2860_p11), %v3460_v8  ;;  %v3359_v0 = vadd.s32 (%p2860_p11), 16, %v6320_v15  ;;  %v3358_v40 = vadd.s32 (%p2860_p11), 8, %v6320_v15  ;;  %v3360_v61 = vadd.s32 (%p2860_p11), 24, %v6320_v15 }
 0x48d   : >> { %3338 = vst [vmem:[#allocation6 + $0x60] sm:$0xff] %v3337_v59  ;;  %v3482_v37 = vld [vmem:[#allocation6 + $0x58] sm:$0xff] (%p2860_p11)  ;;  %v3391_v13 = vadd.s32 (%p2860_p11), %v6322_v5, %v6320_v15  ;;  %v3361_v30 = vadd.s32 (%p2860_p11), 32, %v6320_v15  ;;  %v3362_v51 = vadd.s32 (%p2860_p11), 40, %v6320_v15  ;;  %v3363_v58 = vadd.s32 (%p2860_p11), 48, %v6320_v15 }
 0x48e   : >> { %v3339_v54 = vmin.f32 %v3324_v38, %v3350_v46  ;;  %v3352_v35 = vmin.f32 %v3351_v12, %v3350_v46  ;;  %2862 = sbr.rel (!%p2860_p11) target bundleno = 1078 (0x436), region = 117  ;;  %v3393_v3 = vadd.s32 (%p2860_p11), %v6322_v5, %v3359_v0  ;;  %v3392_v44 = vadd.s32 (%p2860_p11), %v6322_v5, %v3358_v40 }
 0x48f   : > { %3499 = vmin.xlane.f32.xlu0 (%p2860_p11), %v3461_v23  ;;  %v3483_v24 = vld [vmem:[#allocation6 + $0x10] sm:$0xff] (%p2860_p11)  ;;  %v3394_v62 = vadd.s32 (%p2860_p11), %v6322_v5, %v3360_v61  ;;  %vm3423_vm0 = vcmp.lt.s32.totalorder (%p2860_p11), %v3391_v13, 600  ;;  %v3395_v11 = vadd.s32 (%p2860_p11), %v6322_v5, %v3361_v30  ;;  %v3396_v41 = vadd.s32 (%p2860_p11), %v6322_v5, %v3362_v51 }
 0x490   : >> { %3353 = vst [vmem:[#allocation6 + $0xc8] sm:$0xff] %v3352_v35  ;;  %v3354_v63 = vmin.f32 %v3339_v54, %v2874_v18  ;;  %3501 = vmin.xlane.f32.xlu1 (%p2860_p11), %v3462_v56  ;;  %vm3425_vm1 = vcmp.lt.s32.totalorder (%p2860_p11), %v3393_v3, 600  ;;  %vm3424_vm2 = vcmp.lt.s32.totalorder (%p2860_p11), %v3392_v44, 600  ;;  %v3364_v57 = vadd.s32 (%p2860_p11), 56, %v6320_v15 }
 0x491   : > { %vm3426_vm3 = vcmp.lt.s32.totalorder (%p2860_p11), %v3394_v62, 600  ;;  %vm3427_vm5 = vcmp.lt.s32.totalorder (%p2860_p11), %v3395_v11, 600  ;;  %v3365_v21 = vadd.s32 (%p2860_p11), 64, %v6320_v15  ;;  %v3366_v14 = vadd.s32 (%p2860_p11), 72, %v6320_v15 }
 0x492   : >> { %3355 = vst [vmem:[%s2873_s26] sm:$0xff] %v3354_v63  ;;  %v3484_v26 = vld [vmem:[#allocation6 + $0x20] sm:$0xff] (%p2860_p11)  ;;  %vm3428_vm6 = vcmp.lt.s32.totalorder (%p2860_p11), %v3396_v41, 600  ;;  %v3397_v18 = vadd.s32 (%p2860_p11), %v6322_v5, %v3363_v58  ;;  %v3398_v54 = vadd.s32 (%p2860_p11), %v6322_v5, %v3364_v57  ;;  %v3373_v41 = vadd.s32 (%p2860_p11), 128, %v6320_v15 }
 0x493   : > { %3503 = vmin.xlane.f32.xlu0 %v3463_v29  ;;  %v3399_v27 = vadd.s32 %v6322_v5, %v3365_v21  ;;  %v3400_v55 = vadd.s32 %v6322_v5, %v3366_v14  ;;  %v3367_v29 = vadd.s32 80, %v6320_v15  ;;  %v3374_v57 = vadd.s32 136, %v6320_v15  ;;  %s6952_s13 = scalar_lea.vmem (!%p3933_p12), [#allocation17], %s4429_s19 }
 0x494   : > { %3505 = vmin.xlane.f32.xlu1 %v3464_v33  ;;  %v3485_v49 = vld [vmem:[#allocation6 + $0x60] sm:$0xff]  ;;  %vm3429_vm7 = vcmp.lt.s32.totalorder %v3397_v18, 600  ;;  %vm3430_vm8 = vcmp.lt.s32.totalorder %v3398_v54, 600  ;;  %v3375_v18 = vadd.s32 144, %v6320_v15  ;;  %v3376_v54 = vadd.s32 152, %v6320_v15 }
 0x495   : > { %vm3431_vm9 = vcmp.lt.s32.totalorder %v3399_v27, 600  ;;  %vm3432_vm10 = vcmp.lt.s32.totalorder %v3400_v55, 600  ;;  %v3378_v27 = vadd.s32 168, %v6320_v15 }
 0x497   : > { %3507 = vmin.xlane.f32.xlu0 %v3465_v32  ;;  %v3486_v16 = vld [vmem:[#allocation6 + $0xc8] sm:$0xff]  ;;  %v3368_v32 = vadd.s32 88, %v6320_v15 }
 0x498   : > { %3509 = vmin.xlane.f32.xlu1 %v3466_v52 }
 0x49b   : > { %3511 = vmin.xlane.f32.xlu0 %v3467_v10 }
 0x49c   : > { %3513 = vmin.xlane.f32.xlu1 %v3468_v6 }
 0x49f   : > { %3515 = vmin.xlane.f32.xlu0 %v3469_v45 }
 0x4a0   : > { %3517 = vmin.xlane.f32.xlu1 %v3470_v28 }
 0x4a3   : > { %3519 = vmin.xlane.f32.xlu0 %v3471_v43 }
 0x4a4   : > { %3521 = vmin.xlane.f32.xlu1 %v3472_v47 }
 0x4a7   : > { %3523 = vmin.xlane.f32.xlu0 %v3473_v19  ;;  %v3401_v19 = vadd.s32 %v6322_v5, %v3367_v29  ;;  %v3409_v29 = vadd.s32 %v6322_v5, %v3375_v18  ;;  %v3386_v18 = vadd.s32 232, %v6320_v15 }
 0x4a8   : > { %3525 = vmin.xlane.f32.xlu1 %v3474_v7 }
 0x4a9   : > { %vm3433_vm11 = vcmp.lt.s32.totalorder %v3401_v19, 600 }
 0x4ab   : > { %3527 = vmin.xlane.f32.xlu0 %v3475_v4  ;;  %v3402_v4 = vadd.s32 %v6322_v5, %v3368_v32 }
 0x4ac   : > { %3529 = vmin.xlane.f32.xlu1 %v3476_v48  ;;  %v3369_v48 = vadd.s32 96, %v6320_v15 }
 0x4ad   : > { %vm3434_vm12 = vcmp.lt.s32.totalorder %v3402_v4, 600 }
 0x4ae   : > { %v3403_v40 = vadd.s32 %v6322_v5, %v3369_v48  ;;  %v3380_v48 = vadd.s32 184, %v6320_v15 }
 0x4af   : > { %3531 = vmin.xlane.f32.xlu0 %v3477_v34  ;;  %v3370_v34 = vadd.s32 104, %v6320_v15 }
 0x4b0   : > { %3533 = vmin.xlane.f32.xlu1 %v3478_v22  ;;  %vm3435_vm13 = vcmp.lt.s32.totalorder %v3403_v40, 600  ;;  %v3382_v40 = vadd.s32 200, %v6320_v15 }
 0x4b1   : > { %v3404_v61 = vadd.s32 %v6322_v5, %v3370_v34 }
 0x4b3   : > { %3535 = vmin.xlane.f32.xlu0 %v3479_v50  ;;  %vm3436_vm14 = vcmp.lt.s32.totalorder %v3404_v61, 600 }
 0x4b4   : > { %3537 = vmin.xlane.f32.xlu1 %v3480_v31 }
 0x4b7   : > { %3539 = vmin.xlane.f32.xlu0 %v3481_v20 }
 0x4b8   : > { %3541 = vmin.xlane.f32.xlu1 %v3482_v37  ;;  %v3371_v37 = vadd.s32 112, %v6320_v15 }
 0x4ba   : > { %v3405_v44 = vadd.s32 %v6322_v5, %v3371_v37 }
 0x4bb   : > { %3543 = vmin.xlane.f32.xlu0 %v3483_v24  ;;  %v3372_v24 = vadd.s32 120, %v6320_v15 }
 0x4bc   : > { %3545 = vmin.xlane.f32.xlu1 %v3484_v26  ;;  %vm3437_vm15 = vcmp.lt.s32.totalorder %v3405_v44, 600  ;;  %v3384_v44 = vadd.s32 216, %v6320_v15 }
 0x4bd   : > { %v3406_v62 = vadd.s32 %v6322_v5, %v3372_v24 }
 0x4bf   : > { %3547 = vmin.xlane.f32.xlu0 %v3485_v49 }
 0x4c0   : > { %3549 = vmin.xlane.f32.xlu1 %v3486_v16 }
 0x50b   : > { %v3488_v2 = vpop.xlane.xlu0 %3487 }
 0x50c   : > { %v3552_v60 = vsel %vm3423_vm0, %v3488_v2, 0.0  ;;  %vm3438_vm0 = vcmp.lt.s32.totalorder %v3406_v62, 600 }
 0x50d   : > { %v3492_v42 = vpop.xlane.xlu1 %3491  ;;  %v3585_v12 = vsel %vm3584_vm4, %v3552_v60, 0.0 }
 0x50e   : > { %v3554_v17 = vsel %vm3425_vm1, %v3492_v42, 0.0 }
 0x50f   : > { %v3588_v63 = vsel %vm3584_vm4, %v3554_v17, 0.0 }
 0x510   : > { %v3490_v1 = vpop.xlane.xlu0 %3489 }
 0x511   : > { %v3494_v39 = vpop.xlane.xlu1 %3493  ;;  %v3553_v38 = vsel %vm3424_vm2, %v3490_v1, 0.0 }
 0x512   : > { %v3555_v59 = vsel %vm3426_vm3, %v3494_v39, 0.0  ;;  %v3586_v46 = vsel %vm3584_vm4, %v3553_v38, 0.0  ;;  %vm3441_vm3 = vcmp.lt.s32.totalorder %v3409_v29, 600  ;;  %v3388_v29 = vadd.s32 248, %v6320_v15 }
 0x513   : > { %v3587_v35 = vadd.f32 %v3586_v46, %v3585_v12  ;;  %v3590_v9 = vsel %vm3584_vm4, %v3555_v59, 0.0  ;;  %v3407_v59 = vadd.s32 %v6322_v5, %v3373_v41  ;;  %v3408_v46 = vadd.s32 %v6322_v5, %v3374_v57 }
 0x514   : > { %v3496_v36 = vpop.xlane.xlu0 %3495 }
 0x515   : > { %v3498_v25 = vpop.xlane.xlu1 %3497  ;;  %v3589_v8 = vadd.f32 %v3588_v63, %v3587_v35  ;;  %v3556_v23 = vsel %vm3427_vm5, %v3496_v36, 0.0  ;;  %vm3439_vm1 = vcmp.lt.s32.totalorder %v3407_v59, 600  ;;  %vm3440_vm2 = vcmp.lt.s32.totalorder %v3408_v46, 600 }
 0x516   : > { %v3557_v56 = vsel %vm3428_vm6, %v3498_v25, 0.0  ;;  %v3592_v33 = vsel %vm3584_vm4, %v3556_v23, 0.0  ;;  %v3377_v25 = vadd.s32 160, %v6320_v15 }
 0x517   : > { %v3591_v52 = vadd.f32 %v3590_v9, %v3589_v8  ;;  %v3594_v10 = vsel %vm3584_vm4, %v3557_v56, 0.0 }
 0x518   : > { %v3500_v6 = vpop.xlane.xlu0 %3499 }
 0x519   : > { %v3502_v45 = vpop.xlane.xlu1 %3501  ;;  %v3593_v28 = vadd.f32 %v3592_v33, %v3591_v52  ;;  %v3558_v43 = vsel %vm3429_vm7, %v3500_v6, 0.0  ;;  %v3410_v33 = vadd.s32 %v6322_v5, %v3376_v54 }
 0x51a   : > { %v3559_v47 = vsel %vm3430_vm8, %v3502_v45, 0.0  ;;  %v3596_v7 = vsel %vm3584_vm4, %v3558_v43, 0.0  ;;  %v3411_v45 = vadd.s32 %v6322_v5, %v3377_v25 }
 0x51b   : > { %v3595_v22 = vadd.f32 %v3594_v10, %v3593_v28  ;;  %v3598_v50 = vsel %vm3584_vm4, %v3559_v47, 0.0  ;;  %v3412_v28 = vadd.s32 %v6322_v5, %v3378_v27  ;;  %vm3442_vm5 = vcmp.lt.s32.totalorder %v3410_v33, 600 }
 0x51c   : > { %v3504_v31 = vpop.xlane.xlu0 %3503  ;;  %vm3443_vm6 = vcmp.lt.s32.totalorder %v3411_v45, 600 }
 0x51d   : > { %v3506_v20 = vpop.xlane.xlu1 %3505  ;;  %v3597_v26 = vadd.f32 %v3596_v7, %v3595_v22  ;;  %v3560_v49 = vsel %vm3431_vm9, %v3504_v31, 0.0  ;;  %v3379_v7 = vadd.s32 176, %v6320_v15  ;;  %vm3444_vm7 = vcmp.lt.s32.totalorder %v3412_v28, 600 }
 0x51e   : > { %v3561_v16 = vsel %vm3432_vm10, %v3506_v20, 0.0  ;;  %v3600_v0 = vsel %vm3584_vm4, %v3560_v49, 0.0 }
 0x51f   : > { %v3599_v13 = vadd.f32 %v3598_v50, %v3597_v26  ;;  %v3602_v30 = vsel %vm3584_vm4, %v3561_v16, 0.0  ;;  %v3413_v26 = vadd.s32 %v6322_v5, %v3379_v7  ;;  %v3414_v16 = vadd.s32 %v6322_v5, %v3380_v48 }
 0x520   : > { %v3508_v3 = vpop.xlane.xlu0 %3507 }
 0x521   : > { %v3510_v51 = vpop.xlane.xlu1 %3509  ;;  %v3601_v2 = vadd.f32 %v3600_v0, %v3599_v13  ;;  %v3562_v42 = vsel %vm3433_vm11, %v3508_v3, 0.0  ;;  %v3381_v0 = vadd.s32 192, %v6320_v15  ;;  %vm3445_vm8 = vcmp.lt.s32.totalorder %v3413_v26, 600 }
 0x522   : > { %v3563_v11 = vsel %vm3434_vm12, %v3510_v51, 0.0  ;;  %v3604_v58 = vsel %vm3584_vm4, %v3562_v42, 0.0  ;;  %v3383_v51 = vadd.s32 208, %v6320_v15  ;;  %vm3446_vm9 = vcmp.lt.s32.totalorder %v3414_v16, 600 }
 0x523   : > { %v3603_v60 = vadd.f32 %v3602_v30, %v3601_v2  ;;  %v3606_v1 = vsel %vm3584_vm4, %v3563_v11, 0.0  ;;  %v3415_v41 = vadd.s32 %v6322_v5, %v3381_v0 }
 0x524   : > { %v3512_v39 = vpop.xlane.xlu0 %3511 }
 0x525   : > { %v3514_v21 = vpop.xlane.xlu1 %3513  ;;  %v3605_v14 = vadd.f32 %v3604_v58, %v3603_v60  ;;  %v3564_v17 = vsel %vm3435_vm13, %v3512_v39, 0.0  ;;  %v3416_v58 = vadd.s32 %v6322_v5, %v3382_v40  ;;  %vm3447_vm10 = vcmp.lt.s32.totalorder %v3415_v41, 600 }
 0x526   : > { %v3565_v38 = vsel %vm3436_vm14, %v3514_v21, 0.0  ;;  %v3608_v12 = vsel %vm3584_vm4, %v3564_v17, 0.0  ;;  %v3417_v21 = vadd.s32 %v6322_v5, %v3383_v51 }
 0x527   : > { %v3607_v35 = vadd.f32 %v3606_v1, %v3605_v14  ;;  %v3610_v63 = vsel %vm3584_vm4, %v3565_v38, 0.0  ;;  %v3418_v14 = vadd.s32 %v6322_v5, %v3384_v44  ;;  %vm3448_vm11 = vcmp.lt.s32.totalorder %v3416_v58, 600 }
 0x528   : > { %v3516_v9 = vpop.xlane.xlu0 %3515  ;;  %vm3449_vm12 = vcmp.lt.s32.totalorder %v3417_v21, 600 }
 0x529   : > { %v3518_v36 = vpop.xlane.xlu1 %3517  ;;  %v3609_v55 = vadd.f32 %v3608_v12, %v3607_v35  ;;  %v3566_v8 = vsel %vm3437_vm15, %v3516_v9, 0.0  ;;  %v3385_v12 = vadd.s32 224, %v6320_v15  ;;  %vm3450_vm13 = vcmp.lt.s32.totalorder %v3418_v14, 600 }
 0x52a   : > { %v3567_v23 = vsel %vm3438_vm0, %v3518_v36, 0.0  ;;  %v3612_v56 = vsel %vm3584_vm4, %v3566_v8, 0.0 }
 0x52b   : > { %v3611_v32 = vadd.f32 %v3610_v63, %v3609_v55  ;;  %v3614_v52 = vsel %vm3584_vm4, %v3567_v23, 0.0  ;;  %v3419_v55 = vadd.s32 %v6322_v5, %v3385_v12  ;;  %v3420_v23 = vadd.s32 %v6322_v5, %v3386_v18 }
 0x52c   : > { %v3520_v10 = vpop.xlane.xlu0 %3519 }
 0x52d   : > { %v3522_v6 = vpop.xlane.xlu1 %3521  ;;  %v3613_v43 = vadd.f32 %v3612_v56, %v3611_v32  ;;  %v3568_v47 = vsel %vm3439_vm1, %v3520_v10, 0.0  ;;  %v3387_v56 = vadd.s32 240, %v6320_v15  ;;  %vm3451_vm14 = vcmp.lt.s32.totalorder %v3419_v55, 600 }
 0x52e   : > { %v3569_v19 = vsel %vm3440_vm2, %v3522_v6, 0.0  ;;  %v3616_v4 = vsel %vm3584_vm4, %v3568_v47, 0.0  ;;  %vm3452_vm15 = vcmp.lt.s32.totalorder %v3420_v23, 600 }
 0x52f   : > { %v3615_v34 = vadd.f32 %v3614_v52, %v3613_v43  ;;  %v3618_v22 = vsel %vm3584_vm4, %v3569_v19, 0.0  ;;  %v3421_v47 = vadd.s32 %v6322_v5, %v3387_v56  ;;  %v3422_v19 = vadd.s32 %v6322_v5, %v3388_v29 }
 0x530   : > { %v3524_v50 = vpop.xlane.xlu0 %3523 }
 0x531   : > { %v3526_v31 = vpop.xlane.xlu1 %3525  ;;  %v3617_v20 = vadd.f32 %v3616_v4, %v3615_v34  ;;  %v3570_v37 = vsel %vm3441_vm3, %v3524_v50, 0.0  ;;  %vm3453_vm0 = vcmp.lt.s32.totalorder %v3421_v47, 600  ;;  %vm3454_vm1 = vcmp.lt.s32.totalorder %v3422_v19, 600 }
 0x532   : > { %v3571_v24 = vsel %vm3442_vm5, %v3526_v31, 0.0  ;;  %v3620_v49 = vsel %vm3584_vm4, %v3570_v37, 0.0 }
 0x533   : > { %v3619_v61 = vadd.f32 %v3618_v22, %v3617_v20  ;;  %v3622_v13 = vsel %vm3584_vm4, %v3571_v24, 0.0 }
 0x534   : > { %v3528_v30 = vpop.xlane.xlu0 %3527 }
 0x535   : > { %v3530_v3 = vpop.xlane.xlu1 %3529  ;;  %v3621_v62 = vadd.f32 %v3620_v49, %v3619_v61  ;;  %v3572_v2 = vsel %vm3443_vm6, %v3528_v30, 0.0 }
 0x536   : > { %v3573_v42 = vsel %vm3444_vm7, %v3530_v3, 0.0  ;;  %v3624_v11 = vsel %vm3584_vm4, %v3572_v2, 0.0 }
 0x537   : > { %v3623_v57 = vadd.f32 %v3622_v13, %v3621_v62  ;;  %v3626_v60 = vsel %vm3584_vm4, %v3573_v42, 0.0 }
 0x538   : > { %v3532_v1 = vpop.xlane.xlu0 %3531 }
 0x539   : > { %v3534_v39 = vpop.xlane.xlu1 %3533  ;;  %v3625_v17 = vadd.f32 %v3624_v11, %v3623_v57  ;;  %v3574_v38 = vsel %vm3445_vm8, %v3532_v1, 0.0 }
 0x53a   : > { %v3575_v59 = vsel %vm3446_vm9, %v3534_v39, 0.0  ;;  %v3628_v46 = vsel %vm3584_vm4, %v3574_v38, 0.0 }
 0x53b   : > { %v3627_v54 = vadd.f32 %v3626_v60, %v3625_v17  ;;  %v3630_v35 = vsel %vm3584_vm4, %v3575_v59, 0.0 }
 0x53c   : > { %v3536_v63 = vpop.xlane.xlu0 %3535 }
 0x53d   : > { %v3538_v9 = vpop.xlane.xlu1 %3537  ;;  %v3629_v36 = vadd.f32 %v3628_v46, %v3627_v54  ;;  %v3576_v25 = vsel %vm3447_vm10, %v3536_v63, 0.0 }
 0x53e   : > { %v3577_v27 = vsel %vm3448_vm11, %v3538_v9, 0.0  ;;  %v3632_v8 = vsel %vm3584_vm4, %v3576_v25, 0.0 }
 0x53f   : > { %v3631_v33 = vadd.f32 %v3630_v35, %v3629_v36  ;;  %v3634_v32 = vsel %vm3584_vm4, %v3577_v27, 0.0 }
 0x540   : > { %v3540_v52 = vpop.xlane.xlu0 %3539 }
 0x541   : > { %v3542_v10 = vpop.xlane.xlu1 %3541  ;;  %v3633_v6 = vadd.f32 %v3632_v8, %v3631_v33  ;;  %v3578_v45 = vsel %vm3449_vm12, %v3540_v52, 0.0 }
 0x542   : > { %v3579_v28 = vsel %vm3450_vm13, %v3542_v10, 0.0  ;;  %v3636_v43 = vsel %vm3584_vm4, %v3578_v45, 0.0 }
 0x543   : > { %v3635_v7 = vadd.f32 %v3634_v32, %v3633_v6  ;;  %v3638_v4 = vsel %vm3584_vm4, %v3579_v28, 0.0 }
 0x544   : > { %v3544_v15 = vpop.xlane.xlu0 %3543 }
 0x545   : > { %v3546_v48 = vpop.xlane.xlu1 %3545  ;;  %v3637_v34 = vadd.f32 %v3636_v43, %v3635_v7  ;;  %v3580_v22 = vsel %vm3451_vm14, %v3544_v15, 0.0 }
 0x546   : > { %v3581_v50 = vsel %vm3452_vm15, %v3546_v48, 0.0  ;;  %v3640_v31 = vsel %vm3584_vm4, %v3580_v22, 0.0 }
 0x547   : > { %v3639_v20 = vadd.f32 %v3638_v4, %v3637_v34  ;;  %v3642_v37 = vsel %vm3584_vm4, %v3581_v50, 0.0 }
 0x548   : > { %v3548_v24 = vpop.xlane.xlu0 %3547 }
 0x549   : > { %v3550_v26 = vpop.xlane.xlu1 %3549  ;;  %v3641_v49 = vadd.f32 %v3640_v31, %v3639_v20  ;;  %v3582_v16 = vsel %vm3453_vm0, %v3548_v24, 0.0 }
 0x54a   : > { %v3583_v5 = vsel %vm3454_vm1, %v3550_v26, 0.0  ;;  %v3644_v0 = vsel %vm3584_vm4, %v3582_v16, 0.0 }
 0x54b   : > { %v3643_v40 = vadd.f32 %v3642_v37, %v3641_v49  ;;  %v3646_v61 = vsel %vm3584_vm4, %v3583_v5, 0.0 }
 0x54d   : > { %v3645_v13 = vadd.f32 %v3644_v0, %v3643_v40 }
 0x54f   : > { %v3647_v30 = vadd.f32 %v3646_v61, %v3645_v13 }
 0x551   : > { %3648 = vadd.xlane.f32.xlu0 %v3647_v30 }
 0x5da   : > { %v3649_v3 = vpop.xlane.xlu0 %3648 }
 0x5db   : > { %v3650_v51 = vrot.slane %v3649_v3, 4 }
 0x5dd   : > { %v3651_v44 = vadd.f32 %v3650_v51, %v3649_v3 }
 0x5df   : > { %v3652_v62 = vrot.slane %v3651_v44, 2 }
 0x5e1   : > { %v3653_v2 = vadd.f32 %v3652_v62, %v3651_v44 }
 0x5e3   : > { %v3654_v42 = vrot.slane %v3653_v2, 1 }
 0x5e5   : > { %v3655_v11 = vadd.f32 %v3654_v42, %v3653_v2 }
 0x5e7   : > { %3938 = vpush %v3655_v11 }
 0x617   : > { %3663 = sbr.rel (%p3933_p12) target bundleno = 1798 (0x706), region = 75 }
 0x618   : > { %s3939_s7 = spop %3938 }
 0x619   : > { %s3657_s18 = sadd.f32 %s3939_s7, %s3551_s8 }
 0x61b   : > { %3659 = sst [smem:[#allocation8]] %s3657_s18 }
 0x61c   : > { %v3681_v41 = vld [vmem:[#allocation7] sm:$0xff]  ;;  %v3682_v58 = vld [vmem:[#allocation7 + $0x8] sm:$0xff]  ;;  %v3683_v57 = vld [vmem:[#allocation7 + $0x10] sm:$0xff]  ;;  %v3665_v36 = vand.u32 127, %v3356_v53  ;;  %vm3745_vm4 = vcmask 1040384   ;;  %s3770_s24 = sld [smem:[#allocation8]] }
 0x61d   : > { %v3684_v60 = vld [vmem:[#allocation7 + $0x18] sm:$0xff]  ;;  %v3685_v1 = vld [vmem:[#allocation7 + $0x20] sm:$0xff]  ;;  %v3686_v39 = vld [vmem:[#allocation7 + $0x28] sm:$0xff]  ;;  %v3689_v21 = vrot.slane %v3681_v41, 4  ;;  %v3695_v14 = vrot.slane %v3682_v58, 4  ;;  %v3701_v17 = vrot.slane %v3683_v57, 4 }
 0x61e   : > { %v3687_v38 = vld [vmem:[#allocation7 + $0x30] sm:$0xff]  ;;  %v3707_v59 = vrot.slane %v3684_v60, 4  ;;  %v3713_v12 = vrot.slane %v3685_v1, 4  ;;  %v3719_v46 = vrot.slane %v3686_v39, 4  ;;  %v3688_v18 = vld [vmem:[#allocation7 + $0x38] sm:$0xff]  ;;  %v3672_v49 = vadd.s32 896, %v3665_v36 }
 0x61f   : > { %v3690_v54 = vmin.f32 %v3681_v41, %v3689_v21  ;;  %v3696_v35 = vmin.f32 %v3682_v58, %v3695_v14  ;;  %v3702_v63 = vmin.f32 %v3683_v57, %v3701_v17  ;;  %v3725_v9 = vrot.slane %v3687_v38, 4 }
 0x620   : > { %v3708_v25 = vmin.f32 %v3684_v60, %v3707_v59  ;;  %v3714_v27 = vmin.f32 %v3685_v1, %v3713_v12  ;;  %v3720_v55 = vmin.f32 %v3686_v39, %v3719_v46  ;;  %v3731_v10 = vrot.slane %v3688_v18, 4 }
 0x621   : > { %v3691_v8 = vrot.slane %v3690_v54, 2  ;;  %v3697_v23 = vrot.slane %v3696_v35, 2  ;;  %v3703_v56 = vrot.slane %v3702_v63, 2  ;;  %v3726_v29 = vmin.f32 %v3687_v38, %v3725_v9 }
 0x622   : > { %v3709_v33 = vrot.slane %v3708_v25, 2  ;;  %v3715_v32 = vrot.slane %v3714_v27, 2  ;;  %v3721_v52 = vrot.slane %v3720_v55, 2  ;;  %v3732_v4 = vmin.f32 %v3688_v18, %v3731_v10  ;;  %s3771_s0 = smul.f32 0.0016666667, %s3770_s24 }
 0x623   : > { %v3692_v6 = vmin.f32 %v3690_v54, %v3691_v8  ;;  %v3698_v45 = vmin.f32 %v3696_v35, %v3697_v23  ;;  %v3704_v28 = vmin.f32 %v3702_v63, %v3703_v56  ;;  %v3727_v43 = vrot.slane %v3726_v29, 2 }
 0x624   : > { %v3710_v47 = vmin.f32 %v3708_v25, %v3709_v33  ;;  %v3716_v19 = vmin.f32 %v3714_v27, %v3715_v32  ;;  %v3722_v7 = vmin.f32 %v3720_v55, %v3721_v52  ;;  %v3733_v31 = vrot.slane %v3732_v4, 2 }
 0x625   : > { %v3693_v53 = vrot.slane %v3692_v6, 1  ;;  %v3699_v15 = vrot.slane %v3698_v45, 1  ;;  %v3705_v48 = vrot.slane %v3704_v28, 1  ;;  %v3728_v34 = vmin.f32 %v3726_v29, %v3727_v43 }
 0x626   : > { %v3711_v22 = vrot.slane %v3710_v47, 1  ;;  %v3717_v50 = vrot.slane %v3716_v19, 1  ;;  %v3723_v26 = vrot.slane %v3722_v7, 1  ;;  %v3734_v0 = vmin.f32 %v3732_v4, %v3733_v31 }
 0x627   : > { %v3694_v20 = vmin.f32 %v3692_v6, %v3693_v53  ;;  %v3700_v37 = vmin.f32 %v3698_v45, %v3699_v15  ;;  %v3706_v24 = vmin.f32 %v3704_v28, %v3705_v48  ;;  %v3729_v5 = vrot.slane %v3728_v34, 1 }
 0x628   : > { %v3712_v16 = vmin.f32 %v3710_v47, %v3711_v22  ;;  %v3718_v40 = vmin.f32 %v3716_v19, %v3717_v50  ;;  %v3735_v3 = vrot.slane %v3734_v0, 1  ;;  %v3724_v44 = vmin.f32 %v3722_v7, %v3723_v26 }
 0x629   : > { %v3746_v61 = vsel %vm3745_vm4, %v3694_v20, 0.0  ;;  %v3747_v13 = vsel %vm3745_vm4, %v3700_v37, 0.0  ;;  %v3749_v30 = vsel %vm3745_vm4, %v3706_v24, 0.0  ;;  %vm3680_vm2 = vcmp.lt.s32.totalorder %v3672_v49, 900 }
 0x62a   : > { %v3748_v51 = vadd.f32 %v3747_v13, %v3746_v61  ;;  %v3751_v62 = vsel %vm3745_vm4, %v3712_v16, 0.0  ;;  %v3736_v2 = vmin.f32 %v3734_v0, %v3735_v3  ;;  %v3730_v11 = vmin.f32 %v3728_v34, %v3729_v5 }
 0x62b   : > { %v3753_v41 = vsel %vm3745_vm4, %v3718_v40, 0.0  ;;  %v3755_v57 = vsel %vm3745_vm4, %v3724_v44, 0.0 }
 0x62c   : > { %v3750_v42 = vadd.f32 %v3749_v30, %v3748_v51  ;;  %v3744_v60 = vsel %vm3680_vm2, %v3736_v2, 0.0  ;;  %v3757_v39 = vsel %vm3745_vm4, %v3730_v11, 0.0 }
 0x62d   : > { %v3759_v14 = vsel %vm3745_vm4, %v3744_v60, 0.0 }
 0x62e   : > { %v3752_v58 = vadd.f32 %v3751_v62, %v3750_v42 }
 0x630   : > { %v3754_v1 = vadd.f32 %v3753_v41, %v3752_v58 }
 0x632   : > { %v3756_v21 = vadd.f32 %v3755_v57, %v3754_v1 }
 0x634   : > { %v3758_v17 = vadd.f32 %v3757_v39, %v3756_v21 }
 0x636   : > { %v3760_v38 = vadd.f32 %v3759_v14, %v3758_v17 }
 0x638   : > { %3761 = vadd.xlane.f32.xlu0 %v3760_v38 }
 0x6c1   : > { %v3762_v59 = vpop.xlane.xlu0 %3761 }
 0x6c2   : > { %v3763_v12 = vrot.slane %v3762_v59, 4 }
 0x6c4   : > { %v3764_v46 = vadd.f32 %v3763_v12, %v3762_v59 }
 0x6c6   : > { %v3765_v18 = vrot.slane %v3764_v46, 2 }
 0x6c8   : > { %v3766_v54 = vadd.f32 %v3765_v18, %v3764_v46 }
 0x6ca   : > { %v3767_v35 = vrot.slane %v3766_v54, 1 }
 0x6cc   : > { %v3768_v63 = vadd.f32 %v3767_v35, %v3766_v54 }
 0x6ce   : > { %3940 = vpush %v3768_v63 }
 0x6ff   : > { %s3941_s1 = spop %3940 }
 0x700   : > { %s3772_s30 = smul.f32 0.0011111111, %s3941_s1 }
 0x702   : > { %s3773_s9 = sadd.f32 %s3772_s30, %s3771_s0 }
 0x704   : > { %v3774_v9 = vstv %s3773_s9 }
 0x705   : > { %3775 = vst [vmem:[%s6952_s13] sm:$0xff] %v3774_v9 }
 0x706 PF: > { %s3788_s29 = scalar_lea.hbm %s6493_s6, %s4677_s16  ;;  %s6953_s14 = scalar_lea.vmem [#allocation17], %s4429_s19 }
 0x707   : > { %s3790_s15 = sshll.u32 %s6953_s14, 4  ;;  %s6954_s20 = sand.u32 1, %s4215_s22   ;;  %s3791_s15 = int_to_ptr.vmem [resolvable:$true] %s3790_s15 }
 0x708   : > { %s3777_s2 = scalar_lea.sflag [#allocation10], %s6954_s20  ;;  %s4131_s25 = scalar_lea.vmem %s3791_s15, 128 }
 0x709   : > { %p4132_p1 = scmp.ne.s32.totalorder %s3791_s15, %s4131_s25  ;;  %p6955_p4 = scmp.ne.s32.totalorder %s6662_s10, 0 }
 0x70a   : > { %s4256_s3 = smov [#allocation17]  }
 0x70b   : > { %p4133_p9 = pnand %p4132_p1, %p6955_p4  ;;  %s4135_s4 = sshll.u32 %s4256_s3, 4  ;;  %s4136_s4 = int_to_ptr.vmem [resolvable:$false] %s4135_s4 }
 0x70c   : > { %s4137_s26 = scalar_lea.vmem %s4136_s4, 256  ;;  %p4138_p6 = scmp.lt.s32.totalorder %s3791_s15, %s4136_s4 }
 0x70d   : > { %p4134_p5 = pneg %p4133_p9  ;;  %p4139_p13 = scmp.lt.s32.totalorder %s4137_s26, %s4131_s25 }
 0x70f   : > { %p4140_p3 = por %p4139_p13, %p4138_p6 }
 0x711   : > { %p4141_p10 = pnand %p4140_p3, %p4134_p5 }
 0x713   : > { %4144 = shalt.err (!%p4141_p10)
}
 0x714   : > { %s4145_s16 = scalar_lea.hbm %s3788_s29, 128  ;;  %s4149_s8 = scalar_lea.hbm %s6493_s6, 256 }
 0x715   : > { %p4146_p7 = scmp.ne.s32.totalorder %s3788_s29, %s4145_s16  ;;  %p4150_p2 = scmp.lt.s32.totalorder %s3788_s29, %s6493_s6 }
 0x716   : > { %p4151_p11 = scmp.lt.s32.totalorder %s4149_s8, %s4145_s16 }
 0x717   : > { %p4147_p8 = pnand %p4146_p7, %p6955_p4 }
 0x718   : > { %p4152_p12 = por %p4151_p11, %p4150_p2 }
 0x719   : > { %p4148_p0 = pneg %p4147_p8 }
 0x71b   : > { %p4153_p1 = pnand %p4152_p12, %p4148_p0 }
 0x71d   : > { %4156 = shalt.err (!%p4153_p1)
}
 0x71e   : > { %3958 = dma.vmem_to_hbm [thread:$0]  (%p6955_p4), %s3791_s15, 128, %s3788_s29, %s3777_s2  }
 0x71f PF: > { %p3985_p9 = scmp.ge.s32.totalorder %s4239_s28, 2  ;;  %s3802_s24 = sand.u32 1, %s4211_s21  }
 0x720   : > { %p6956_p5 = scmp.ne.s32.totalorder %s6664_s11, 0  ;;  %s3803_s0 = scalar_lea.sflag [#allocation10], %s3802_s24 }
 0x722   : > { %p3974_p6 = pnand %p3985_p9, %p6956_p5 }
 0x724   : > { %p3975_p13 = pneg %p3974_p6 }
 0x726   : > { %4206 = dma.done.wait (%p3975_p13), %s3803_s0, 128  }
 0x727   : > { %4208 = vsyncadd (%p3975_p13), %s3803_s0, 4294967168  ;;  %s22_s28 = sadd.s32 1, %s4239_s28   ;;  %s6957_s1 = sld [smem:[#allocation26_spill]] }
 0x728   : > { %p19_p3 = scmp.ge.s32.totalorder %s22_s28, 8   ;;  %s6958_s24 = sld [smem:[#allocation22_spill]] }
 0x729   : > { %s6959_s25 = sld [smem:[#allocation23_spill]]  ;;  %s6962_s21 = smov %s4215_s22 }
 0x72a   : > { %s6960_s26 = sld [smem:[#allocation24_spill]]  ;;  %s6963_s22 = smov %s4219_s23 }
 0x72b   : > { %s6961_s27 = sld [smem:[#allocation25_spill]]  ;;  %21 = sbr.rel (!%p19_p3) target bundleno = 14 (0xe), region = 128 }
 0x72d   : > { %s6964_s23 = smov %s6957_s1 }
 0x730   :  { %3808 = vsyncpa [#allocation10], 1 }
 0x731   :  { %3810 = vsyncpa [#allocation10 + $0x1], 1 }
 0x732   :  { %3811 = vsyncpa [#allocation11], 1 }
 0x733   :  { %3813 = vsyncpa [#allocation11 + $0x1], 1 }
 0x734   :  { %3814 = vsyncpa [#allocation13], 1 }
 0x735   :  { %3815 = vsyncpa [#allocation16], 1 }

</bundles_post_ra>
